<compile_context>
chip_gen: v5e
topology: v5e:2x2
jax: 0.10.0
libtpu: 0.0.40
codegen_flags: <defaults>
</compile_context>

<pallas_src>
import functools

import jax
import jax.numpy as jnp
from jax.experimental import pallas as pl
from jax.experimental.pallas import tpu as pltpu


# ---------------------------------------------------------------------------
# Fused multistream backbone + head kernel (one batch element per grid step)
# ---------------------------------------------------------------------------
def _fused_multistream_kernel(xp_ref, w1_ref, b1_ref, w2_ref, b2_ref,
                              wh_ref, bh_ref,
                              feat_ref, logits_ref, probs_ref,
                              h1p_ref, *, H, W):
    """Refs:
      xp_ref : (1, H+2, W+2, C_in)   f32  zero-padded NHWC input
      w1_ref : (9, C_in, C_feat)     f32  conv1 taps (streams packed on columns)
      b1_ref : (1, C_feat)           f32
      w2_ref : (9, C_feat, C_feat)   bf16 conv2 taps (block-diagonal over streams)
      b2_ref : (1, C_feat)           f32
      wh_ref : (C_feat, ncls)        f32  head linear weight
      bh_ref : (1, ncls)             f32
      feat_ref   : (1, C_feat, H*W)  f32  NCHW backbone features (lane dim = H*W)
      logits_ref : (1, 1, ncls)      f32
      probs_ref  : (1, 1, ncls)      f32
      h1p_ref    : (H+2, W+2, C_feat) f32 VMEM scratch: halo-padded conv1 output
    """
    HW = H * W
    F = w2_ref.shape[-1]

    x = xp_ref[0]                                             # (H+2, W+2, C_in)

    # ---- conv1 (3x3 'same') as 9 shifted dots. All streams share the patch; the
    #      packed weight routes input channel s only to columns [s*Fs, (s+1)*Fs).
    acc1 = jnp.zeros((HW, F), jnp.float32)
    for i in range(3):
        for j in range(3):
            xs = x[i:i + H, j:j + W, :].reshape(HW, -1)        # (HW, C_in)
            acc1 = acc1 + jnp.dot(xs, w1_ref[i * 3 + j],
                                  preferred_element_type=jnp.float32)
    h1 = jnp.maximum(acc1 + b1_ref[...], 0.0)                  # (HW, C_feat)

    # ---- stage halo-padded conv1 output in VMEM (never written to HBM).
    h1p_ref[...] = jnp.zeros(h1p_ref.shape, h1p_ref.dtype)
    h1p_ref[1:H + 1, 1:W + 1, :] = h1.reshape(H, W, F)

    # ---- conv2 (3x3 'same', block-diagonal over streams): bf16 MXU, f32 accum.
    acc2 = jnp.zeros((HW, F), jnp.float32)
    for i in range(3):
        for j in range(3):
            hs = h1p_ref[i:i + H, j:j + W, :].reshape(HW, F).astype(jnp.bfloat16)
            acc2 = acc2 + jnp.dot(hs, w2_ref[i * 3 + j],
                                  preferred_element_type=jnp.float32)
    h2 = jnp.maximum(acc2 + b2_ref[...], 0.0)                  # (HW, C_feat)

    # ---- backbone features: store directly in NCHW with lane-dense H*W axis.
    feat_ref[0] = h2.T                                         # (C_feat, HW)

    # ---- fused head: global average pool + linear + softmax for this batch row.
    pooled = jnp.sum(h2, axis=0, keepdims=True) * (1.0 / HW)   # (1, C_feat)
    logits = jnp.dot(pooled, wh_ref[...],
                     preferred_element_type=jnp.float32) + bh_ref[...]
    m = jnp.max(logits, axis=-1, keepdims=True)
    e = jnp.exp(logits - m)
    probs = e * pl.reciprocal(jnp.sum(e, axis=-1, keepdims=True), approx=False)
    logits_ref[0] = logits
    probs_ref[0] = probs


# ---------------------------------------------------------------------------
# Weight packing: per-stream convs -> one lane-dense fused matmul per tap
# ---------------------------------------------------------------------------
def _pack_stream_params(params, num_streams):
    F = params["streams"][0]["w1"].shape[-1]
    C_feat = num_streams * F
    w1 = jnp.zeros((9, num_streams, C_feat), jnp.float32)
    w2 = jnp.zeros((9, C_feat, C_feat), jnp.float32)
    b1 = jnp.zeros((C_feat,), jnp.float32)
    b2 = jnp.zeros((C_feat,), jnp.float32)
    for s in range(num_streams):
        p = params["streams"][s]
        lo, hi = s * F, (s + 1) * F
        w1 = w1.at[:, s, lo:hi].set(p["w1"].reshape(9, F))          # shared patch
        w2 = w2.at[:, lo:hi, lo:hi].set(p["w2"].reshape(9, F, F))   # block diagonal
        b1 = b1.at[lo:hi].set(p["b1"])
        b2 = b2.at[lo:hi].set(p["b2"])
    return (w1, b1.reshape(1, C_feat),
            w2.astype(jnp.bfloat16), b2.reshape(1, C_feat))


# ---------------------------------------------------------------------------
# Model
# ---------------------------------------------------------------------------
def init_params(key, num_streams, stream_channels, num_classes):
    params = {"streams": []}
    for _ in range(num_streams):
        k1, k2, key = jax.random.split(key, 3)
        params["streams"].append({
            "w1": jax.random.normal(k1, (3, 3, 1, stream_channels), jnp.float32) * 0.1,
            "b1": jnp.full((stream_channels,), 0.01, jnp.float32),
            "w2": jax.random.normal(k2, (3, 3, stream_channels, stream_channels),
                                    jnp.float32) * 0.1,
            "b2": jnp.full((stream_channels,), 0.01, jnp.float32),
        })
    kh, key = jax.random.split(key)
    c_feat = num_streams * stream_channels
    params["head"] = {
        "w": jax.random.normal(kh, (c_feat, num_classes), jnp.float32) * 0.1,
        "b": jnp.zeros((num_classes,), jnp.float32),
    }
    return params


@jax.jit
def fuse_model_multistream_forward(x_nchw, params):
    """Forward pass. x_nchw: [B, C_in, H, W] (PyTorch layout)."""
    B, C_in, H, W = x_nchw.shape
    F = params["streams"][0]["w1"].shape[-1]
    C_feat = C_in * F
    ncls = params["head"]["w"].shape[-1]

    w1p, b1p, w2p, b2p = _pack_stream_params(params, C_in)
    wh = params["head"]["w"].astype(jnp.float32)
    bh = params["head"]["b"].reshape(1, ncls).astype(jnp.float32)

    # NCHW -> NHWC + 1-px zero pad for the 'same' 3x3 convs (tiny vs feature maps).
    x_nhwc = jnp.transpose(x_nchw, (0, 2, 3, 1)).astype(jnp.float32)
    xp = jnp.pad(x_nhwc, ((0, 0), (1, 1), (1, 1), (0, 0)))

    kernel = functools.partial(_fused_multistream_kernel, H=H, W=W)
    feat, logits3, probs3 = pl.pallas_call(
        kernel,
        out_shape=(
            jax.ShapeDtypeStruct((B, C_feat, H * W), jnp.float32),
            jax.ShapeDtypeStruct((B, 1, ncls), jnp.float32),
            jax.ShapeDtypeStruct((B, 1, ncls), jnp.float32),
        ),
        grid_spec=pltpu.PrefetchScalarGridSpec(
            num_scalar_prefetch=0,
            grid=(B,),
            in_specs=[
                pl.BlockSpec((1, H + 2, W + 2, C_in), lambda b: (b, 0, 0, 0)),
                pl.BlockSpec((9, C_in, C_feat), lambda b: (0, 0, 0)),
                pl.BlockSpec((1, C_feat), lambda b: (0, 0)),
                pl.BlockSpec((9, C_feat, C_feat), lambda b: (0, 0, 0)),
                pl.BlockSpec((1, C_feat), lambda b: (0, 0)),
                pl.BlockSpec((C_feat, ncls), lambda b: (0, 0)),
                pl.BlockSpec((1, ncls), lambda b: (0, 0)),
            ],
            out_specs=[
                pl.BlockSpec((1, C_feat, H * W), lambda b: (b, 0, 0)),
                pl.BlockSpec((1, 1, ncls), lambda b: (b, 0, 0)),
                pl.BlockSpec((1, 1, ncls), lambda b: (b, 0, 0)),
            ],
            scratch_shapes=[pltpu.VMEM((H + 2, W + 2, C_feat), jnp.float32)],
        ),
        compiler_params=pltpu.CompilerParams(
            dimension_semantics=("parallel",)),   # batch shards across v7x's 2 TCs
    )(xp, w1p, b1p, w2p, b2p, wh, bh)

    backbone_features = feat.reshape(B, C_feat, H, W)   # already NCHW; free reshape
    logits = logits3.reshape(B, ncls)
    probs = probs3.reshape(B, ncls)
    return {
        "backbone_features": backbone_features,
        "logits": {"head_0": logits},
        "output": {"head_0": probs},
    }


# ---------------------------------------------------------------------------
# Reference (pure JAX, f32) for a correctness check
# ---------------------------------------------------------------------------
def reference_forward(x_nchw, params):
    B, C_in, H, W = x_nchw.shape
    outs = []
    for ch in range(C_in):
        x = x_nchw[:, ch, :, :][:, :, :, None]
        p = params["streams"][ch]
        h = jax.lax.conv_general_dilated(x, p["w1"], (1, 1), "SAME",
                                         dimension_numbers=("NHWC", "HWIO", "NHWC"),
                                         precision=jax.lax.Precision.HIGHEST)
        h = jnp.maximum(h + p["b1"], 0.0)
        h = jax.lax.conv_general_dilated(h, p["w2"], (1, 1), "SAME",
                                         dimension_numbers=("NHWC", "HWIO", "NHWC"),
                                         precision=jax.lax.Precision.HIGHEST)
        h = jnp.maximum(h + p["b2"], 0.0)
        outs.append(h)
    feat = jnp.concatenate(outs, axis=-1)
    pooled = jnp.mean(feat, axis=(1, 2))
    logits = pooled @ params["head"]["w"] + params["head"]["b"]
    probs = jax.nn.softmax(logits, axis=-1)
    return jnp.transpose(feat, (0, 3, 1, 2)), logits, probs


if __name__ == "__main__":
    B, C_in, H, W = 2, 2, 16, 16        # 2 input channels -> 2 backbone streams
    STREAM_CH = 64                      # per-stream channels; C_feat = 128 (lane-dense)
    NUM_CLASSES = 2

    key = jax.random.PRNGKey(0)
    kx, kp = jax.random.split(key)
    x = jax.random.normal(kx, (B, C_in, H, W), jnp.float32)
    params = init_params(kp, num_streams=C_in, stream_channels=STREAM_CH,
                         num_classes=NUM_CLASSES)

    out = fuse_model_multistream_forward(x, params)
    jax.block_until_ready(out)

    # correctness check vs pure-JAX f32 reference (conv2 runs on the bf16 MXU
    # path with f32 accumulation -> modest tolerances).
    ref_feat, ref_logits, ref_probs = reference_forward(x, params)
    assert jnp.allclose(out["backbone_features"], ref_feat, atol=3e-2, rtol=3e-2)
    assert jnp.allclose(out["logits"]["head_0"], ref_logits, atol=1e-2, rtol=1e-2)
    assert jnp.allclose(out["output"]["head_0"], ref_probs, atol=1e-2, rtol=1e-2)

    print("KERNEL_OK")
</pallas_src>

<mosaic_0001>
module attributes {stable_mosaic.version = 11 : i64} {
  func.func @_fused_multistream_kernel(%arg0: i32, %arg1: memref<1x18x18x2xf32, #tpu.memory_space<vmem>>, %arg2: memref<9x2x128xf32, #tpu.memory_space<vmem>>, %arg3: memref<1x128xf32, #tpu.memory_space<vmem>>, %arg4: memref<9x128x128xbf16, #tpu.memory_space<vmem>>, %arg5: memref<1x128xf32, #tpu.memory_space<vmem>>, %arg6: memref<128x2xf32, #tpu.memory_space<vmem>>, %arg7: memref<1x2xf32, #tpu.memory_space<vmem>>, %arg8: memref<1x128x256xf32, #tpu.memory_space<vmem>>, %arg9: memref<1x1x2xf32, #tpu.memory_space<vmem>>, %arg10: memref<1x1x2xf32, #tpu.memory_space<vmem>>, %arg11: memref<18x18x128xf32, #tpu.memory_space<vmem>>) attributes {dimension_semantics = [#tpu.dimension_semantics<parallel>], iteration_bounds = array<i64: 2>, scalar_prefetch = 0 : i64, scratch_operands = 1 : i64, tpu.core_type = #tpu.core_type<tc>, window_params = [{transform_indices = @transform_0, window_bounds = array<i64: 1, 18, 18, 2>}, {pipeline_mode = #tpu.pipeline_mode<synchronous>, transform_indices = @transform_1, window_bounds = array<i64: 9, 2, 128>}, {pipeline_mode = #tpu.pipeline_mode<synchronous>, transform_indices = @transform_2, window_bounds = array<i64: 1, 128>}, {pipeline_mode = #tpu.pipeline_mode<synchronous>, transform_indices = @transform_3, window_bounds = array<i64: 9, 128, 128>}, {pipeline_mode = #tpu.pipeline_mode<synchronous>, transform_indices = @transform_4, window_bounds = array<i64: 1, 128>}, {pipeline_mode = #tpu.pipeline_mode<synchronous>, transform_indices = @transform_5, window_bounds = array<i64: 128, 2>}, {pipeline_mode = #tpu.pipeline_mode<synchronous>, transform_indices = @transform_6, window_bounds = array<i64: 1, 2>}, {transform_indices = @transform_7, window_bounds = array<i64: 1, 128, 256>}, {transform_indices = @transform_8, window_bounds = array<i64: 1, 1, 2>}, {transform_indices = @transform_9, window_bounds = array<i64: 1, 1, 2>}]} {
    %c0 = arith.constant 0 : index
    %c0_0 = arith.constant 0 : index
    %c0_1 = arith.constant 0 : index
    %c0_2 = arith.constant 0 : index
    %0 = vector.load %arg1[%c0, %c0_0, %c0_1, %c0_2] : memref<1x18x18x2xf32, #tpu.memory_space<vmem>>, vector<1x18x18x2xf32>
    %1 = vector.shape_cast %0 : vector<1x18x18x2xf32> to vector<18x18x2xf32>
    %cst = arith.constant 0.000000e+00 : f32
    %2 = vector.broadcast %cst : f32 to vector<256x128xf32>
    %3 = vector.extract_strided_slice %1 {offsets = [0, 0, 0], sizes = [16, 16, 2], strides = [1, 1, 1]} : vector<18x18x2xf32> to vector<16x16x2xf32>
    %4 = vector.shape_cast %3 : vector<16x16x2xf32> to vector<256x2xf32>
    %c0_3 = arith.constant 0 : index
    %c0_4 = arith.constant 0 : index
    %c0_5 = arith.constant 0 : index
    %5 = vector.load %arg2[%c0_3, %c0_4, %c0_5] : memref<9x2x128xf32, #tpu.memory_space<vmem>>, vector<1x2x128xf32>
    %6 = vector.shape_cast %5 : vector<1x2x128xf32> to vector<2x128xf32>
    %cst_6 = arith.constant dense<0.000000e+00> : vector<256x128xf32>
    %7 = tpu.matmul %4, %6, %cst_6 {dimension_numbers = #tpu.dot_dimension_numbers<[1], [0], [0], [1], [0, 0, 1, 1], [], []>} : vector<256x2xf32>, vector<2x128xf32>, vector<256x128xf32> -> vector<256x128xf32>
    %8 = arith.addf %2, %7 : vector<256x128xf32>
    %9 = vector.extract_strided_slice %1 {offsets = [0, 1, 0], sizes = [16, 16, 2], strides = [1, 1, 1]} : vector<18x18x2xf32> to vector<16x16x2xf32>
    %10 = vector.shape_cast %9 : vector<16x16x2xf32> to vector<256x2xf32>
    %c1 = arith.constant 1 : index
    %c0_7 = arith.constant 0 : index
    %c0_8 = arith.constant 0 : index
    %11 = vector.load %arg2[%c1, %c0_7, %c0_8] : memref<9x2x128xf32, #tpu.memory_space<vmem>>, vector<1x2x128xf32>
    %12 = vector.shape_cast %11 : vector<1x2x128xf32> to vector<2x128xf32>
    %cst_9 = arith.constant dense<0.000000e+00> : vector<256x128xf32>
    %13 = tpu.matmul %10, %12, %cst_9 {dimension_numbers = #tpu.dot_dimension_numbers<[1], [0], [0], [1], [0, 0, 1, 1], [], []>} : vector<256x2xf32>, vector<2x128xf32>, vector<256x128xf32> -> vector<256x128xf32>
    %14 = arith.addf %8, %13 : vector<256x128xf32>
    %15 = vector.extract_strided_slice %1 {offsets = [0, 2, 0], sizes = [16, 16, 2], strides = [1, 1, 1]} : vector<18x18x2xf32> to vector<16x16x2xf32>
    %16 = vector.shape_cast %15 : vector<16x16x2xf32> to vector<256x2xf32>
    %c2 = arith.constant 2 : index
    %c0_10 = arith.constant 0 : index
    %c0_11 = arith.constant 0 : index
    %17 = vector.load %arg2[%c2, %c0_10, %c0_11] : memref<9x2x128xf32, #tpu.memory_space<vmem>>, vector<1x2x128xf32>
    %18 = vector.shape_cast %17 : vector<1x2x128xf32> to vector<2x128xf32>
    %cst_12 = arith.constant dense<0.000000e+00> : vector<256x128xf32>
    %19 = tpu.matmul %16, %18, %cst_12 {dimension_numbers = #tpu.dot_dimension_numbers<[1], [0], [0], [1], [0, 0, 1, 1], [], []>} : vector<256x2xf32>, vector<2x128xf32>, vector<256x128xf32> -> vector<256x128xf32>
    %20 = arith.addf %14, %19 : vector<256x128xf32>
    %21 = vector.extract_strided_slice %1 {offsets = [1, 0, 0], sizes = [16, 16, 2], strides = [1, 1, 1]} : vector<18x18x2xf32> to vector<16x16x2xf32>
    %22 = vector.shape_cast %21 : vector<16x16x2xf32> to vector<256x2xf32>
    %c3 = arith.constant 3 : index
    %c0_13 = arith.constant 0 : index
    %c0_14 = arith.constant 0 : index
    %23 = vector.load %arg2[%c3, %c0_13, %c0_14] : memref<9x2x128xf32, #tpu.memory_space<vmem>>, vector<1x2x128xf32>
    %24 = vector.shape_cast %23 : vector<1x2x128xf32> to vector<2x128xf32>
    %cst_15 = arith.constant dense<0.000000e+00> : vector<256x128xf32>
    %25 = tpu.matmul %22, %24, %cst_15 {dimension_numbers = #tpu.dot_dimension_numbers<[1], [0], [0], [1], [0, 0, 1, 1], [], []>} : vector<256x2xf32>, vector<2x128xf32>, vector<256x128xf32> -> vector<256x128xf32>
    %26 = arith.addf %20, %25 : vector<256x128xf32>
    %27 = vector.extract_strided_slice %1 {offsets = [1, 1, 0], sizes = [16, 16, 2], strides = [1, 1, 1]} : vector<18x18x2xf32> to vector<16x16x2xf32>
    %28 = vector.shape_cast %27 : vector<16x16x2xf32> to vector<256x2xf32>
    %c4 = arith.constant 4 : index
    %c0_16 = arith.constant 0 : index
    %c0_17 = arith.constant 0 : index
    %29 = vector.load %arg2[%c4, %c0_16, %c0_17] : memref<9x2x128xf32, #tpu.memory_space<vmem>>, vector<1x2x128xf32>
    %30 = vector.shape_cast %29 : vector<1x2x128xf32> to vector<2x128xf32>
    %cst_18 = arith.constant dense<0.000000e+00> : vector<256x128xf32>
    %31 = tpu.matmul %28, %30, %cst_18 {dimension_numbers = #tpu.dot_dimension_numbers<[1], [0], [0], [1], [0, 0, 1, 1], [], []>} : vector<256x2xf32>, vector<2x128xf32>, vector<256x128xf32> -> vector<256x128xf32>
    %32 = arith.addf %26, %31 : vector<256x128xf32>
    %33 = vector.extract_strided_slice %1 {offsets = [1, 2, 0], sizes = [16, 16, 2], strides = [1, 1, 1]} : vector<18x18x2xf32> to vector<16x16x2xf32>
    %34 = vector.shape_cast %33 : vector<16x16x2xf32> to vector<256x2xf32>
    %c5 = arith.constant 5 : index
    %c0_19 = arith.constant 0 : index
    %c0_20 = arith.constant 0 : index
    %35 = vector.load %arg2[%c5, %c0_19, %c0_20] : memref<9x2x128xf32, #tpu.memory_space<vmem>>, vector<1x2x128xf32>
    %36 = vector.shape_cast %35 : vector<1x2x128xf32> to vector<2x128xf32>
    %cst_21 = arith.constant dense<0.000000e+00> : vector<256x128xf32>
    %37 = tpu.matmul %34, %36, %cst_21 {dimension_numbers = #tpu.dot_dimension_numbers<[1], [0], [0], [1], [0, 0, 1, 1], [], []>} : vector<256x2xf32>, vector<2x128xf32>, vector<256x128xf32> -> vector<256x128xf32>
    %38 = arith.addf %32, %37 : vector<256x128xf32>
    %39 = vector.extract_strided_slice %1 {offsets = [2, 0, 0], sizes = [16, 16, 2], strides = [1, 1, 1]} : vector<18x18x2xf32> to vector<16x16x2xf32>
    %40 = vector.shape_cast %39 : vector<16x16x2xf32> to vector<256x2xf32>
    %c6 = arith.constant 6 : index
    %c0_22 = arith.constant 0 : index
    %c0_23 = arith.constant 0 : index
    %41 = vector.load %arg2[%c6, %c0_22, %c0_23] : memref<9x2x128xf32, #tpu.memory_space<vmem>>, vector<1x2x128xf32>
    %42 = vector.shape_cast %41 : vector<1x2x128xf32> to vector<2x128xf32>
    %cst_24 = arith.constant dense<0.000000e+00> : vector<256x128xf32>
    %43 = tpu.matmul %40, %42, %cst_24 {dimension_numbers = #tpu.dot_dimension_numbers<[1], [0], [0], [1], [0, 0, 1, 1], [], []>} : vector<256x2xf32>, vector<2x128xf32>, vector<256x128xf32> -> vector<256x128xf32>
    %44 = arith.addf %38, %43 : vector<256x128xf32>
    %45 = vector.extract_strided_slice %1 {offsets = [2, 1, 0], sizes = [16, 16, 2], strides = [1, 1, 1]} : vector<18x18x2xf32> to vector<16x16x2xf32>
    %46 = vector.shape_cast %45 : vector<16x16x2xf32> to vector<256x2xf32>
    %c7 = arith.constant 7 : index
    %c0_25 = arith.constant 0 : index
    %c0_26 = arith.constant 0 : index
    %47 = vector.load %arg2[%c7, %c0_25, %c0_26] : memref<9x2x128xf32, #tpu.memory_space<vmem>>, vector<1x2x128xf32>
    %48 = vector.shape_cast %47 : vector<1x2x128xf32> to vector<2x128xf32>
    %cst_27 = arith.constant dense<0.000000e+00> : vector<256x128xf32>
    %49 = tpu.matmul %46, %48, %cst_27 {dimension_numbers = #tpu.dot_dimension_numbers<[1], [0], [0], [1], [0, 0, 1, 1], [], []>} : vector<256x2xf32>, vector<2x128xf32>, vector<256x128xf32> -> vector<256x128xf32>
    %50 = arith.addf %44, %49 : vector<256x128xf32>
    %51 = vector.extract_strided_slice %1 {offsets = [2, 2, 0], sizes = [16, 16, 2], strides = [1, 1, 1]} : vector<18x18x2xf32> to vector<16x16x2xf32>
    %52 = vector.shape_cast %51 : vector<16x16x2xf32> to vector<256x2xf32>
    %c8 = arith.constant 8 : index
    %c0_28 = arith.constant 0 : index
    %c0_29 = arith.constant 0 : index
    %53 = vector.load %arg2[%c8, %c0_28, %c0_29] : memref<9x2x128xf32, #tpu.memory_space<vmem>>, vector<1x2x128xf32>
    %54 = vector.shape_cast %53 : vector<1x2x128xf32> to vector<2x128xf32>
    %cst_30 = arith.constant dense<0.000000e+00> : vector<256x128xf32>
    %55 = tpu.matmul %52, %54, %cst_30 {dimension_numbers = #tpu.dot_dimension_numbers<[1], [0], [0], [1], [0, 0, 1, 1], [], []>} : vector<256x2xf32>, vector<2x128xf32>, vector<256x128xf32> -> vector<256x128xf32>
    %56 = arith.addf %50, %55 : vector<256x128xf32>
    %c0_31 = arith.constant 0 : index
    %c0_32 = arith.constant 0 : index
    %57 = vector.load %arg3[%c0_31, %c0_32] : memref<1x128xf32, #tpu.memory_space<vmem>>, vector<1x128xf32>
    %58 = vector.broadcast %57 : vector<1x128xf32> to vector<256x128xf32>
    %59 = arith.addf %56, %58 : vector<256x128xf32>
    %cst_33 = arith.constant 0.000000e+00 : f32
    %60 = vector.broadcast %cst_33 : f32 to vector<256x128xf32>
    %61 = arith.maximumf %59, %60 : vector<256x128xf32>
    %cst_34 = arith.constant 0.000000e+00 : f32
    %62 = vector.broadcast %cst_34 : f32 to vector<18x18x128xf32>
    %c0_35 = arith.constant 0 : index
    %c0_36 = arith.constant 0 : index
    %c0_37 = arith.constant 0 : index
    %63 = vector.load %arg11[%c0_35, %c0_36, %c0_37] : memref<18x18x128xf32, #tpu.memory_space<vmem>>, vector<18x18x128xf32>
    tpu.vector_store %arg11[%c0_35, %c0_36, %c0_37], %62 {strides = array<i32>} : memref<18x18x128xf32, #tpu.memory_space<vmem>>, vector<18x18x128xf32>,
    %64 = vector.shape_cast %61 : vector<256x128xf32> to vector<16x16x128xf32>
    %c1_38 = arith.constant 1 : index
    %c1_39 = arith.constant 1 : index
    %c0_40 = arith.constant 0 : index
    %65 = vector.load %arg11[%c1_38, %c1_39, %c0_40] : memref<18x18x128xf32, #tpu.memory_space<vmem>>, vector<16x16x128xf32>
    tpu.vector_store %arg11[%c1_38, %c1_39, %c0_40], %64 {strides = array<i32>} : memref<18x18x128xf32, #tpu.memory_space<vmem>>, vector<16x16x128xf32>,
    %cst_41 = arith.constant 0.000000e+00 : f32
    %66 = vector.broadcast %cst_41 : f32 to vector<256x128xf32>
    %c0_42 = arith.constant 0 : index
    %c0_43 = arith.constant 0 : index
    %c0_44 = arith.constant 0 : index
    %67 = vector.load %arg11[%c0_42, %c0_43, %c0_44] : memref<18x18x128xf32, #tpu.memory_space<vmem>>, vector<16x16x128xf32>
    %68 = vector.shape_cast %67 : vector<16x16x128xf32> to vector<256x128xf32>
    %69 = arith.truncf %68 : vector<256x128xf32> to vector<256x128xbf16>
    %c0_45 = arith.constant 0 : index
    %c0_46 = arith.constant 0 : index
    %c0_47 = arith.constant 0 : index
    %70 = vector.load %arg4[%c0_45, %c0_46, %c0_47] : memref<9x128x128xbf16, #tpu.memory_space<vmem>>, vector<1x128x128xbf16>
    %71 = vector.shape_cast %70 : vector<1x128x128xbf16> to vector<128x128xbf16>
    %cst_48 = arith.constant dense<0.000000e+00> : vector<256x128xf32>
    %72 = tpu.matmul %69, %71, %cst_48 {dimension_numbers = #tpu.dot_dimension_numbers<[1], [0], [0], [1], [0, 0, 1, 1], [], []>} : vector<256x128xbf16>, vector<128x128xbf16>, vector<256x128xf32> -> vector<256x128xf32>
    %73 = arith.addf %66, %72 : vector<256x128xf32>
    %c0_49 = arith.constant 0 : index
    %c1_50 = arith.constant 1 : index
    %c0_51 = arith.constant 0 : index
    %74 = vector.load %arg11[%c0_49, %c1_50, %c0_51] : memref<18x18x128xf32, #tpu.memory_space<vmem>>, vector<16x16x128xf32>
    %75 = vector.shape_cast %74 : vector<16x16x128xf32> to vector<256x128xf32>
    %76 = arith.truncf %75 : vector<256x128xf32> to vector<256x128xbf16>
    %c1_52 = arith.constant 1 : index
    %c0_53 = arith.constant 0 : index
    %c0_54 = arith.constant 0 : index
    %77 = vector.load %arg4[%c1_52, %c0_53, %c0_54] : memref<9x128x128xbf16, #tpu.memory_space<vmem>>, vector<1x128x128xbf16>
    %78 = vector.shape_cast %77 : vector<1x128x128xbf16> to vector<128x128xbf16>
    %cst_55 = arith.constant dense<0.000000e+00> : vector<256x128xf32>
    %79 = tpu.matmul %76, %78, %cst_55 {dimension_numbers = #tpu.dot_dimension_numbers<[1], [0], [0], [1], [0, 0, 1, 1], [], []>} : vector<256x128xbf16>, vector<128x128xbf16>, vector<256x128xf32> -> vector<256x128xf32>
    %80 = arith.addf %73, %79 : vector<256x128xf32>
    %c0_56 = arith.constant 0 : index
    %c2_57 = arith.constant 2 : index
    %c0_58 = arith.constant 0 : index
    %81 = vector.load %arg11[%c0_56, %c2_57, %c0_58] : memref<18x18x128xf32, #tpu.memory_space<vmem>>, vector<16x16x128xf32>
    %82 = vector.shape_cast %81 : vector<16x16x128xf32> to vector<256x128xf32>
    %83 = arith.truncf %82 : vector<256x128xf32> to vector<256x128xbf16>
    %c2_59 = arith.constant 2 : index
    %c0_60 = arith.constant 0 : index
    %c0_61 = arith.constant 0 : index
    %84 = vector.load %arg4[%c2_59, %c0_60, %c0_61] : memref<9x128x128xbf16, #tpu.memory_space<vmem>>, vector<1x128x128xbf16>
    %85 = vector.shape_cast %84 : vector<1x128x128xbf16> to vector<128x128xbf16>
    %cst_62 = arith.constant dense<0.000000e+00> : vector<256x128xf32>
    %86 = tpu.matmul %83, %85, %cst_62 {dimension_numbers = #tpu.dot_dimension_numbers<[1], [0], [0], [1], [0, 0, 1, 1], [], []>} : vector<256x128xbf16>, vector<128x128xbf16>, vector<256x128xf32> -> vector<256x128xf32>
    %87 = arith.addf %80, %86 : vector<256x128xf32>
    %c1_63 = arith.constant 1 : index
    %c0_64 = arith.constant 0 : index
    %c0_65 = arith.constant 0 : index
    %88 = vector.load %arg11[%c1_63, %c0_64, %c0_65] : memref<18x18x128xf32, #tpu.memory_space<vmem>>, vector<16x16x128xf32>
    %89 = vector.shape_cast %88 : vector<16x16x128xf32> to vector<256x128xf32>
    %90 = arith.truncf %89 : vector<256x128xf32> to vector<256x128xbf16>
    %c3_66 = arith.constant 3 : index
    %c0_67 = arith.constant 0 : index
    %c0_68 = arith.constant 0 : index
    %91 = vector.load %arg4[%c3_66, %c0_67, %c0_68] : memref<9x128x128xbf16, #tpu.memory_space<vmem>>, vector<1x128x128xbf16>
    %92 = vector.shape_cast %91 : vector<1x128x128xbf16> to vector<128x128xbf16>
    %cst_69 = arith.constant dense<0.000000e+00> : vector<256x128xf32>
    %93 = tpu.matmul %90, %92, %cst_69 {dimension_numbers = #tpu.dot_dimension_numbers<[1], [0], [0], [1], [0, 0, 1, 1], [], []>} : vector<256x128xbf16>, vector<128x128xbf16>, vector<256x128xf32> -> vector<256x128xf32>
    %94 = arith.addf %87, %93 : vector<256x128xf32>
    %c1_70 = arith.constant 1 : index
    %c1_71 = arith.constant 1 : index
    %c0_72 = arith.constant 0 : index
    %95 = vector.load %arg11[%c1_70, %c1_71, %c0_72] : memref<18x18x128xf32, #tpu.memory_space<vmem>>, vector<16x16x128xf32>
    %96 = vector.shape_cast %95 : vector<16x16x128xf32> to vector<256x128xf32>
    %97 = arith.truncf %96 : vector<256x128xf32> to vector<256x128xbf16>
    %c4_73 = arith.constant 4 : index
    %c0_74 = arith.constant 0 : index
    %c0_75 = arith.constant 0 : index
    %98 = vector.load %arg4[%c4_73, %c0_74, %c0_75] : memref<9x128x128xbf16, #tpu.memory_space<vmem>>, vector<1x128x128xbf16>
    %99 = vector.shape_cast %98 : vector<1x128x128xbf16> to vector<128x128xbf16>
    %cst_76 = arith.constant dense<0.000000e+00> : vector<256x128xf32>
    %100 = tpu.matmul %97, %99, %cst_76 {dimension_numbers = #tpu.dot_dimension_numbers<[1], [0], [0], [1], [0, 0, 1, 1], [], []>} : vector<256x128xbf16>, vector<128x128xbf16>, vector<256x128xf32> -> vector<256x128xf32>
    %101 = arith.addf %94, %100 : vector<256x128xf32>
    %c1_77 = arith.constant 1 : index
    %c2_78 = arith.constant 2 : index
    %c0_79 = arith.constant 0 : index
    %102 = vector.load %arg11[%c1_77, %c2_78, %c0_79] : memref<18x18x128xf32, #tpu.memory_space<vmem>>, vector<16x16x128xf32>
    %103 = vector.shape_cast %102 : vector<16x16x128xf32> to vector<256x128xf32>
    %104 = arith.truncf %103 : vector<256x128xf32> to vector<256x128xbf16>
    %c5_80 = arith.constant 5 : index
    %c0_81 = arith.constant 0 : index
    %c0_82 = arith.constant 0 : index
    %105 = vector.load %arg4[%c5_80, %c0_81, %c0_82] : memref<9x128x128xbf16, #tpu.memory_space<vmem>>, vector<1x128x128xbf16>
    %106 = vector.shape_cast %105 : vector<1x128x128xbf16> to vector<128x128xbf16>
    %cst_83 = arith.constant dense<0.000000e+00> : vector<256x128xf32>
    %107 = tpu.matmul %104, %106, %cst_83 {dimension_numbers = #tpu.dot_dimension_numbers<[1], [0], [0], [1], [0, 0, 1, 1], [], []>} : vector<256x128xbf16>, vector<128x128xbf16>, vector<256x128xf32> -> vector<256x128xf32>
    %108 = arith.addf %101, %107 : vector<256x128xf32>
    %c2_84 = arith.constant 2 : index
    %c0_85 = arith.constant 0 : index
    %c0_86 = arith.constant 0 : index
    %109 = vector.load %arg11[%c2_84, %c0_85, %c0_86] : memref<18x18x128xf32, #tpu.memory_space<vmem>>, vector<16x16x128xf32>
    %110 = vector.shape_cast %109 : vector<16x16x128xf32> to vector<256x128xf32>
    %111 = arith.truncf %110 : vector<256x128xf32> to vector<256x128xbf16>
    %c6_87 = arith.constant 6 : index
    %c0_88 = arith.constant 0 : index
    %c0_89 = arith.constant 0 : index
    %112 = vector.load %arg4[%c6_87, %c0_88, %c0_89] : memref<9x128x128xbf16, #tpu.memory_space<vmem>>, vector<1x128x128xbf16>
    %113 = vector.shape_cast %112 : vector<1x128x128xbf16> to vector<128x128xbf16>
    %cst_90 = arith.constant dense<0.000000e+00> : vector<256x128xf32>
    %114 = tpu.matmul %111, %113, %cst_90 {dimension_numbers = #tpu.dot_dimension_numbers<[1], [0], [0], [1], [0, 0, 1, 1], [], []>} : vector<256x128xbf16>, vector<128x128xbf16>, vector<256x128xf32> -> vector<256x128xf32>
    %115 = arith.addf %108, %114 : vector<256x128xf32>
    %c2_91 = arith.constant 2 : index
    %c1_92 = arith.constant 1 : index
    %c0_93 = arith.constant 0 : index
    %116 = vector.load %arg11[%c2_91, %c1_92, %c0_93] : memref<18x18x128xf32, #tpu.memory_space<vmem>>, vector<16x16x128xf32>
    %117 = vector.shape_cast %116 : vector<16x16x128xf32> to vector<256x128xf32>
    %118 = arith.truncf %117 : vector<256x128xf32> to vector<256x128xbf16>
    %c7_94 = arith.constant 7 : index
    %c0_95 = arith.constant 0 : index
    %c0_96 = arith.constant 0 : index
    %119 = vector.load %arg4[%c7_94, %c0_95, %c0_96] : memref<9x128x128xbf16, #tpu.memory_space<vmem>>, vector<1x128x128xbf16>
    %120 = vector.shape_cast %119 : vector<1x128x128xbf16> to vector<128x128xbf16>
    %cst_97 = arith.constant dense<0.000000e+00> : vector<256x128xf32>
    %121 = tpu.matmul %118, %120, %cst_97 {dimension_numbers = #tpu.dot_dimension_numbers<[1], [0], [0], [1], [0, 0, 1, 1], [], []>} : vector<256x128xbf16>, vector<128x128xbf16>, vector<256x128xf32> -> vector<256x128xf32>
    %122 = arith.addf %115, %121 : vector<256x128xf32>
    %c2_98 = arith.constant 2 : index
    %c2_99 = arith.constant 2 : index
    %c0_100 = arith.constant 0 : index
    %123 = vector.load %arg11[%c2_98, %c2_99, %c0_100] : memref<18x18x128xf32, #tpu.memory_space<vmem>>, vector<16x16x128xf32>
    %124 = vector.shape_cast %123 : vector<16x16x128xf32> to vector<256x128xf32>
    %125 = arith.truncf %124 : vector<256x128xf32> to vector<256x128xbf16>
    %c8_101 = arith.constant 8 : index
    %c0_102 = arith.constant 0 : index
    %c0_103 = arith.constant 0 : index
    %126 = vector.load %arg4[%c8_101, %c0_102, %c0_103] : memref<9x128x128xbf16, #tpu.memory_space<vmem>>, vector<1x128x128xbf16>
    %127 = vector.shape_cast %126 : vector<1x128x128xbf16> to vector<128x128xbf16>
    %cst_104 = arith.constant dense<0.000000e+00> : vector<256x128xf32>
    %128 = tpu.matmul %125, %127, %cst_104 {dimension_numbers = #tpu.dot_dimension_numbers<[1], [0], [0], [1], [0, 0, 1, 1], [], []>} : vector<256x128xbf16>, vector<128x128xbf16>, vector<256x128xf32> -> vector<256x128xf32>
    %129 = arith.addf %122, %128 : vector<256x128xf32>
    %c0_105 = arith.constant 0 : index
    %c0_106 = arith.constant 0 : index
    %130 = vector.load %arg5[%c0_105, %c0_106] : memref<1x128xf32, #tpu.memory_space<vmem>>, vector<1x128xf32>
    %131 = vector.broadcast %130 : vector<1x128xf32> to vector<256x128xf32>
    %132 = arith.addf %129, %131 : vector<256x128xf32>
    %cst_107 = arith.constant 0.000000e+00 : f32
    %133 = vector.broadcast %cst_107 : f32 to vector<256x128xf32>
    %134 = arith.maximumf %132, %133 : vector<256x128xf32>
    %135 = tpu.transpose %134, [1, 0] : vector<256x128xf32> -> vector<128x256xf32>
    %c0_108 = arith.constant 0 : index
    %c0_109 = arith.constant 0 : index
    %c0_110 = arith.constant 0 : index
    %136 = vector.load %arg8[%c0_108, %c0_109, %c0_110] : memref<1x128x256xf32, #tpu.memory_space<vmem>>, vector<1x128x256xf32>
    %137 = vector.shape_cast %136 : vector<1x128x256xf32> to vector<128x256xf32>
    %138 = vector.shape_cast %135 : vector<128x256xf32> to vector<1x128x256xf32>
    tpu.vector_store %arg8[%c0_108, %c0_109, %c0_110], %138 {strides = array<i32>} : memref<1x128x256xf32, #tpu.memory_space<vmem>>, vector<1x128x256xf32>,
    %cst_111 = arith.constant dense<0.000000e+00> : vector<128xf32>
    %139 = vector.multi_reduction <add>, %134, %cst_111 [0] : vector<256x128xf32> to vector<128xf32>
    %140 = vector.shape_cast %139 : vector<128xf32> to vector<1x128xf32>
    %cst_112 = arith.constant 3.906250e-03 : f32
    %141 = vector.broadcast %cst_112 : f32 to vector<1x128xf32>
    %142 = arith.mulf %140, %141 : vector<1x128xf32>
    %c0_113 = arith.constant 0 : index
    %c0_114 = arith.constant 0 : index
    %143 = vector.load %arg6[%c0_113, %c0_114] : memref<128x2xf32, #tpu.memory_space<vmem>>, vector<128x2xf32>
    %cst_115 = arith.constant dense<0.000000e+00> : vector<1x2xf32>
    %144 = tpu.matmul %142, %143, %cst_115 {dimension_numbers = #tpu.dot_dimension_numbers<[1], [0], [0], [1], [0, 0, 1, 1], [], []>} : vector<1x128xf32>, vector<128x2xf32>, vector<1x2xf32> -> vector<1x2xf32>
    %c0_116 = arith.constant 0 : index
    %c0_117 = arith.constant 0 : index
    %145 = vector.load %arg7[%c0_116, %c0_117] : memref<1x2xf32, #tpu.memory_space<vmem>>, vector<1x2xf32>
    %146 = arith.addf %144, %145 : vector<1x2xf32>
    %cst_118 = arith.constant dense<0xFF800000> : vector<1xf32>
    %147 = vector.multi_reduction <maximumf>, %146, %cst_118 [1] : vector<1x2xf32> to vector<1xf32>
    %148 = vector.shape_cast %147 : vector<1xf32> to vector<1x1xf32>
    %149 = vector.broadcast %148 : vector<1x1xf32> to vector<1x2xf32>
    %150 = arith.subf %146, %149 : vector<1x2xf32>
    %151 = math.exp %150 : vector<1x2xf32>
    %cst_119 = arith.constant dense<0.000000e+00> : vector<1xf32>
    %152 = vector.multi_reduction <add>, %151, %cst_119 [1] : vector<1x2xf32> to vector<1xf32>
    %153 = vector.shape_cast %152 : vector<1xf32> to vector<1x1xf32>
    %154 = tpu.reciprocal %153 : vector<1x1xf32> -> vector<1x1xf32>
    %155 = vector.broadcast %154 : vector<1x1xf32> to vector<1x2xf32>
    %156 = arith.mulf %151, %155 : vector<1x2xf32>
    %c0_120 = arith.constant 0 : index
    %c0_121 = arith.constant 0 : index
    %c0_122 = arith.constant 0 : index
    %157 = vector.load %arg9[%c0_120, %c0_121, %c0_122] : memref<1x1x2xf32, #tpu.memory_space<vmem>>, vector<1x1x2xf32>
    %158 = vector.shape_cast %157 : vector<1x1x2xf32> to vector<1x2xf32>
    %159 = vector.shape_cast %146 : vector<1x2xf32> to vector<1x1x2xf32>
    tpu.vector_store %arg9[%c0_120, %c0_121, %c0_122], %159 {strides = array<i32>} : memref<1x1x2xf32, #tpu.memory_space<vmem>>, vector<1x1x2xf32>,
    %c0_123 = arith.constant 0 : index
    %c0_124 = arith.constant 0 : index
    %c0_125 = arith.constant 0 : index
    %160 = vector.load %arg10[%c0_123, %c0_124, %c0_125] : memref<1x1x2xf32, #tpu.memory_space<vmem>>, vector<1x1x2xf32>
    %161 = vector.shape_cast %160 : vector<1x1x2xf32> to vector<1x2xf32>
    %162 = vector.shape_cast %156 : vector<1x2xf32> to vector<1x1x2xf32>
    tpu.vector_store %arg10[%c0_123, %c0_124, %c0_125], %162 {strides = array<i32>} : memref<1x1x2xf32, #tpu.memory_space<vmem>>, vector<1x1x2xf32>,
    return
  }
  func.func @transform_0(%arg0: i32) -> (i32, i32, i32, i32) {
    %c0_i32 = arith.constant 0 : i32
    %c0_i32_0 = arith.constant 0 : i32
    %c0_i32_1 = arith.constant 0 : i32
    %c0_i32_2 = arith.constant 0 : i32
    return %arg0, %c0_i32, %c0_i32_0, %c0_i32_1 : i32, i32, i32, i32
  }
  func.func @transform_1(%arg0: i32) -> (i32, i32, i32) {
    %c0_i32 = arith.constant 0 : i32
    %c0_i32_0 = arith.constant 0 : i32
    %c0_i32_1 = arith.constant 0 : i32
    %c0_i32_2 = arith.constant 0 : i32
    return %c0_i32, %c0_i32_0, %c0_i32_1 : i32, i32, i32
  }
  func.func @transform_2(%arg0: i32) -> (i32, i32) {
    %c0_i32 = arith.constant 0 : i32
    %c0_i32_0 = arith.constant 0 : i32
    %c0_i32_1 = arith.constant 0 : i32
    return %c0_i32, %c0_i32_0 : i32, i32
  }
  func.func @transform_3(%arg0: i32) -> (i32, i32, i32) {
    %c0_i32 = arith.constant 0 : i32
    %c0_i32_0 = arith.constant 0 : i32
    %c0_i32_1 = arith.constant 0 : i32
    %c0_i32_2 = arith.constant 0 : i32
    return %c0_i32, %c0_i32_0, %c0_i32_1 : i32, i32, i32
  }
  func.func @transform_4(%arg0: i32) -> (i32, i32) {
    %c0_i32 = arith.constant 0 : i32
    %c0_i32_0 = arith.constant 0 : i32
    %c0_i32_1 = arith.constant 0 : i32
    return %c0_i32, %c0_i32_0 : i32, i32
  }
  func.func @transform_5(%arg0: i32) -> (i32, i32) {
    %c0_i32 = arith.constant 0 : i32
    %c0_i32_0 = arith.constant 0 : i32
    %c0_i32_1 = arith.constant 0 : i32
    return %c0_i32, %c0_i32_0 : i32, i32
  }
  func.func @transform_6(%arg0: i32) -> (i32, i32) {
    %c0_i32 = arith.constant 0 : i32
    %c0_i32_0 = arith.constant 0 : i32
    %c0_i32_1 = arith.constant 0 : i32
    return %c0_i32, %c0_i32_0 : i32, i32
  }
  func.func @transform_7(%arg0: i32) -> (i32, i32, i32) {
    %c0_i32 = arith.constant 0 : i32
    %c0_i32_0 = arith.constant 0 : i32
    %c0_i32_1 = arith.constant 0 : i32
    return %arg0, %c0_i32, %c0_i32_0 : i32, i32, i32
  }
  func.func @transform_8(%arg0: i32) -> (i32, i32, i32) {
    %c0_i32 = arith.constant 0 : i32
    %c0_i32_0 = arith.constant 0 : i32
    %c0_i32_1 = arith.constant 0 : i32
    return %arg0, %c0_i32, %c0_i32_0 : i32, i32, i32
  }
  func.func @transform_9(%arg0: i32) -> (i32, i32, i32) {
    %c0_i32 = arith.constant 0 : i32
    %c0_i32_0 = arith.constant 0 : i32
    %c0_i32_1 = arith.constant 0 : i32
    return %arg0, %c0_i32, %c0_i32_0 : i32, i32, i32
  }
}

</mosaic_0001>

<bundles_post_ra>
// kernel: fuse_model_multistream_forward.1
= control target key start
LH: loop header
LB: loop body
LE: loop exit
PB: predicated region body
PF: predicated region fallthrough
CT: control target
= control target key end

     0   :  { %s8325_s0 = inlined_call_operand.vmem [shape: f32[2,18,18,2], index: 0, kind: input, shape index: {}]   ;;  %s8326_s1 = inlined_call_operand.vmem [shape: f32[9,2,128], index: 1, kind: input, shape index: {}]   ;;  %s8327_s2 = inlined_call_operand.vmem [shape: f32[1,128], index: 2, kind: input, shape index: {}]   ;;  %s8328_s3 = inlined_call_operand.vmem [shape: bf16[9,128,128], index: 3, kind: input, shape index: {}]   ;;  %s8329_s4 = inlined_call_operand.vmem [shape: f32[1,128], index: 4, kind: input, shape index: {}]   ;;  %s8330_s5 = inlined_call_operand.vmem [shape: f32[128,2], index: 5, kind: input, shape index: {}]   ;;  %s8331_s6 = inlined_call_operand.vmem [shape: f32[1,2], index: 6, kind: input, shape index: {}]   ;;  %s8332_s7 = inlined_call_operand.vmem [shape: f32[2,128,256], index: 7, kind: output, shape index: {0}]   ;;  %s8333_s8 = inlined_call_operand.hbm [shape: f32[2,1,2], index: 8, kind: output, shape index: {1}]   ;;  %s8334_s9 = inlined_call_operand.hbm [shape: f32[2,1,2], index: 9, kind: output, shape index: {2}]  }
   0x1   :  { %8400 = sst [smem:[#allocation65_spill]] %s8325_s0 }
   0x2   :  { %8401 = sst [smem:[#allocation66_spill]] %s8326_s1 }
   0x3   :  { %15 = vsyncpa [#allocation4], 0 }
   0x4   :  { %17 = vsyncpa [#allocation4 + $0x1], 0 }
   0x5   :  { %18 = vsyncpa [#allocation6], 0 }
   0x6   :  { %20 = vsyncpa [#allocation6 + $0x1], 0  ;;  %s5789_s30 = smov 0   ;;  %s5791_s10 = smov 0  }
   0x7   :  { %s5793_s11 = smov 0   ;;  %s5795_s12 = smov 0  }
   0x8 LB: > { %s5810_s13 = sadd.s32 4294967295, %s5735_s12   ;;  %s4754_s14 = sadd.s32 4294967294, %s5735_s12   ;;  %s5735_s12 = sphi %s5795_s12, %s8618_s12   ;;  %s5731_s11 = sphi %s5793_s11, %s8617_s11   ;;  %s5727_s10 = sphi %s5791_s10, %s8616_s10   ;;  %s5723_s30 = sphi %s5789_s30, %s8615_s30  }
   0x9   : > { %s5814_s15 = sadd.s32 1, %s5735_s12   ;;  %s211_s16 = sadd.s32 1, %s5731_s11 }
   0xa   : > { %s208_s17 = ssub.s32 %s5735_s12, %s5814_s15  ;;  %p221_p0 = scmp.ne.s32.totalorder %s5731_s11, %s5727_s10 }
   0xb   : > { %p209_p1 = scmp.eq.s32.totalorder %s208_s17, 0  ;;  %p222_p2 = scmp.eq.s32.totalorder %s5810_s13, 1 }
   0xc   : > { %p227_p3 = scmp.ne.s32.totalorder %s5727_s10, %s5723_s30  ;;  %p228_p4 = scmp.eq.s32.totalorder %s4754_s14, 1 }
   0xd   : > { %s5825_s18 = scalar_select %p209_p1, %s5731_s11, %s211_s16  }
   0xe   : > { %p5827_p5 = por %p222_p2, %p221_p0  ;;  %p5831_p6 = por %p228_p4, %p227_p3 }
   0xf   : > { %p4757_p7 = scmp.ge.s32.totalorder %s5735_s12, 1  ;;  %p298_p8 = scmp.lt.s32.totalorder %s5735_s12, 3 }
  0x11   : > { %p299_p9 = pnand %p4757_p7, %p298_p8 }
  0x13   : > { %302 = sbr.rel (%p299_p9) target bundleno = 1942 (0x796), region = 48 }
  0x18   : > { %s8404_s1 = sld [smem:[#allocation66_spill]]  ;;  %vm603_vm0 = vcmask 1041408   ;;  %p342_p10 = scmp.lt.s32.totalorder %s5810_s13, 1  ;;  %vm538_vm1 = vcmask 15360   ;;  %vm455_vm2 = vcmask 1046528   ;;  %vm900_vm3 = vcmask 1045504  }
  0x19   : > { %s8405_s0 = sld [smem:[#allocation65_spill]]  ;;  %s8203_s24 = sand.u32 1, %s5727_s10   ;;  %vm4581_vm4 = vcmask 8192  }
  0x1a   : > { %s5853_s29 = scalar_select %p342_p10, %s5810_s13, 1 }
  0x1b   : > { %s335_s26 = scalar_lea.vmem [#allocation3], %s8203_s24  ;;  %s4629_s21 = scalar_lea.hbm %s8333_s8, %s5810_s13 }
  0x1c   : > { %s5559_s17 = smul.u32 432, %s5853_s29  ;;  %s5484_s27 = sshll.u32 %s5853_s29, 8 }
  0x1d   : > { %s8239_s16 = scalar_lea.vmem %s8332_s7, %s5484_s27  ;;  %s4631_s22 = sshll.u32 %s335_s26, 4  ;;  %s4632_s22 = int_to_ptr.vmem [resolvable:$true] %s4631_s22 }
  0x1e   : > { %v406_v0 = vld [vmem:[%s8404_s1] sm:$0x3]  ;;  %v4761_v1 = vld [vmem:[%s8404_s1 + $0x2] sm:$0x3]  ;;  %v4896_v2 = vld [vmem:[%s8404_s1 + $0x8] sm:$0x3] }
  0x1f   : > { %5558 = vmatpush.msk.msra.mxu2 %vm603_vm0, %v406_v0  ;;  %4795 = vmatpush.msk.msra.mxu1 %vm603_vm0, %v406_v0  ;;  %v4828_v3 = vld [vmem:[%s8404_s1 + $0x4] sm:$0x3]  ;;  %v4862_v4 = vld [vmem:[%s8404_s1 + $0x6] sm:$0x3]  ;;  %s5867_s23 = scalar_lea.vmem %s8405_s0, %s5559_s17  ;;  %s4633_s25 = sshll.u32 %s4629_s21, 4  ;;  %s4634_s25 = int_to_ptr.hbm [resolvable:$true] %s4633_s25 }
  0x20   : > { %4762 = vmatpush.msk.msra.mxu0 %vm603_vm0, %v4761_v1  ;;  %5557 = vmatpush.msk.msra.mxu3 %vm603_vm0, %v4761_v1  ;;  %v5870_v5 = vld [vmem:[%s5867_s23 + $0xc8] sm:$0xff]  ;;  %v5873_v6 = vld [vmem:[%s5867_s23] sm:$0xff]  ;;  %v5883_v10 = vld [vmem:[%s5867_s23 + $0xd0] sm:$0x3]  ;;  %s5655_s27 = sshra.s32 %s4634_s25, 4  ;;  %s5661_s29 = scalar_lea.hbm %s8333_s8, 2  ;;  %s5656_s27 = int_to_ptr.hbm [resolvable:$true] %s5655_s27 }
  0x21   : > { %4829 = vmatpush.msk.msrb.mxu2 %vm603_vm0, %v4828_v3  ;;  %v5876_v7 = vld [vmem:[%s5867_s23 + $0x8] sm:$0xff]  ;;  %v456_v8 = vrot.slane %v5873_v6, 1  ;;  %v8335_v11 = vrot.slane %v5870_v5, 1  ;;  %4796 = vmatmul.msk.f32.vlgmr.msra.gmra.mxu1 %vm538_vm1, %v5873_v6  ;;  %v499_v12 = vrot.slane %v5883_v10, 1  ;;  %v5890_v13 = vld [vmem:[%s5867_s23 + $0x10] sm:$0x3]  ;;  %p5662_p0 = scmp.lt.s32.totalorder %s5656_s27, %s8333_s8 }
  0x22   : > { %4897 = vmatpush.msk.msrb.mxu0 %vm603_vm0, %v4896_v2  ;;  %4863 = vmatpush.msk.msrb.mxu3 %vm603_vm0, %v4862_v4  ;;  %v457_v9 = vrot.slane %v5876_v7, 1  ;;  %v5894_v15 = vld [vmem:[%s5867_s23 + $0xd8] sm:$0xff]  ;;  %v5897_v16 = vld [vmem:[%s5867_s23 + $0xe0] sm:$0xff]  ;;  %v459_v18 = vrot.slane %v5890_v13, 1  ;;  %v5925_v25 = vld [vmem:[%s5867_s23 + $0xe8] sm:$0x3] }
  0x23   : > { %4813 = vmatmul.msk.f32.vlgmr.msra.gmra.mxu2 %vm538_vm1, %v5870_v5  ;;  %v5903_v17 = vsel %vm455_vm2, %v8335_v11, %v499_v12  ;;  %v501_v19 = vrot.slane %v5894_v15, 1  ;;  %v502_v20 = vrot.slane %v5897_v16, 1  ;;  %v5919_v23 = vld [vmem:[%s5867_s23 + $0x18] sm:$0xff]  ;;  %v5922_v24 = vld [vmem:[%s5867_s23 + $0x20] sm:$0xff]  ;;  %v504_v28 = vrot.slane %v5925_v25, 1  ;;  %v5947_v32 = vld [vmem:[%s5867_s23 + $0xf0] sm:$0xff] }
  0x24   : > { %v458_v14 = vsel %vm455_vm2, %v456_v8, %v457_v9  ;;  %4780 = vmatmul.msk.f32.vlgmr.msra.gmra.mxu3 %vm538_vm1, %v5903_v17  ;;  %v460_v21 = vsel %vm455_vm2, %v457_v9, %v459_v18  ;;  %v461_v26 = vrot.slane %v5919_v23, 1  ;;  %v462_v27 = vrot.slane %v5922_v24, 1  ;;  %v5944_v31 = vld [vmem:[%s5867_s23 + $0x28] sm:$0x3]  ;;  %v5950_v33 = vld [vmem:[%s5867_s23 + $0xf8] sm:$0xff]  ;;  %v5970_v39 = vld [vmem:[%s5867_s23 + $0x30] sm:$0xff] }
  0x25   : > { %4763 = vmatmul.msk.f32.vlgmr.msra.gmra.mxu0 %vm538_vm1, %v458_v14  ;;  %v5916_v22 = vsel %vm455_vm2, %v501_v19, %v502_v20  ;;  %v5941_v30 = vsel %vm455_vm2, %v502_v20, %v504_v28  ;;  %v464_v34 = vrot.slane %v5944_v31, 1  ;;  %v506_v35 = vrot.slane %v5947_v32, 1  ;;  %v5973_v40 = vld [vmem:[%s5867_s23 + $0x38] sm:$0xff]  ;;  %v5976_v41 = vld [vmem:[%s5867_s23 + $0x100] sm:$0x3]  ;;  %v5999_v48 = vld [vmem:[%s5867_s23 + $0x108] sm:$0xff] }
  0x26   : > { %v5936_v29 = vsel %vm455_vm2, %v461_v26, %v462_v27  ;;  %v507_v36 = vrot.slane %v5950_v33, 1  ;;  %v466_v42 = vrot.slane %v5970_v39, 1  ;;  %v467_v43 = vrot.slane %v5973_v40, 1  ;;  %v5996_v47 = vld [vmem:[%s5867_s23 + $0x40] sm:$0x3]  ;;  %v6002_v49 = vld [vmem:[%s5867_s23 + $0x110] sm:$0xff] }
  0x27   : > { %v5962_v37 = vsel %vm455_vm2, %v462_v27, %v464_v34  ;;  %v509_v44 = vrot.slane %v5976_v41, 1  ;;  %v469_v50 = vrot.slane %v5996_v47, 1  ;;  %v511_v51 = vrot.slane %v5999_v48, 1  ;;  %v6022_v55 = vld [vmem:[%s5867_s23 + $0x48] sm:$0xff]  ;;  %v6025_v56 = vld [vmem:[%s5867_s23 + $0x50] sm:$0xff]  ;;  %v6051_v0 = vld [vmem:[%s5867_s23 + $0x120] sm:$0xff] }
  0x28   : > { %v5967_v38 = vsel %vm455_vm2, %v506_v35, %v507_v36  ;;  %v5988_v45 = vsel %vm455_vm2, %v466_v42, %v467_v43  ;;  %v512_v52 = vrot.slane %v6002_v49, 1  ;;  %v6028_v57 = vld [vmem:[%s5867_s23 + $0x118] sm:$0x3]  ;;  %v471_v58 = vrot.slane %v6022_v55, 1  ;;  %8409 = vst [vmem:[#allocation12_spill] sm:$0xff] %v6051_v0  ;;  %v6054_v1 = vld [vmem:[%s5867_s23 + $0x128] sm:$0xff] }
  0x29   : > { %4797 = vmatmul.msk.f32.gmra.mxu1 %vm538_vm1, %v5876_v7  ;;  %v5993_v46 = vsel %vm455_vm2, %v507_v36, %v509_v44  ;;  %v6014_v53 = vsel %vm455_vm2, %v467_v43, %v469_v50  ;;  %v472_v59 = vrot.slane %v6025_v56, 1  ;;  %v514_v60 = vrot.slane %v6028_v57, 1  ;;  %v6048_v63 = vld [vmem:[%s5867_s23 + $0x58] sm:$0x3]  ;;  %8410 = vst [vmem:[#allocation13_spill] sm:$0xff] %v6054_v1  ;;  %v6074_v12 = vld [vmem:[%s5867_s23 + $0x60] sm:$0xff] }
  0x2a   : > { %v6019_v54 = vsel %vm455_vm2, %v511_v51, %v512_v52  ;;  %v474_v2 = vrot.slane %v6048_v63, 1  ;;  %v516_v3 = vrot.slane %v6051_v0, 1  ;;  %v517_v4 = vrot.slane %v6054_v1, 1  ;;  %v6077_v14 = vld [vmem:[%s5867_s23 + $0x68] sm:$0xff]  ;;  %v6080_v18 = vld [vmem:[%s5867_s23 + $0x130] sm:$0x3] }
  0x2b   : > { %4814 = vmatmul.msk.f32.gmra.mxu2 %vm538_vm1, %v5894_v15  ;;  %8406 = vst [vmem:[#allocation9_spill] sm:$0xff] %v6019_v54  ;;  %v6040_v61 = vsel %vm455_vm2, %v471_v58, %v472_v59  ;;  %v6045_v62 = vsel %vm455_vm2, %v512_v52, %v514_v60  ;;  %v476_v19 = vrot.slane %v6074_v12, 1  ;;  %v477_v20 = vrot.slane %v6077_v14, 1  ;;  %v6100_v28 = vld [vmem:[%s5867_s23 + $0x70] sm:$0x3]  ;;  %v6103_v34 = vld [vmem:[%s5867_s23 + $0x138] sm:$0xff] }
  0x2c   : > { %4781 = vmatmul.msk.f32.gmra.mxu3 %vm538_vm1, %v5916_v22  ;;  %8407 = vst [vmem:[#allocation10_spill] sm:$0xff] %v6040_v61  ;;  %v6066_v8 = vsel %vm455_vm2, %v472_v59, %v474_v2  ;;  %v6071_v9 = vsel %vm455_vm2, %v516_v3, %v517_v4  ;;  %v6106_v35 = vld [vmem:[%s5867_s23 + $0x140] sm:$0xff]  ;;  %v479_v36 = vrot.slane %v6100_v28, 1  ;;  %v521_v42 = vrot.slane %v6103_v34, 1  ;;  %v6126_v51 = vld [vmem:[%s5867_s23 + $0x78] sm:$0xff]  ;;  %v6178_v11 = vld [vmem:[%s5867_s23 + $0x90] sm:$0xff] }
  0x2d   : > { %4764 = vmatmul.msk.f32.gmra.mxu0 %vm538_vm1, %v460_v21  ;;  %8408 = vst [vmem:[#allocation11_spill] sm:$0xff] %v6045_v62  ;;  %v519_v21 = vrot.slane %v6080_v18, 1  ;;  %v6092_v26 = vsel %vm455_vm2, %v476_v19, %v477_v20  ;;  %v522_v43 = vrot.slane %v6106_v35, 1  ;;  %v6129_v52 = vld [vmem:[%s5867_s23 + $0x80] sm:$0xff]  ;;  %v6132_v58 = vld [vmem:[%s5867_s23 + $0x148] sm:$0x3] }
  0x2e   : > { %8411 = vst [vmem:[#allocation14_spill] sm:$0xff] %v6071_v9  ;;  %v6118_v44 = vsel %vm455_vm2, %v477_v20, %v479_v36  ;;  %v481_v59 = vrot.slane %v6126_v51, 1  ;;  %v482_v60 = vrot.slane %v6129_v52, 1  ;;  %v524_v2 = vrot.slane %v6132_v58, 1  ;;  %v6152_v19 = vld [vmem:[%s5867_s23 + $0x88] sm:$0x3] }
  0x2f   : > { %8412 = vst [vmem:[#allocation15_spill] sm:$0xff] %v6080_v18  ;;  %v6097_v27 = vsel %vm455_vm2, %v517_v4, %v519_v21  ;;  %v6123_v50 = vsel %vm455_vm2, %v521_v42, %v522_v43  ;;  %v6155_v20 = vld [vmem:[%s5867_s23 + $0x150] sm:$0xff]  ;;  %v6158_v21 = vld [vmem:[%s5867_s23 + $0x158] sm:$0xff]  ;;  %v484_v36 = vrot.slane %v6152_v19, 1  ;;  %s5657_s28 = scalar_lea.hbm %s5656_s27, 1 }
  0x30   : > { %8413 = vst [vmem:[#allocation16_spill] sm:$0xff] %v6092_v26  ;;  %v6144_v3 = vsel %vm455_vm2, %v481_v59, %v482_v60  ;;  %v6149_v4 = vsel %vm455_vm2, %v522_v43, %v524_v2  ;;  %v526_v42 = vrot.slane %v6155_v20, 1  ;;  %v527_v59 = vrot.slane %v6158_v21, 1  ;;  %v6247_v18 = vld [vmem:[%s5867_s23 + $0x178] sm:$0x3]  ;;  %p5658_p11 = scmp.ne.s32.totalorder %s5656_s27, %s5657_s28  ;;  %p5663_p1 = scmp.lt.s32.totalorder %s5661_s29, %s5657_s28 }
  0x31   : > { %4798 = vmatmul.msk.f32.gmra.mxu1 %vm538_vm1, %v5919_v23  ;;  %8414 = vst [vmem:[#allocation17_spill] sm:$0xff] %v6097_v27  ;;  %v6170_v43 = vsel %vm455_vm2, %v482_v60, %v484_v36  ;;  %v486_v60 = vrot.slane %v6178_v11, 1 }
  0x32   : > { %8415 = vst [vmem:[#allocation18_spill] sm:$0xff] %v6103_v34  ;;  %v6175_v2 = vsel %vm455_vm2, %v526_v42, %v527_v59  ;;  %p5659_p12 = pnand %p5658_p11, %p5827_p5  ;;  %p5664_p2 = por %p5663_p1, %p5662_p0 }
  0x33   : > { %4815 = vmatmul.msk.f32.gmra.mxu2 %vm538_vm1, %v5897_v16  ;;  %8416 = vst [vmem:[#allocation19_spill] sm:$0xff] %v6106_v35 }
  0x34   : > { %4782 = vmatmul.msk.f32.gmra.mxu3 %vm538_vm1, %v5941_v30  ;;  %8417 = vst [vmem:[#allocation20_spill] sm:$0xff] %v6123_v50  ;;  %p5660_p13 = pneg %p5659_p12 }
  0x35   : > { %4765 = vmatmul.msk.f32.gmra.mxu0 %vm538_vm1, %v5936_v29  ;;  %8418 = vst [vmem:[#allocation21_spill] sm:$0xff] %v6132_v58 }
  0x36   : > { %8419 = vst [vmem:[#allocation22_spill] sm:$0xff] %v6144_v3  ;;  %p5665_p3 = pnand %p5664_p2, %p5660_p13 }
  0x37   : > { %8420 = vst [vmem:[#allocation23_spill] sm:$0xff] %v6149_v4 }
  0x38   : > { %8421 = vst [vmem:[#allocation24_spill] sm:$0xff] %v6155_v20 }
  0x39   : > { %4799 = vmatmul.msk.f32.gmra.mxu1 %vm538_vm1, %v5922_v24  ;;  %8422 = vst [vmem:[#allocation25_spill] sm:$0xff] %v6158_v21 }
  0x3a   : > { %8423 = vst [vmem:[#allocation26_spill] sm:$0xff] %v6175_v2 }
  0x3b   : > { %4816 = vmatmul.msk.f32.gmra.mxu2 %vm538_vm1, %v5947_v32  ;;  %8430 = vst [vmem:[#allocation33_spill] sm:$0xff] %v6247_v18 }
  0x3c   : > { %4783 = vmatmul.msk.f32.gmra.mxu3 %vm538_vm1, %v5967_v38 }
  0x3d   : > { %4766 = vmatmul.msk.f32.gmra.mxu0 %vm538_vm1, %v5962_v37 }
  0x41   : > { %4800 = vmatmul.msk.f32.gmra.mxu1 %vm538_vm1, %v5970_v39 }
  0x43   : > { %4817 = vmatmul.msk.f32.gmra.mxu2 %vm538_vm1, %v5950_v33 }
  0x44   : > { %4784 = vmatmul.msk.f32.gmra.mxu3 %vm538_vm1, %v5993_v46 }
  0x45   : > { %4767 = vmatmul.msk.f32.gmra.mxu0 %vm538_vm1, %v5988_v45 }
  0x49   : > { %4801 = vmatmul.msk.f32.gmra.mxu1 %vm538_vm1, %v5973_v40 }
  0x4b   : > { %4818 = vmatmul.msk.f32.gmra.mxu2 %vm538_vm1, %v5999_v48 }
  0x4c   : > { %4785 = vmatmul.msk.f32.gmra.mxu3 %vm538_vm1, %v6019_v54 }
  0x4d   : > { %4768 = vmatmul.msk.f32.gmra.mxu0 %vm538_vm1, %v6014_v53 }
  0x51   : > { %4802 = vmatmul.msk.f32.gmra.mxu1 %vm538_vm1, %v6022_v55 }
  0x53   : > { %4819 = vmatmul.msk.f32.gmra.mxu2 %vm538_vm1, %v6002_v49 }
  0x54   : > { %4786 = vmatmul.msk.f32.gmra.mxu3 %vm538_vm1, %v6045_v62  ;;  %v901_v62 = vrot.slane %v5873_v6, 2  ;;  %v904_v6 = vrot.slane %v5890_v13, 2  ;;  %v8434_v13 = vrot.slane %v5870_v5, 1 }
  0x55   : > { %4769 = vmatmul.msk.f32.gmra.mxu0 %vm538_vm1, %v6040_v61 }
  0x59   : > { %4803 = vmatmul.msk.f32.gmra.mxu1 %vm538_vm1, %v6025_v56 }
  0x5b   : > { %4820 = vmatmul.msk.f32.gmra.mxu2 %vm538_vm1, %v6051_v0 }
  0x5c   : > { %4787 = vmatmul.msk.f32.gmra.mxu3 %vm538_vm1, %v6071_v9  ;;  %v6241_v9 = vld [vmem:[%s5867_s23 + $0xb0] sm:$0xff] }
  0x5d   : > { %4770 = vmatmul.msk.f32.gmra.mxu0 %vm538_vm1, %v6066_v8 }
  0x61   : > { %4804 = vmatmul.msk.f32.gmra.mxu1 %vm538_vm1, %v6074_v12 }
  0x63   : > { %4821 = vmatmul.msk.f32.gmra.mxu2 %vm538_vm1, %v6054_v1  ;;  %v902_v1 = vrot.slane %v5876_v7, 2  ;;  %v6290_v7 = vld [vmem:[%s5867_s23 + $0xc0] sm:$0xff] }
  0x64   : > { %4788 = vmatmul.msk.f32.gmra.mxu3 %vm538_vm1, %v6097_v27  ;;  %v6204_v27 = vld [vmem:[%s5867_s23 + $0xa0] sm:$0x3] }
  0x65   : > { %4771 = vmatmul.msk.f32.gmra.mxu0 %vm538_vm1, %v6092_v26 }
  0x69   : > { %4805 = vmatmul.msk.f32.gmra.mxu1 %vm538_vm1, %v6077_v14 }
  0x6b   : > { %4822 = vmatmul.msk.f32.gmra.mxu2 %vm538_vm1, %v6103_v34  ;;  %v6238_v34 = vld [vmem:[%s5867_s23 + $0xa8] sm:$0xff] }
  0x6c   : > { %4789 = vmatmul.msk.f32.gmra.mxu3 %vm538_vm1, %v6123_v50  ;;  %v6184_v50 = vld [vmem:[%s5867_s23 + $0x160] sm:$0x3] }
  0x6d   : > { %4772 = vmatmul.msk.f32.gmra.mxu0 %vm538_vm1, %v6118_v44  ;;  %8424 = vst [vmem:[#allocation27_spill] sm:$0xff] %v6184_v50  ;;  %v529_v42 = vrot.slane %v6184_v50, 1  ;;  %v6210_v50 = vld [vmem:[%s5867_s23 + $0x168] sm:$0xff] }
  0x6e   : > { %8427 = vst [vmem:[#allocation30_spill] sm:$0xff] %v6210_v50 }
  0x6f   : > { %v6201_v58 = vsel %vm455_vm2, %v527_v59, %v529_v42  ;;  %v489_v59 = vrot.slane %v6204_v27, 1  ;;  %v531_v42 = vrot.slane %v6210_v50, 1 }
  0x70   : > { %8426 = vst [vmem:[#allocation29_spill] sm:$0xff] %v6201_v58 }
  0x71   : > { %4806 = vmatmul.msk.f32.gmra.mxu1 %vm538_vm1, %v6126_v51 }
  0x73   : > { %4823 = vmatmul.msk.f32.gmra.mxu2 %vm538_vm1, %v6106_v35 }
  0x74   : > { %4790 = vmatmul.msk.f32.gmra.mxu3 %vm538_vm1, %v6149_v4  ;;  %v6181_v4 = vld [vmem:[%s5867_s23 + $0x98] sm:$0xff] }
  0x75   : > { %4773 = vmatmul.msk.f32.gmra.mxu0 %vm538_vm1, %v6144_v3  ;;  %v487_v36 = vrot.slane %v6181_v4, 1 }
  0x79   : > { %4807 = vmatmul.msk.f32.gmra.mxu1 %vm538_vm1, %v6129_v52 }
  0x7b   : > { %4824 = vmatmul.msk.f32.gmra.mxu2 %vm538_vm1, %v6155_v20  ;;  %v6196_v20 = vsel %vm455_vm2, %v486_v60, %v487_v36  ;;  %v4998_v60 = vld [vmem:[%s8404_s1 + $0xe] sm:$0x3] }
  0x7c   : > { %4791 = vmatmul.msk.f32.gmra.mxu3 %vm538_vm1, %v6175_v2  ;;  %8425 = vst [vmem:[#allocation28_spill] sm:$0xff] %v6196_v20  ;;  %v4964_v2 = vld [vmem:[%s8404_s1 + $0xc] sm:$0x3] }
  0x7d   : > { %4774 = vmatmul.msk.f32.gmra.mxu0 %vm538_vm1, %v6170_v43  ;;  %4965 = vmatpush.msk.msra.mxu2 %vm603_vm0, %v4964_v2  ;;  %v6230_v2 = vsel %vm455_vm2, %v487_v36, %v489_v59  ;;  %v491_v36 = vrot.slane %v6238_v34, 1  ;;  %v492_v59 = vrot.slane %v6241_v9, 1 }
  0x7e   : > { %4999 = vmatpush.msk.msra.mxu3 %vm603_vm0, %v4998_v60  ;;  %v4930_v60 = vld [vmem:[%s8404_s1 + $0xa] sm:$0x3] }
  0x7f   : > { %4931 = vmatpush.msk.msrb.mxu1 %vm603_vm0, %v4930_v60  ;;  %v6264_v60 = vsel %vm455_vm2, %v491_v36, %v492_v59 }
  0x80   : > { %8431 = vst [vmem:[#allocation34_spill] sm:$0xff] %v6264_v60 }
  0x81   : > { %4808 = vmatmul.msk.f32.gmra.mxu1 %vm538_vm1, %v6178_v11 }
  0x83   : > { %4825 = vmatmul.msk.f32.gmra.mxu2 %vm538_vm1, %v6158_v21  ;;  %v6213_v21 = vld [vmem:[%s5867_s23 + $0x170] sm:$0xff] }
  0x84   : > { %8428 = vst [vmem:[#allocation31_spill] sm:$0xff] %v6213_v21  ;;  %4792 = vmatmul.msk.f32.gmra.mxu3 %vm538_vm1, %v6201_v58  ;;  %v532_v35 = vrot.slane %v6213_v21, 1 }
  0x85   : > { %4775 = vmatmul.msk.f32.gmra.mxu0 %vm538_vm1, %v6196_v20 }
  0x86   : > { %v6235_v58 = vsel %vm455_vm2, %v531_v42, %v532_v35  ;;  %v5032_v42 = vld [vmem:[%s8404_s1 + $0x10] sm:$0x3] }
  0x87   : > { %8429 = vst [vmem:[#allocation32_spill] sm:$0xff] %v6235_v58  ;;  %5033 = vmatpush.msk.msra.mxu0 %vm603_vm0, %v5032_v42  ;;  %v903_v42 = vsel %vm900_vm3, %v901_v62, %v902_v1  ;;  %v496_v62 = vrot.slane %v6290_v7, 1 }
  0x89   : > { %4809 = vmatmul.msk.f32.gmra.mxu1 %vm538_vm1, %v6181_v4 }
  0x8b   : > { %4826 = vmatmul.msk.f32.gmra.mxu2 %vm538_vm1, %v6210_v50  ;;  %v534_v50 = vrot.slane %v6247_v18, 1  ;;  %v6274_v18 = vld [vmem:[%s5867_s23 + $0xb8] sm:$0x3] }
  0x8c   : > { %4793 = vmatmul.msk.f32.gmra.mxu3 %vm538_vm1, %v6235_v58  ;;  %v494_v36 = vrot.slane %v6274_v18, 1 }
  0x8d   : > { %4776 = vmatmul.msk.f32.gmra.mxu0 %vm538_vm1, %v6230_v2  ;;  %v6269_v58 = vsel %vm455_vm2, %v532_v35, %v534_v50 }
  0x8e   : > { %8432 = vst [vmem:[#allocation35_spill] sm:$0xff] %v6269_v58  ;;  %v6284_v35 = vsel %vm455_vm2, %v492_v59, %v494_v36  ;;  %v905_v59 = vsel %vm900_vm3, %v902_v1, %v904_v6 }
  0x8f   : > { %8433 = vst [vmem:[#allocation36_spill] sm:$0xff] %v6284_v35 }
  0x91   : > { %4810 = vmatmul.msk.f32.gmra.mxu1 %vm538_vm1, %v6238_v34 }
  0x93   : > { %4827 = vmatmul.msk.f32.gmra.mxu2 %vm538_vm1, %v6213_v21  ;;  %v907_v21 = vrot.slane %v5922_v24, 2 }
  0x94   : > { %4794 = vmatmul.msk.f32.gmra.mxu3 %vm538_vm1, %v6269_v58  ;;  %v906_v58 = vrot.slane %v5919_v23, 2 }
  0x95   : > { %4777 = vmatmul.msk.f32.gmra.mxu0 %vm538_vm1, %v6264_v60 }
  0x99   : > { %4811 = vmatmul.msk.f32.gmra.mxu1 %vm538_vm1, %v6241_v9 }
  0x9b   : > { %4830 = vmatmul.msk.f32.vlgmr.msrb.gmra.mxu2 %vm538_vm1, %v903_v42  ;;  %v6306_v42 = vsel %vm455_vm2, %v496_v62, %v8434_v13 }
  0x9c   : > { %4864 = vmatmul.msk.f32.vlgmr.msrb.gmra.mxu3 %vm538_vm1, %v5919_v23  ;;  %v909_v23 = vrot.slane %v5944_v31, 2  ;;  %v911_v31 = vrot.slane %v5970_v39, 2 }
  0x9d   : > { %4778 = vmatmul.msk.f32.gmra.mxu0 %vm538_vm1, %v6284_v35 }
  0x9e   : > { %v6297_v50 = vpop.f32.mrf.mxu1 }
  0xa1   : > { %4812 = vmatmul.msk.f32.gmra.mxu1 %vm538_vm1, %v6290_v7 }
  0xa2   : > { %v6300_v36 = vpop.f32.mrf.mxu0 }
  0xa3   : > { %4831 = vmatmul.msk.f32.gmra.mxu2 %vm538_vm1, %v905_v59  ;;  %v908_v59 = vsel %vm900_vm3, %v906_v58, %v907_v21  ;;  %v910_v58 = vsel %vm900_vm3, %v907_v21, %v909_v23 }
  0xa4   : > { %4865 = vmatmul.msk.f32.gmra.mxu3 %vm538_vm1, %v5922_v24 }
  0xa5   : > { %4779 = vmatmul.msk.f32.gmra.mxu0 %vm538_vm1, %v6306_v42 }
  0xa6   : > { %v855_v1 = vpop.f32.mrf.mxu2  ;;  %v6316_v6 = vpop.f32.mrf.mxu1 }
  0xa7   : > { %v675_v62 = vpop.f32.mrf.mxu3 }
  0xa8   : > { %v6319_v13 = vadd.f32 %v855_v1, %v675_v62 }
  0xa9   : > { %4932 = vmatmul.msk.f32.vlgmr.msrb.gmra.mxu1 %vm538_vm1, %v908_v59 }
  0xaa   : > { %8435 = vst [vmem:[#allocation37_spill] sm:$0xff] %v6319_v13  ;;  %v6321_v0 = vpop.f32.mrf.mxu0 }
  0xab   : > { %4832 = vmatmul.msk.f32.gmra.mxu2 %vm538_vm1, %v908_v59 }
  0xac   : > { %4866 = vmatmul.msk.f32.gmra.mxu3 %vm538_vm1, %v5970_v39 }
  0xad   : > { %4898 = vmatmul.msk.f32.vlgmr.msrb.gmra.mxu0 %vm538_vm1, %v5936_v29  ;;  %v912_v29 = vrot.slane %v5973_v40, 2 }
  0xae   : > { %v858_v54 = vpop.f32.mrf.mxu2  ;;  %v6330_v24 = vpop.f32.mrf.mxu1 }
  0xaf   : > { %v678_v1 = vpop.f32.mrf.mxu3 }
  0xb0   : > { %v6333_v62 = vadd.f32 %v858_v54, %v678_v1  ;;  %v6348_v54 = vsel %vm900_vm3, %v911_v31, %v912_v29 }
  0xb1   : > { %4933 = vmatmul.msk.f32.gmra.mxu1 %vm538_vm1, %v910_v58  ;;  %8437 = vst [vmem:[#allocation39_spill] sm:$0xff] %v6348_v54 }
  0xb2   : > { %8436 = vst [vmem:[#allocation38_spill] sm:$0xff] %v6333_v62  ;;  %v6335_v13 = vpop.f32.mrf.mxu0  ;;  %v917_v62 = vrot.slane %v6025_v56, 2 }
  0xb3   : > { %4833 = vmatmul.msk.f32.gmra.mxu2 %vm538_vm1, %v910_v58 }
  0xb4   : > { %4867 = vmatmul.msk.f32.gmra.mxu3 %vm538_vm1, %v5973_v40 }
  0xb5   : > { %4899 = vmatmul.msk.f32.gmra.mxu0 %vm538_vm1, %v5962_v37  ;;  %v914_v37 = vrot.slane %v5996_v47, 2  ;;  %v916_v47 = vrot.slane %v6022_v55, 2 }
  0xb6   : > { %v861_v59 = vpop.f32.mrf.mxu2  ;;  %v6345_v21 = vpop.f32.mrf.mxu1 }
  0xb7   : > { %v681_v23 = vpop.f32.mrf.mxu3  ;;  %v6366_v31 = vsel %vm900_vm3, %v912_v29, %v914_v37  ;;  %v6385_v37 = vsel %vm900_vm3, %v916_v47, %v917_v62 }
  0xb8   : > { %v6350_v1 = vadd.f32 %v861_v59, %v681_v23  ;;  %8439 = vst [vmem:[#allocation41_spill] sm:$0xff] %v6366_v31 }
  0xb9   : > { %4934 = vmatmul.msk.f32.gmra.mxu1 %vm538_vm1, %v6348_v54  ;;  %8441 = vst [vmem:[#allocation43_spill] sm:$0xff] %v6385_v37 }
  0xba   : > { %8438 = vst [vmem:[#allocation40_spill] sm:$0xff] %v6350_v1  ;;  %v6352_v58 = vpop.f32.mrf.mxu0 }
  0xbb   : > { %4834 = vmatmul.msk.f32.gmra.mxu2 %vm538_vm1, %v6348_v54 }
  0xbc   : > { %4868 = vmatmul.msk.f32.gmra.mxu3 %vm538_vm1, %v6022_v55  ;;  %v919_v55 = vrot.slane %v6048_v63, 2  ;;  %v921_v63 = vrot.slane %v6074_v12, 2 }
  0xbd   : > { %4900 = vmatmul.msk.f32.gmra.mxu0 %vm538_vm1, %v5988_v45 }
  0xbe   : > { %v864_v39 = vpop.f32.mrf.mxu2  ;;  %v6363_v40 = vpop.f32.mrf.mxu1 }
  0xbf   : > { %v684_v59 = vpop.f32.mrf.mxu3 }
  0xc0   : > { %v6368_v23 = vadd.f32 %v864_v39, %v684_v59 }
  0xc1   : > { %4935 = vmatmul.msk.f32.gmra.mxu1 %vm538_vm1, %v6366_v31 }
  0xc2   : > { %8440 = vst [vmem:[#allocation42_spill] sm:$0xff] %v6368_v23  ;;  %v6370_v1 = vpop.f32.mrf.mxu0 }
  0xc3   : > { %4835 = vmatmul.msk.f32.gmra.mxu2 %vm538_vm1, %v6366_v31 }
  0xc4   : > { %4869 = vmatmul.msk.f32.gmra.mxu3 %vm538_vm1, %v6025_v56 }
  0xc5   : > { %4901 = vmatmul.msk.f32.gmra.mxu0 %vm538_vm1, %v6014_v53 }
  0xc6   : > { %v867_v54 = vpop.f32.mrf.mxu2  ;;  %v6382_v29 = vpop.f32.mrf.mxu1 }
  0xc7   : > { %v687_v39 = vpop.f32.mrf.mxu3 }
  0xc8   : > { %v6387_v59 = vadd.f32 %v867_v54, %v687_v39  ;;  %v6403_v54 = vsel %vm900_vm3, %v917_v62, %v919_v55 }
  0xc9   : > { %4936 = vmatmul.msk.f32.gmra.mxu1 %vm538_vm1, %v6385_v37  ;;  %8443 = vst [vmem:[#allocation45_spill] sm:$0xff] %v6403_v54 }
  0xca   : > { %8442 = vst [vmem:[#allocation44_spill] sm:$0xff] %v6387_v59  ;;  %v6389_v23 = vpop.f32.mrf.mxu0 }
  0xcb   : > { %4836 = vmatmul.msk.f32.gmra.mxu2 %vm538_vm1, %v6385_v37  ;;  %v922_v37 = vrot.slane %v6077_v14, 2 }
  0xcc   : > { %4870 = vmatmul.msk.f32.gmra.mxu3 %vm538_vm1, %v6074_v12  ;;  %v924_v12 = vrot.slane %v6100_v28, 2  ;;  %v926_v28 = vrot.slane %v6126_v51, 2 }
  0xcd   : > { %4902 = vmatmul.msk.f32.gmra.mxu0 %vm538_vm1, %v6040_v61 }
  0xce   : > { %v870_v31 = vpop.f32.mrf.mxu2  ;;  %v6400_v56 = vpop.f32.mrf.mxu1 }
  0xcf   : > { %v690_v47 = vpop.f32.mrf.mxu3 }
  0xd0   : > { %v6405_v39 = vadd.f32 %v870_v31, %v690_v47  ;;  %v6422_v31 = vsel %vm900_vm3, %v921_v63, %v922_v37 }
  0xd1   : > { %4937 = vmatmul.msk.f32.gmra.mxu1 %vm538_vm1, %v6403_v54  ;;  %8445 = vst [vmem:[#allocation47_spill] sm:$0xff] %v6422_v31 }
  0xd2   : > { %8444 = vst [vmem:[#allocation46_spill] sm:$0xff] %v6405_v39  ;;  %v6407_v59 = vpop.f32.mrf.mxu0 }
  0xd3   : > { %4837 = vmatmul.msk.f32.gmra.mxu2 %vm538_vm1, %v6403_v54 }
  0xd4   : > { %4871 = vmatmul.msk.f32.gmra.mxu3 %vm538_vm1, %v6077_v14 }
  0xd5   : > { %4903 = vmatmul.msk.f32.gmra.mxu0 %vm538_vm1, %v6066_v8 }
  0xd6   : > { %v873_v61 = vpop.f32.mrf.mxu2  ;;  %v6419_v62 = vpop.f32.mrf.mxu1 }
  0xd7   : > { %v693_v55 = vpop.f32.mrf.mxu3 }
  0xd8   : > { %v6424_v47 = vadd.f32 %v873_v61, %v693_v55  ;;  %v6440_v61 = vsel %vm900_vm3, %v922_v37, %v924_v12 }
  0xd9   : > { %4938 = vmatmul.msk.f32.gmra.mxu1 %vm538_vm1, %v6422_v31  ;;  %8447 = vst [vmem:[#allocation49_spill] sm:$0xff] %v6440_v61 }
  0xda   : > { %8446 = vst [vmem:[#allocation48_spill] sm:$0xff] %v6424_v47  ;;  %v6426_v39 = vpop.f32.mrf.mxu0 }
  0xdb   : > { %4838 = vmatmul.msk.f32.gmra.mxu2 %vm538_vm1, %v6422_v31  ;;  %v927_v31 = vrot.slane %v6129_v52, 2 }
  0xdc   : > { %4872 = vmatmul.msk.f32.gmra.mxu3 %vm538_vm1, %v6126_v51  ;;  %v929_v51 = vrot.slane %v6152_v19, 2  ;;  %v931_v19 = vrot.slane %v6178_v11, 2 }
  0xdd   : > { %4904 = vmatmul.msk.f32.gmra.mxu0 %vm538_vm1, %v6092_v26 }
  0xde   : > { %v876_v54 = vpop.f32.mrf.mxu2  ;;  %v6437_v14 = vpop.f32.mrf.mxu1 }
  0xdf   : > { %v696_v63 = vpop.f32.mrf.mxu3 }
  0xe0   : > { %v6442_v55 = vadd.f32 %v876_v54, %v696_v63  ;;  %v6459_v54 = vsel %vm900_vm3, %v926_v28, %v927_v31 }
  0xe1   : > { %4939 = vmatmul.msk.f32.gmra.mxu1 %vm538_vm1, %v6440_v61  ;;  %8449 = vst [vmem:[#allocation51_spill] sm:$0xff] %v6459_v54 }
  0xe2   : > { %8448 = vst [vmem:[#allocation50_spill] sm:$0xff] %v6442_v55  ;;  %v6444_v47 = vpop.f32.mrf.mxu0 }
  0xe3   : > { %4839 = vmatmul.msk.f32.gmra.mxu2 %vm538_vm1, %v6440_v61 }
  0xe4   : > { %4873 = vmatmul.msk.f32.gmra.mxu3 %vm538_vm1, %v6129_v52 }
  0xe5   : > { %4905 = vmatmul.msk.f32.gmra.mxu0 %vm538_vm1, %v6118_v44 }
  0xe6   : > { %v879_v26 = vpop.f32.mrf.mxu2  ;;  %v6456_v37 = vpop.f32.mrf.mxu1 }
  0xe7   : > { %v699_v12 = vpop.f32.mrf.mxu3 }
  0xe8   : > { %v6461_v63 = vadd.f32 %v879_v26, %v699_v12  ;;  %v6477_v26 = vsel %vm900_vm3, %v927_v31, %v929_v51 }
  0xe9   : > { %4940 = vmatmul.msk.f32.gmra.mxu1 %vm538_vm1, %v6459_v54  ;;  %8451 = vst [vmem:[#allocation53_spill] sm:$0xff] %v6477_v26 }
  0xea   : > { %8450 = vst [vmem:[#allocation52_spill] sm:$0xff] %v6461_v63  ;;  %v6463_v55 = vpop.f32.mrf.mxu0 }
  0xeb   : > { %4840 = vmatmul.msk.f32.gmra.mxu2 %vm538_vm1, %v6459_v54  ;;  %v932_v54 = vrot.slane %v6181_v4, 2 }
  0xec   : > { %4874 = vmatmul.msk.f32.gmra.mxu3 %vm538_vm1, %v6178_v11  ;;  %v934_v11 = vrot.slane %v6204_v27, 2  ;;  %v936_v27 = vrot.slane %v6238_v34, 2 }
  0xed   : > { %4906 = vmatmul.msk.f32.gmra.mxu0 %vm538_vm1, %v6144_v3 }
  0xee   : > { %v882_v61 = vpop.f32.mrf.mxu2  ;;  %v6474_v52 = vpop.f32.mrf.mxu1 }
  0xef   : > { %v702_v28 = vpop.f32.mrf.mxu3 }
  0xf0   : > { %v6479_v12 = vadd.f32 %v882_v61, %v702_v28  ;;  %v6496_v61 = vsel %vm900_vm3, %v931_v19, %v932_v54 }
  0xf1   : > { %4941 = vmatmul.msk.f32.gmra.mxu1 %vm538_vm1, %v6477_v26  ;;  %8453 = vst [vmem:[#allocation55_spill] sm:$0xff] %v6496_v61 }
  0xf2   : > { %8452 = vst [vmem:[#allocation54_spill] sm:$0xff] %v6479_v12  ;;  %v6481_v63 = vpop.f32.mrf.mxu0 }
  0xf3   : > { %4841 = vmatmul.msk.f32.gmra.mxu2 %vm538_vm1, %v6477_v26 }
  0xf4   : > { %4875 = vmatmul.msk.f32.gmra.mxu3 %vm538_vm1, %v6181_v4 }
  0xf5   : > { %4907 = vmatmul.msk.f32.gmra.mxu0 %vm538_vm1, %v6170_v43 }
  0xf6   : > { %v885_v3 = vpop.f32.mrf.mxu2  ;;  %v6493_v31 = vpop.f32.mrf.mxu1 }
  0xf7   : > { %v705_v51 = vpop.f32.mrf.mxu3 }
  0xf8   : > { %v6498_v28 = vadd.f32 %v885_v3, %v705_v51  ;;  %v6514_v3 = vsel %vm900_vm3, %v932_v54, %v934_v11 }
  0xf9   : > { %4942 = vmatmul.msk.f32.gmra.mxu1 %vm538_vm1, %v6496_v61  ;;  %8455 = vst [vmem:[#allocation57_spill] sm:$0xff] %v6514_v3 }
  0xfa   : > { %8454 = vst [vmem:[#allocation56_spill] sm:$0xff] %v6498_v28  ;;  %v6500_v12 = vpop.f32.mrf.mxu0 }
  0xfb   : > { %4842 = vmatmul.msk.f32.gmra.mxu2 %vm538_vm1, %v6496_v61  ;;  %v937_v61 = vrot.slane %v6241_v9, 2 }
  0xfc   : > { %4876 = vmatmul.msk.f32.gmra.mxu3 %vm538_vm1, %v6238_v34  ;;  %v939_v34 = vrot.slane %v6274_v18, 2  ;;  %v941_v18 = vrot.slane %v6290_v7, 2 }
  0xfd   : > { %4908 = vmatmul.msk.f32.gmra.mxu0 %vm538_vm1, %v6196_v20 }
  0xfe   : > { %v888_v26 = vpop.f32.mrf.mxu2  ;;  %v6511_v4 = vpop.f32.mrf.mxu1 }
  0xff   : > { %v708_v19 = vpop.f32.mrf.mxu3 }
 0x100   : > { %v6516_v51 = vadd.f32 %v888_v26, %v708_v19  ;;  %v6533_v26 = vsel %vm900_vm3, %v936_v27, %v937_v61 }
 0x101   : > { %4943 = vmatmul.msk.f32.gmra.mxu1 %vm538_vm1, %v6514_v3  ;;  %8457 = vst [vmem:[#allocation59_spill] sm:$0xff] %v6533_v26 }
 0x102   : > { %8456 = vst [vmem:[#allocation58_spill] sm:$0xff] %v6516_v51  ;;  %v6518_v28 = vpop.f32.mrf.mxu0 }
 0x103   : > { %4843 = vmatmul.msk.f32.gmra.mxu2 %vm538_vm1, %v6514_v3 }
 0x104   : > { %4877 = vmatmul.msk.f32.gmra.mxu3 %vm538_vm1, %v6241_v9 }
 0x105   : > { %4909 = vmatmul.msk.f32.gmra.mxu0 %vm538_vm1, %v6230_v2 }
 0x106   : > { %v891_v20 = vpop.f32.mrf.mxu2  ;;  %v6530_v54 = vpop.f32.mrf.mxu1 }
 0x107   : > { %v711_v11 = vpop.f32.mrf.mxu3 }
 0x108   : > { %v6535_v19 = vadd.f32 %v891_v20, %v711_v11  ;;  %v6551_v20 = vsel %vm900_vm3, %v937_v61, %v939_v34  ;;  %v5500_v61 = vld [vmem:[%s8328_s3 + $0x78] sm:$0xff] }
 0x109   : > { %4944 = vmatmul.msk.f32.gmra.mxu1 %vm538_vm1, %v6533_v26  ;;  %8459 = vst [vmem:[#allocation61_spill] sm:$0xff] %v6551_v20 }
 0x10a   : > { %8458 = vst [vmem:[#allocation60_spill] sm:$0xff] %v6535_v19  ;;  %v6537_v51 = vpop.f32.mrf.mxu0  ;;  %2477 = vmatpush.bf16.msra.mxu1 %v5500_v61  ;;  %v944_v61 = vrot.slane %v5883_v10, 2  ;;  %v946_v10 = vrot.slane %v5894_v15, 2 }
 0x10b   : > { %4844 = vmatmul.msk.f32.gmra.mxu2 %vm538_vm1, %v6533_v26  ;;  %v942_v26 = vrot.slane %v5870_v5, 2 }
 0x10c   : > { %4878 = vmatmul.msk.f32.gmra.mxu3 %vm538_vm1, %v6290_v7 }
 0x10d   : > { %4910 = vmatmul.msk.f32.gmra.mxu0 %vm538_vm1, %v6264_v60 }
 0x10e   : > { %v894_v3 = vpop.f32.mrf.mxu2  ;;  %v6548_v9 = vpop.f32.mrf.mxu1 }
 0x10f   : > { %v714_v27 = vpop.f32.mrf.mxu3 }
 0x110   : > { %v6553_v11 = vadd.f32 %v894_v3, %v714_v27  ;;  %v6573_v27 = vsel %vm900_vm3, %v941_v18, %v942_v26 }
 0x111   : > { %4945 = vmatmul.msk.f32.gmra.mxu1 %vm538_vm1, %v6551_v20  ;;  %8461 = vst [vmem:[#allocation63_spill] sm:$0xff] %v6573_v27 }
 0x112   : > { %8460 = vst [vmem:[#allocation62_spill] sm:$0xff] %v6553_v11  ;;  %v6555_v19 = vpop.f32.mrf.mxu0 }
 0x113   : > { %4845 = vmatmul.msk.f32.gmra.mxu2 %vm538_vm1, %v6551_v20 }
 0x114   : > { %4879 = vmatmul.msk.f32.gmra.mxu3 %vm538_vm1, %v5870_v5  ;;  %v805_v5 = vadd.f32 %v6297_v50, %v6300_v36  ;;  %v808_v50 = vadd.f32 %v6316_v6, %v6321_v0  ;;  %v949_v6 = vrot.slane %v5925_v25, 2 }
 0x115   : > { %4911 = vmatmul.msk.f32.gmra.mxu0 %vm538_vm1, %v6284_v35 }
 0x116   : > { %v897_v34 = vpop.f32.mrf.mxu2  ;;  %v6570_v3 = vpop.f32.mrf.mxu1 }
 0x117   : > { %v717_v7 = vpop.f32.mrf.mxu3 }
 0x118   : > { %v6575_v11 = vadd.f32 %v897_v34, %v717_v7  ;;  %v6593_v7 = vsel %vm900_vm3, %v942_v26, %v944_v61 }
 0x119   : > { %4946 = vmatmul.msk.f32.gmra.mxu1 %vm538_vm1, %v6573_v27 }
 0x11a   : > { %8462 = vst [vmem:[#allocation64_spill] sm:$0xff] %v6575_v11  ;;  %v6577_v20 = vpop.f32.mrf.mxu0 }
 0x11b   : > { %4846 = vmatmul.msk.f32.gmra.mxu2 %vm538_vm1, %v6573_v27 }
 0x11c   : > { %4880 = vmatmul.msk.f32.gmra.mxu3 %vm538_vm1, %v5894_v15 }
 0x11d   : > { %4912 = vmatmul.msk.f32.gmra.mxu0 %vm538_vm1, %v6306_v42 }
 0x11e   : > { %v1067_v35 = vpop.f32.mrf.mxu2  ;;  %v6590_v34 = vpop.f32.mrf.mxu1 }
 0x11f   : > { %v1163_v18 = vadd.f32 %v1067_v35, %v805_v5  ;;  %v1223_v11 = vpop.f32.mrf.mxu3  ;;  %v947_v35 = vrot.slane %v5897_v16, 2 }
 0x121   : > { %v1319_v27 = vadd.f32 %v1223_v11, %v1163_v18  ;;  %4947 = vmatmul.msk.f32.gmra.mxu1 %vm538_vm1, %v6593_v7  ;;  %v6610_v11 = vsel %vm900_vm3, %v946_v10, %v947_v35 }
 0x122   : > { %v6595_v60 = vpop.f32.mrf.mxu0 }
 0x123   : > { %4847 = vmatmul.msk.f32.gmra.mxu2 %vm538_vm1, %v6593_v7 }
 0x124   : > { %4881 = vmatmul.msk.f32.gmra.mxu3 %vm538_vm1, %v5897_v16 }
 0x125   : > { %4913 = vmatmul.msk.f32.gmra.mxu0 %vm538_vm1, %v5903_v17 }
 0x126   : > { %v1070_v36 = vpop.f32.mrf.mxu2  ;;  %v1542_v61 = vpop.f32.mrf.mxu1 }
 0x127   : > { %v1164_v26 = vadd.f32 %v1070_v36, %v808_v50  ;;  %v1226_v5 = vpop.f32.mrf.mxu3  ;;  %v811_v50 = vadd.f32 %v6330_v24, %v6335_v13  ;;  %v951_v24 = vrot.slane %v5947_v32, 2 }
 0x129   : > { %v1320_v18 = vadd.f32 %v1226_v5, %v1164_v26  ;;  %4948 = vmatmul.msk.f32.gmra.mxu1 %vm538_vm1, %v6610_v11  ;;  %v6626_v26 = vsel %vm900_vm3, %v947_v35, %v949_v6  ;;  %v5499_v35 = vld [vmem:[%s8328_s3 + $0x70] sm:$0xff] }
 0x12a   : > { %v1383_v15 = vpop.f32.mrf.mxu0  ;;  %2478 = vmatpush.bf16.msra.mxu1 %v5499_v35 }
 0x12b   : > { %4848 = vmatmul.msk.f32.gmra.mxu2 %vm538_vm1, %v6610_v11  ;;  %v1479_v0 = vadd.f32 %v1383_v15, %v1319_v27 }
 0x12c   : > { %4882 = vmatmul.msk.f32.gmra.mxu3 %vm538_vm1, %v5947_v32 }
 0x12d   : > { %v6619_v16 = vadd.f32 %v1542_v61, %v1479_v0  ;;  %4914 = vmatmul.msk.f32.gmra.mxu0 %vm538_vm1, %v5916_v22  ;;  %v952_v61 = vrot.slane %v5950_v33, 2  ;;  %v814_v0 = vadd.f32 %v6345_v21, %v6352_v58 }
 0x12e   : > { %v1073_v10 = vpop.f32.mrf.mxu2  ;;  %v1545_v5 = vpop.f32.mrf.mxu1 }
 0x12f   : > { %v1165_v36 = vadd.f32 %v1073_v10, %v811_v50  ;;  %v1229_v27 = vpop.f32.mrf.mxu3  ;;  %v6646_v32 = vsel %vm900_vm3, %v951_v24, %v952_v61 }
 0x131   : > { %v1321_v15 = vadd.f32 %v1229_v27, %v1165_v36  ;;  %4949 = vmatmul.msk.f32.gmra.mxu1 %vm538_vm1, %v6626_v26 }
 0x132   : > { %v1386_v25 = vpop.f32.mrf.mxu0 }
 0x133   : > { %4849 = vmatmul.msk.f32.gmra.mxu2 %vm538_vm1, %v6626_v26  ;;  %v1480_v13 = vadd.f32 %v1386_v25, %v1320_v18  ;;  %v817_v25 = vadd.f32 %v6363_v40, %v6370_v1  ;;  %v956_v40 = vrot.slane %v5999_v48, 2 }
 0x134   : > { %4883 = vmatmul.msk.f32.gmra.mxu3 %vm538_vm1, %v5950_v33 }
 0x135   : > { %v6639_v6 = vadd.f32 %v1545_v5, %v1480_v13  ;;  %4915 = vmatmul.msk.f32.gmra.mxu0 %vm538_vm1, %v5941_v30  ;;  %v954_v5 = vrot.slane %v5976_v41, 2 }
 0x136   : > { %v1076_v50 = vpop.f32.mrf.mxu2  ;;  %v1548_v18 = vpop.f32.mrf.mxu1 }
 0x137   : > { %v1166_v10 = vadd.f32 %v1076_v50, %v814_v0  ;;  %v1232_v36 = vpop.f32.mrf.mxu3  ;;  %v6662_v35 = vsel %vm900_vm3, %v952_v61, %v954_v5 }
 0x139   : > { %v1322_v27 = vadd.f32 %v1232_v36, %v1166_v10  ;;  %4950 = vmatmul.msk.f32.gmra.mxu1 %vm538_vm1, %v6646_v32  ;;  %v957_v10 = vrot.slane %v6002_v49, 2 }
 0x13a   : > { %v1389_v21 = vpop.f32.mrf.mxu0 }
 0x13b   : > { %4850 = vmatmul.msk.f32.gmra.mxu2 %vm538_vm1, %v6646_v32  ;;  %v1481_v58 = vadd.f32 %v1389_v21, %v1321_v15 }
 0x13c   : > { %4884 = vmatmul.msk.f32.gmra.mxu3 %vm538_vm1, %v5999_v48 }
 0x13d   : > { %v6655_v33 = vadd.f32 %v1548_v18, %v1481_v58  ;;  %4916 = vmatmul.msk.f32.gmra.mxu0 %vm538_vm1, %v5967_v38  ;;  %v820_v18 = vadd.f32 %v6382_v29, %v6389_v23  ;;  %v6679_v58 = vsel %vm900_vm3, %v956_v40, %v957_v10 }
 0x13e   : > { %v1079_v13 = vpop.f32.mrf.mxu2  ;;  %v1551_v0 = vpop.f32.mrf.mxu1 }
 0x13f   : > { %v1167_v24 = vadd.f32 %v1079_v13, %v817_v25  ;;  %v1235_v15 = vpop.f32.mrf.mxu3  ;;  %v959_v25 = vrot.slane %v6028_v57, 2  ;;  %v823_v13 = vadd.f32 %v6400_v56, %v6407_v59 }
 0x141   : > { %v1323_v50 = vadd.f32 %v1235_v15, %v1167_v24  ;;  %4951 = vmatmul.msk.f32.gmra.mxu1 %vm538_vm1, %v6662_v35 }
 0x142   : > { %v1392_v41 = vpop.f32.mrf.mxu0 }
 0x143   : > { %4851 = vmatmul.msk.f32.gmra.mxu2 %vm538_vm1, %v6662_v35  ;;  %v1482_v1 = vadd.f32 %v1392_v41, %v1322_v27  ;;  %v8464_v41 = vld [vmem:[#allocation12_spill] sm:$0xff] }
 0x144   : > { %4885 = vmatmul.msk.f32.gmra.mxu3 %vm538_vm1, %v6002_v49  ;;  %v961_v56 = vrot.slane %v8464_v41, 2 }
 0x145   : > { %v6672_v61 = vadd.f32 %v1551_v0, %v1482_v1  ;;  %4917 = vmatmul.msk.f32.gmra.mxu0 %vm538_vm1, %v5993_v46  ;;  %v8463_v0 = vld [vmem:[#allocation9_spill] sm:$0xff]  ;;  %v6695_v1 = vsel %vm900_vm3, %v957_v10, %v959_v25  ;;  %v5498_v10 = vld [vmem:[%s8328_s3 + $0x68] sm:$0xff] }
 0x146   : > { %v1082_v36 = vpop.f32.mrf.mxu2  ;;  %v1554_v27 = vpop.f32.mrf.mxu1  ;;  %2479 = vmatpush.bf16.msra.mxu1 %v5498_v10  ;;  %v8469_v10 = vld [vmem:[#allocation18_spill] sm:$0xff] }
 0x147   : > { %v1168_v21 = vadd.f32 %v1082_v36, %v820_v18  ;;  %v1238_v48 = vpop.f32.mrf.mxu3  ;;  %v8465_v36 = vld [vmem:[#allocation13_spill] sm:$0xff] }
 0x149   : > { %v1324_v5 = vadd.f32 %v1238_v48, %v1168_v21  ;;  %4952 = vmatmul.msk.f32.gmra.mxu1 %vm538_vm1, %v6679_v58  ;;  %v962_v21 = vrot.slane %v8465_v36, 2 }
 0x14a   : > { %v1395_v23 = vpop.f32.mrf.mxu0 }
 0x14b   : > { %4852 = vmatmul.msk.f32.gmra.mxu2 %vm538_vm1, %v6679_v58  ;;  %v1483_v29 = vadd.f32 %v1395_v23, %v1323_v50 }
 0x14c   : > { %4886 = vmatmul.msk.f32.gmra.mxu3 %vm538_vm1, %v8464_v41  ;;  %v8467_v41 = vld [vmem:[#allocation15_spill] sm:$0xff] }
 0x14d   : > { %v6688_v49 = vadd.f32 %v1554_v27, %v1483_v29  ;;  %4918 = vmatmul.msk.f32.gmra.mxu0 %vm538_vm1, %v8463_v0  ;;  %v826_v27 = vadd.f32 %v6419_v62, %v6426_v39  ;;  %v8466_v29 = vld [vmem:[#allocation11_spill] sm:$0xff] }
 0x14e   : > { %v1085_v24 = vpop.f32.mrf.mxu2  ;;  %v1557_v40 = vpop.f32.mrf.mxu1 }
 0x14f   : > { %v1169_v15 = vadd.f32 %v1085_v24, %v823_v13  ;;  %v1241_v50 = vpop.f32.mrf.mxu3 }
 0x151   : > { %v1325_v18 = vadd.f32 %v1241_v50, %v1169_v15  ;;  %4953 = vmatmul.msk.f32.gmra.mxu1 %vm538_vm1, %v6695_v1  ;;  %v829_v50 = vadd.f32 %v6437_v14, %v6444_v47 }
 0x152   : > { %v1398_v57 = vpop.f32.mrf.mxu0 }
 0x153   : > { %4853 = vmatmul.msk.f32.gmra.mxu2 %vm538_vm1, %v6695_v1  ;;  %v1484_v59 = vadd.f32 %v1398_v57, %v1324_v5  ;;  %v6715_v5 = vsel %vm900_vm3, %v961_v56, %v962_v21  ;;  %v8468_v56 = vld [vmem:[#allocation14_spill] sm:$0xff] }
 0x154   : > { %4887 = vmatmul.msk.f32.gmra.mxu3 %vm538_vm1, %v8465_v36 }
 0x155   : > { %v6708_v48 = vadd.f32 %v1557_v40, %v1484_v59  ;;  %4919 = vmatmul.msk.f32.gmra.mxu0 %vm538_vm1, %v8466_v29  ;;  %v964_v40 = vrot.slane %v8467_v41, 2 }
 0x156   : > { %v1088_v23 = vpop.f32.mrf.mxu2  ;;  %v1560_v13 = vpop.f32.mrf.mxu1 }
 0x157   : > { %v1170_v25 = vadd.f32 %v1088_v23, %v826_v27  ;;  %v1244_v24 = vpop.f32.mrf.mxu3  ;;  %v6731_v27 = vsel %vm900_vm3, %v962_v21, %v964_v40  ;;  %v8471_v40 = vld [vmem:[#allocation17_spill] sm:$0xff] }
 0x159   : > { %v1326_v15 = vadd.f32 %v1244_v24, %v1170_v25  ;;  %4954 = vmatmul.msk.f32.gmra.mxu1 %vm538_vm1, %v6715_v5  ;;  %v8470_v24 = vld [vmem:[#allocation19_spill] sm:$0xff] }
 0x15a   : > { %v1401_v39 = vpop.f32.mrf.mxu0 }
 0x15b   : > { %4854 = vmatmul.msk.f32.gmra.mxu2 %vm538_vm1, %v6715_v5  ;;  %v1485_v62 = vadd.f32 %v1401_v39, %v1325_v18  ;;  %v967_v39 = vrot.slane %v8470_v24, 2 }
 0x15c   : > { %4888 = vmatmul.msk.f32.gmra.mxu3 %vm538_vm1, %v8469_v10 }
 0x15d   : > { %v6724_v57 = vadd.f32 %v1560_v13, %v1485_v62  ;;  %4920 = vmatmul.msk.f32.gmra.mxu0 %vm538_vm1, %v8468_v56  ;;  %v966_v13 = vrot.slane %v8469_v10, 2  ;;  %v832_v62 = vadd.f32 %v6456_v37, %v6463_v55 }
 0x15e   : > { %v1091_v59 = vpop.f32.mrf.mxu2  ;;  %v1563_v23 = vpop.f32.mrf.mxu1 }
 0x15f   : > { %v1171_v36 = vadd.f32 %v1091_v59, %v829_v50  ;;  %v1247_v18 = vpop.f32.mrf.mxu3  ;;  %v6748_v59 = vsel %vm900_vm3, %v966_v13, %v967_v39 }
 0x161   : > { %v1327_v25 = vadd.f32 %v1247_v18, %v1171_v36  ;;  %4955 = vmatmul.msk.f32.gmra.mxu1 %vm538_vm1, %v6731_v27 }
 0x162   : > { %v1404_v47 = vpop.f32.mrf.mxu0 }
 0x163   : > { %4855 = vmatmul.msk.f32.gmra.mxu2 %vm538_vm1, %v6731_v27  ;;  %v1486_v14 = vadd.f32 %v1404_v47, %v1326_v15  ;;  %v835_v47 = vadd.f32 %v6474_v52, %v6481_v63 }
 0x164   : > { %4889 = vmatmul.msk.f32.gmra.mxu3 %vm538_vm1, %v8470_v24  ;;  %v8473_v24 = vld [vmem:[#allocation20_spill] sm:$0xff] }
 0x165   : > { %v6741_v21 = vadd.f32 %v1563_v23, %v1486_v14  ;;  %4921 = vmatmul.msk.f32.gmra.mxu0 %vm538_vm1, %v8471_v40  ;;  %v8472_v23 = vld [vmem:[#allocation21_spill] sm:$0xff] }
 0x166   : > { %v1094_v41 = vpop.f32.mrf.mxu2  ;;  %v1566_v15 = vpop.f32.mrf.mxu1  ;;  %v969_v18 = vrot.slane %v8472_v23, 2  ;;  %v838_v23 = vadd.f32 %v6493_v31, %v6500_v12 }
 0x167   : > { %v1172_v50 = vadd.f32 %v1094_v41, %v832_v62  ;;  %v1250_v36 = vpop.f32.mrf.mxu3  ;;  %v8474_v41 = vld [vmem:[#allocation24_spill] sm:$0xff] }
 0x168   : > { %v971_v52 = vrot.slane %v8474_v41, 2 }
 0x169   : > { %v6750_v10 = vadd.f32 %v1250_v36, %v1172_v50  ;;  %4956 = vmatmul.msk.f32.gmra.mxu1 %vm538_vm1, %v6748_v59  ;;  %v6766_v50 = vsel %vm900_vm3, %v967_v39, %v969_v18  ;;  %v5497_v39 = vld [vmem:[%s8328_s3 + $0x60] sm:$0xff] }
 0x16a   : > { %v1407_v55 = vpop.f32.mrf.mxu0  ;;  %2480 = vmatpush.bf16.msra.mxu1 %v5497_v39  ;;  %v8481_v39 = vld [vmem:[#allocation27_spill] sm:$0xff] }
 0x16b   : > { %4856 = vmatmul.msk.f32.gmra.mxu2 %vm538_vm1, %v6748_v59  ;;  %v1487_v37 = vadd.f32 %v1407_v55, %v1327_v25 }
 0x16c   : > { %4890 = vmatmul.msk.f32.gmra.mxu3 %vm538_vm1, %v8474_v41 }
 0x16d   : > { %v6759_v14 = vadd.f32 %v1566_v15, %v1487_v37  ;;  %4922 = vmatmul.msk.f32.gmra.mxu0 %vm538_vm1, %v8473_v24  ;;  %v8477_v15 = vld [vmem:[#allocation25_spill] sm:$0xff] }
 0x16e   : > { %v1097_v13 = vpop.f32.mrf.mxu2  ;;  %v6768_v36 = vpop.f32.mrf.mxu1  ;;  %v972_v37 = vrot.slane %v8477_v15, 2 }
 0x16f   : > { %v1173_v62 = vadd.f32 %v1097_v13, %v835_v47  ;;  %8475 = vst [vmem:[#allocation9_spill] sm:$0xff] %v6768_v36  ;;  %v1253_v25 = vpop.f32.mrf.mxu3  ;;  %v8478_v47 = vld [vmem:[#allocation23_spill] sm:$0xff] }
 0x171   : > { %v1329_v55 = vadd.f32 %v1253_v25, %v1173_v62  ;;  %4957 = vmatmul.msk.f32.gmra.mxu1 %vm538_vm1, %v6766_v50  ;;  %v6788_v62 = vsel %vm900_vm3, %v971_v52, %v972_v37 }
 0x172   : > { %v6772_v63 = vpop.f32.mrf.mxu0  ;;  %8479 = vst [vmem:[#allocation13_spill] sm:$0xff] %v6788_v62 }
 0x173   : > { %4857 = vmatmul.msk.f32.gmra.mxu2 %vm538_vm1, %v6766_v50  ;;  %8476 = vst [vmem:[#allocation12_spill] sm:$0xff] %v6772_v63  ;;  %v8482_v63 = vld [vmem:[#allocation26_spill] sm:$0xff] }
 0x174   : > { %4891 = vmatmul.msk.f32.gmra.mxu3 %vm538_vm1, %v8477_v15  ;;  %v841_v15 = vadd.f32 %v6511_v4, %v6518_v28 }
 0x175   : > { %4923 = vmatmul.msk.f32.gmra.mxu0 %vm538_vm1, %v8478_v47 }
 0x176   : > { %v1100_v18 = vpop.f32.mrf.mxu2  ;;  %v1572_v41 = vpop.f32.mrf.mxu1 }
 0x177   : > { %v1174_v13 = vadd.f32 %v1100_v18, %v838_v23  ;;  %v1256_v25 = vpop.f32.mrf.mxu3  ;;  %v974_v23 = vrot.slane %v8481_v39, 2 }
 0x179   : > { %v6790_v36 = vadd.f32 %v1256_v25, %v1174_v13  ;;  %4958 = vmatmul.msk.f32.gmra.mxu1 %vm538_vm1, %v6788_v62  ;;  %v8483_v25 = vld [vmem:[#allocation30_spill] sm:$0xff] }
 0x17a   : > { %v1413_v12 = vpop.f32.mrf.mxu0  ;;  %v976_v4 = vrot.slane %v8483_v25, 2 }
 0x17b   : > { %8480 = vst [vmem:[#allocation11_spill] sm:$0xff] %v6790_v36  ;;  %4858 = vmatmul.msk.f32.gmra.mxu2 %vm538_vm1, %v6788_v62  ;;  %v1489_v31 = vadd.f32 %v1413_v12, %v1329_v55  ;;  %v6806_v36 = vsel %vm900_vm3, %v972_v37, %v974_v23  ;;  %v844_v37 = vadd.f32 %v6530_v54, %v6537_v51  ;;  %v8487_v23 = vld [vmem:[#allocation29_spill] sm:$0xff]  ;;  %v6834_v54 = vld [vmem:[%s5867_s23 + $0x180] sm:$0xff] }
 0x17c   : > { %4892 = vmatmul.msk.f32.gmra.mxu3 %vm538_vm1, %v8483_v25  ;;  %8490 = vst [vmem:[#allocation17_spill] sm:$0xff] %v6834_v54 }
 0x17d   : > { %v6799_v18 = vadd.f32 %v1572_v41, %v1489_v31  ;;  %4924 = vmatmul.msk.f32.gmra.mxu0 %vm538_vm1, %v8482_v63  ;;  %v8486_v41 = vld [vmem:[#allocation31_spill] sm:$0xff] }
 0x17e   : > { %v1103_v52 = vpop.f32.mrf.mxu2  ;;  %v6808_v62 = vpop.f32.mrf.mxu1  ;;  %v977_v31 = vrot.slane %v8486_v41, 2 }
 0x17f   : > { %v1175_v13 = vadd.f32 %v1103_v52, %v841_v15  ;;  %8484 = vst [vmem:[#allocation15_spill] sm:$0xff] %v6808_v62  ;;  %v1259_v55 = vpop.f32.mrf.mxu3 }
 0x180   : > { %v6825_v52 = vsel %vm900_vm3, %v976_v4, %v977_v31  ;;  %v847_v4 = vadd.f32 %v6548_v9, %v6555_v19  ;;  %v6855_v9 = vld [vmem:[%s5867_s23 + $0x188] sm:$0xff] }
 0x181   : > { %v1331_v12 = vadd.f32 %v1259_v55, %v1175_v13  ;;  %4959 = vmatmul.msk.f32.gmra.mxu1 %vm538_vm1, %v6806_v36  ;;  %8488 = vst [vmem:[#allocation18_spill] sm:$0xff] %v6825_v52 }
 0x182   : > { %v6812_v28 = vpop.f32.mrf.mxu0  ;;  %8497 = vst [vmem:[#allocation23_spill] sm:$0xff] %v6855_v9 }
 0x183   : > { %4859 = vmatmul.msk.f32.gmra.mxu2 %vm538_vm1, %v6806_v36  ;;  %8485 = vst [vmem:[#allocation14_spill] sm:$0xff] %v6812_v28  ;;  %v5611_v28 = vld [vmem:[%s5867_s23 + $0x30] sm:$0xff] }
 0x184   : > { %4893 = vmatmul.msk.f32.gmra.mxu3 %vm538_vm1, %v8486_v41 }
 0x185   : > { %4925 = vmatmul.msk.f32.gmra.mxu0 %vm538_vm1, %v8487_v23 }
 0x186   : > { %v1106_v39 = vpop.f32.mrf.mxu2  ;;  %v1578_v13 = vpop.f32.mrf.mxu1 }
 0x187   : > { %v1176_v15 = vadd.f32 %v1106_v39, %v844_v37  ;;  %v1262_v55 = vpop.f32.mrf.mxu3  ;;  %v8491_v37 = vld [vmem:[#allocation33_spill] sm:$0xff] }
 0x188   : > { %v979_v41 = vrot.slane %v8491_v37, 2 }
 0x189   : > { %v6827_v62 = vadd.f32 %v1262_v55, %v1176_v15  ;;  %4960 = vmatmul.msk.f32.gmra.mxu1 %vm538_vm1, %v6825_v52  ;;  %v8493_v55 = vld [vmem:[#allocation32_spill] sm:$0xff] }
 0x18a   : > { %v1419_v25 = vpop.f32.mrf.mxu0 }
 0x18b   : > { %8489 = vst [vmem:[#allocation19_spill] sm:$0xff] %v6827_v62  ;;  %4860 = vmatmul.msk.f32.gmra.mxu2 %vm538_vm1, %v6825_v52  ;;  %v1491_v51 = vadd.f32 %v1419_v25, %v1331_v12  ;;  %v6846_v52 = vsel %vm900_vm3, %v977_v31, %v979_v41  ;;  %v1512_v31 = vrot.slane %v6855_v9, 2 }
 0x18c   : > { %4894 = vmatmul.msk.f32.gmra.mxu3 %vm538_vm1, %v6834_v54  ;;  %8494 = vst [vmem:[#allocation20_spill] sm:$0xff] %v6846_v52 }
 0x18d   : > { %v6839_v39 = vadd.f32 %v1578_v13, %v1491_v51  ;;  %4926 = vmatmul.msk.f32.gmra.mxu0 %vm538_vm1, %v8493_v55  ;;  %v1511_v13 = vrot.slane %v6834_v54, 2  ;;  %v5496_v51 = vld [vmem:[%s8328_s3 + $0x58] sm:$0xff] }
 0x18e   : > { %v1109_v15 = vpop.f32.mrf.mxu2  ;;  %v6848_v12 = vpop.f32.mrf.mxu1  ;;  %2481 = vmatpush.bf16.msra.mxu1 %v5496_v51 }
 0x18f   : > { %8492 = vst [vmem:[#allocation21_spill] sm:$0xff] %v6839_v39  ;;  %v1177_v62 = vadd.f32 %v1109_v15, %v847_v4  ;;  %v1265_v25 = vpop.f32.mrf.mxu3  ;;  %v8498_v4 = vld [vmem:[#allocation35_spill] sm:$0xff]  ;;  %v1352_v15 = vrot.slane %v6834_v54, 1 }
 0x190   : > { %8495 = vst [vmem:[#allocation24_spill] sm:$0xff] %v6848_v12  ;;  %v1353_v12 = vrot.slane %v6855_v9, 1 }
 0x191   : > { %v1333_v37 = vadd.f32 %v1265_v25, %v1177_v62  ;;  %4961 = vmatmul.msk.f32.gmra.mxu1 %vm538_vm1, %v6846_v52  ;;  %v850_v62 = vadd.f32 %v6570_v3, %v6577_v20 }
 0x192   : > { %v6852_v19 = vpop.f32.mrf.mxu0  ;;  %v6880_v51 = vsel %vm455_vm2, %v1352_v15, %v1353_v12 }
 0x193   : > { %4861 = vmatmul.msk.f32.gmra.mxu2 %vm538_vm1, %v6846_v52  ;;  %8496 = vst [vmem:[#allocation25_spill] sm:$0xff] %v6852_v19  ;;  %v6873_v52 = vsel %vm900_vm3, %v1511_v13, %v1512_v31  ;;  %v853_v13 = vadd.f32 %v6590_v34, %v6595_v60  ;;  %v5612_v34 = vld [vmem:[%s5867_s23 + $0x38] sm:$0xff] }
 0x194   : > { %4895 = vmatmul.msk.f32.gmra.mxu3 %vm538_vm1, %v6855_v9 }
 0x195   : > { %4927 = vmatmul.msk.f32.gmra.mxu0 %vm538_vm1, %v8498_v4 }
 0x196   : > { %v1112_v41 = vpop.f32.mrf.mxu2  ;;  %v1584_v19 = vpop.f32.mrf.mxu1 }
 0x197   : > { %v1178_v25 = vadd.f32 %v1112_v41, %v850_v62  ;;  %v1268_v39 = vpop.f32.mrf.mxu3  ;;  %v402_v62 = vld [vmem:[%s5867_s23 + $0x190] sm:$0x3] }
 0x198   : > { %v1514_v9 = vrot.slane %v402_v62, 2  ;;  %v1355_v15 = vrot.slane %v402_v62, 1 }
 0x199   : > { %v6875_v20 = vadd.f32 %v1268_v39, %v1178_v25  ;;  %4962 = vmatmul.msk.f32.gmra.mxu1 %vm538_vm1, %v6873_v52 }
 0x19a   : > { %v1425_v3 = vpop.f32.mrf.mxu0 }
 0x19b   : > { %8499 = vst [vmem:[#allocation27_spill] sm:$0xff] %v6875_v20  ;;  %4966 = vmatmul.msk.f32.vlgmr.msra.gmra.mxu2 %vm538_vm1, %v5611_v28  ;;  %v1493_v41 = vadd.f32 %v1425_v3, %v1333_v37  ;;  %v6896_v20 = vsel %vm900_vm3, %v1512_v31, %v1514_v9  ;;  %v8501_v9 = vld [vmem:[#allocation37_spill] sm:$0xff] }
 0x19c   : > { %5000 = vmatmul.msk.f32.vlgmr.msra.gmra.mxu3 %vm538_vm1, %v5988_v45 }
 0x19d   : > { %v6887_v54 = vadd.f32 %v1584_v19, %v1493_v41  ;;  %4928 = vmatmul.msk.f32.gmra.mxu0 %vm538_vm1, %v6880_v51  ;;  %v6903_v19 = vsel %vm455_vm2, %v1353_v12, %v1355_v15  ;;  %v5613_v12 = vld [vmem:[%s5867_s23 + $0x48] sm:$0xff] }
 0x19e   : > { %v1115_v39 = vpop.f32.mrf.mxu2  ;;  %v6893_v25 = vpop.f32.mrf.mxu1 }
 0x19f   : > { %v1179_v28 = vadd.f32 %v1115_v39, %v853_v13  ;;  %8500 = vst [vmem:[#allocation26_spill] sm:$0xff] %v6893_v25  ;;  %v1271_v37 = vpop.f32.mrf.mxu3  ;;  %v8505_v25 = vld [vmem:[#allocation10_spill] sm:$0xff] }
 0x1a1   : > { %v1335_v3 = vadd.f32 %v1271_v37, %v1179_v28  ;;  %4963 = vmatmul.msk.f32.gmra.mxu1 %vm538_vm1, %v6896_v20 }
 0x1a2   : > { %v6898_v60 = vpop.f32.mrf.mxu0 }
 0x1a3   : > { %4967 = vmatmul.msk.f32.gmra.mxu2 %vm538_vm1, %v5612_v34  ;;  %v8503_v34 = vld [vmem:[#allocation39_spill] sm:$0xff] }
 0x1a4   : > { %5001 = vmatmul.msk.f32.gmra.mxu3 %vm538_vm1, %v6014_v53 }
 0x1a5   : > { %4929 = vmatmul.msk.f32.gmra.mxu0 %vm538_vm1, %v6903_v19 }
 0x1a6   : > { %v1118_v45 = vpop.f32.mrf.mxu2  ;;  %v1590_v62 = vpop.f32.mrf.mxu1 }
 0x1a7   : > { %v1180_v31 = vadd.f32 %v1118_v45, %v8501_v9  ;;  %v1274_v41 = vpop.f32.mrf.mxu3  ;;  %v8504_v45 = vld [vmem:[#allocation38_spill] sm:$0xff] }
 0x1a9   : > { %v6912_v13 = vadd.f32 %v1274_v41, %v1180_v31 }
 0x1aa   : > { %v1431_v39 = vpop.f32.mrf.mxu0 }
 0x1ab   : > { %8502 = vst [vmem:[#allocation30_spill] sm:$0xff] %v6912_v13  ;;  %4968 = vmatmul.msk.f32.gmra.mxu2 %vm538_vm1, %v5613_v12  ;;  %v1495_v28 = vadd.f32 %v1431_v39, %v1335_v3  ;;  %v5614_v12 = vld [vmem:[%s5867_s23 + $0x50] sm:$0xff] }
 0x1ac   : > { %5002 = vmatmul.msk.f32.gmra.mxu3 %vm538_vm1, %v8505_v25  ;;  %v5495_v3 = vld [vmem:[%s8328_s3 + $0x50] sm:$0xff] }
 0x1ad   : > { %v6916_v15 = vadd.f32 %v1590_v62, %v1495_v28  ;;  %5034 = vmatmul.msk.f32.vlgmr.msra.gmra.mxu0 %vm538_vm1, %v8503_v34  ;;  %v8508_v39 = vld [vmem:[#allocation41_spill] sm:$0xff]  ;;  %2482 = vmatpush.bf16.msra.mxu1 %v5495_v3  ;;  %v8509_v25 = vld [vmem:[#allocation40_spill] sm:$0xff]  ;;  %v8512_v3 = vld [vmem:[#allocation42_spill] sm:$0xff] }
 0x1ae   : > { %v1121_v37 = vpop.f32.mrf.mxu2  ;;  %v6923_v53 = vpop.f32.mrf.mxu1 }
 0x1af   : > { %v1181_v9 = vadd.f32 %v1121_v37, %v8504_v45  ;;  %8506 = vst [vmem:[#allocation31_spill] sm:$0xff] %v6923_v53  ;;  %v1277_v31 = vpop.f32.mrf.mxu3 }
 0x1b1   : > { %v1337_v41 = vadd.f32 %v1277_v31, %v1181_v9  ;;  %v5615_v31 = vld [vmem:[%s5867_s23 + $0x60] sm:$0xff] }
 0x1b2   : > { %v6925_v13 = vpop.f32.mrf.mxu0 }
 0x1b3   : > { %8507 = vst [vmem:[#allocation29_spill] sm:$0xff] %v6925_v13  ;;  %4969 = vmatmul.msk.f32.gmra.mxu2 %vm538_vm1, %v5614_v12 }
 0x1b4   : > { %5003 = vmatmul.msk.f32.gmra.mxu3 %vm538_vm1, %v6066_v8 }
 0x1b5   : > { %5035 = vmatmul.msk.f32.gmra.mxu0 %vm538_vm1, %v8508_v39  ;;  %v8511_v39 = vld [vmem:[#allocation43_spill] sm:$0xff] }
 0x1b6   : > { %v1124_v62 = vpop.f32.mrf.mxu2  ;;  %v1596_v37 = vpop.f32.mrf.mxu1 }
 0x1b7   : > { %v1182_v28 = vadd.f32 %v1124_v62, %v8509_v25  ;;  %v1280_v34 = vpop.f32.mrf.mxu3  ;;  %v8513_v25 = vld [vmem:[#allocation16_spill] sm:$0xff] }
 0x1b9   : > { %v6937_v45 = vadd.f32 %v1280_v34, %v1182_v28 }
 0x1ba   : > { %v1437_v9 = vpop.f32.mrf.mxu0 }
 0x1bb   : > { %8510 = vst [vmem:[#allocation33_spill] sm:$0xff] %v6937_v45  ;;  %4970 = vmatmul.msk.f32.gmra.mxu2 %vm538_vm1, %v5615_v31  ;;  %v1497_v12 = vadd.f32 %v1437_v9, %v1337_v41  ;;  %v5616_v31 = vld [vmem:[%s5867_s23 + $0x68] sm:$0xff] }
 0x1bc   : > { %5004 = vmatmul.msk.f32.gmra.mxu3 %vm538_vm1, %v8513_v25  ;;  %v8517_v9 = vld [vmem:[#allocation44_spill] sm:$0xff]  ;;  %v5617_v25 = vld [vmem:[%s5867_s23 + $0x78] sm:$0xff] }
 0x1bd   : > { %v6941_v53 = vadd.f32 %v1596_v37, %v1497_v12  ;;  %5036 = vmatmul.msk.f32.gmra.mxu0 %vm538_vm1, %v8511_v39  ;;  %v8516_v37 = vld [vmem:[#allocation45_spill] sm:$0xff] }
 0x1be   : > { %v1127_v13 = vpop.f32.mrf.mxu2  ;;  %v6948_v8 = vpop.f32.mrf.mxu1 }
 0x1bf   : > { %v1183_v62 = vadd.f32 %v1127_v13, %v8512_v3  ;;  %8514 = vst [vmem:[#allocation32_spill] sm:$0xff] %v6948_v8  ;;  %v1283_v28 = vpop.f32.mrf.mxu3 }
 0x1c1   : > { %v1339_v34 = vadd.f32 %v1283_v28, %v1183_v62 }
 0x1c2   : > { %v6950_v45 = vpop.f32.mrf.mxu0 }
 0x1c3   : > { %8515 = vst [vmem:[#allocation35_spill] sm:$0xff] %v6950_v45  ;;  %4971 = vmatmul.msk.f32.gmra.mxu2 %vm538_vm1, %v5616_v31  ;;  %v8519_v45 = vld [vmem:[#allocation47_spill] sm:$0xff] }
 0x1c4   : > { %5005 = vmatmul.msk.f32.gmra.mxu3 %vm538_vm1, %v6118_v44 }
 0x1c5   : > { %5037 = vmatmul.msk.f32.gmra.mxu0 %vm538_vm1, %v8516_v37 }
 0x1c6   : > { %v1130_v41 = vpop.f32.mrf.mxu2  ;;  %v1602_v13 = vpop.f32.mrf.mxu1 }
 0x1c7   : > { %v1184_v12 = vadd.f32 %v1130_v41, %v8517_v9  ;;  %v1286_v39 = vpop.f32.mrf.mxu3  ;;  %v8520_v41 = vld [vmem:[#allocation46_spill] sm:$0xff] }
 0x1c8   : > { %v8521_v9 = vld [vmem:[#allocation22_spill] sm:$0xff] }
 0x1c9   : > { %v6959_v3 = vadd.f32 %v1286_v39, %v1184_v12 }
 0x1ca   : > { %v1443_v62 = vpop.f32.mrf.mxu0 }
 0x1cb   : > { %8518 = vst [vmem:[#allocation37_spill] sm:$0xff] %v6959_v3  ;;  %4972 = vmatmul.msk.f32.gmra.mxu2 %vm538_vm1, %v5617_v25  ;;  %v1499_v28 = vadd.f32 %v1443_v62, %v1339_v34  ;;  %v5618_v25 = vld [vmem:[%s5867_s23 + $0x80] sm:$0xff]  ;;  %v5494_v34 = vld [vmem:[%s8328_s3 + $0x48] sm:$0xff] }
 0x1cc   : > { %5006 = vmatmul.msk.f32.gmra.mxu3 %vm538_vm1, %v8521_v9  ;;  %2483 = vmatpush.bf16.msra.mxu1 %v5494_v34  ;;  %v8528_v34 = vld [vmem:[#allocation50_spill] sm:$0xff] }
 0x1cd   : > { %v6963_v31 = vadd.f32 %v1602_v13, %v1499_v28  ;;  %5038 = vmatmul.msk.f32.gmra.mxu0 %vm538_vm1, %v8519_v45  ;;  %v8524_v13 = vld [vmem:[#allocation49_spill] sm:$0xff] }
 0x1ce   : > { %v1133_v8 = vpop.f32.mrf.mxu2  ;;  %v6970_v44 = vpop.f32.mrf.mxu1 }
 0x1cf   : > { %v1185_v37 = vadd.f32 %v1133_v8, %v8520_v41  ;;  %8522 = vst [vmem:[#allocation39_spill] sm:$0xff] %v6970_v44  ;;  %v1289_v12 = vpop.f32.mrf.mxu3  ;;  %v8525_v8 = vld [vmem:[#allocation48_spill] sm:$0xff] }
 0x1d1   : > { %v1341_v39 = vadd.f32 %v1289_v12, %v1185_v37  ;;  %v5619_v12 = vld [vmem:[%s5867_s23 + $0x90] sm:$0xff] }
 0x1d2   : > { %v6972_v3 = vpop.f32.mrf.mxu0 }
 0x1d3   : > { %8523 = vst [vmem:[#allocation38_spill] sm:$0xff] %v6972_v3  ;;  %4973 = vmatmul.msk.f32.gmra.mxu2 %vm538_vm1, %v5618_v25 }
 0x1d4   : > { %5007 = vmatmul.msk.f32.gmra.mxu3 %vm538_vm1, %v6170_v43 }
 0x1d5   : > { %5039 = vmatmul.msk.f32.gmra.mxu0 %vm538_vm1, %v8524_v13  ;;  %v8527_v13 = vld [vmem:[#allocation51_spill] sm:$0xff] }
 0x1d6   : > { %v1136_v45 = vpop.f32.mrf.mxu2  ;;  %v1608_v28 = vpop.f32.mrf.mxu1 }
 0x1d7   : > { %v1186_v62 = vadd.f32 %v1136_v45, %v8525_v8  ;;  %v1292_v41 = vpop.f32.mrf.mxu3  ;;  %v8529_v8 = vld [vmem:[#allocation28_spill] sm:$0xff] }
 0x1d9   : > { %v6984_v37 = vadd.f32 %v1292_v41, %v1186_v62 }
 0x1da   : > { %v1449_v9 = vpop.f32.mrf.mxu0 }
 0x1db   : > { %8526 = vst [vmem:[#allocation10_spill] sm:$0xff] %v6984_v37  ;;  %4974 = vmatmul.msk.f32.gmra.mxu2 %vm538_vm1, %v5619_v12  ;;  %v1501_v25 = vadd.f32 %v1449_v9, %v1341_v39  ;;  %v5620_v12 = vld [vmem:[%s5867_s23 + $0x98] sm:$0xff]  ;;  %v8533_v9 = vld [vmem:[#allocation52_spill] sm:$0xff] }
 0x1dc   : > { %5008 = vmatmul.msk.f32.gmra.mxu3 %vm538_vm1, %v8529_v8  ;;  %v5621_v8 = vld [vmem:[%s5867_s23 + $0xa8] sm:$0xff] }
 0x1dd   : > { %v6988_v44 = vadd.f32 %v1608_v28, %v1501_v25  ;;  %5040 = vmatmul.msk.f32.gmra.mxu0 %vm538_vm1, %v8527_v13  ;;  %v8532_v28 = vld [vmem:[#allocation53_spill] sm:$0xff] }
 0x1de   : > { %v1139_v3 = vpop.f32.mrf.mxu2  ;;  %v6995_v43 = vpop.f32.mrf.mxu1 }
 0x1df   : > { %v1187_v45 = vadd.f32 %v1139_v3, %v8528_v34  ;;  %8530 = vst [vmem:[#allocation41_spill] sm:$0xff] %v6995_v43  ;;  %v1295_v62 = vpop.f32.mrf.mxu3 }
 0x1e1   : > { %v1343_v41 = vadd.f32 %v1295_v62, %v1187_v45 }
 0x1e2   : > { %v6997_v37 = vpop.f32.mrf.mxu0 }
 0x1e3   : > { %8531 = vst [vmem:[#allocation40_spill] sm:$0xff] %v6997_v37  ;;  %4975 = vmatmul.msk.f32.gmra.mxu2 %vm538_vm1, %v5620_v12  ;;  %v8535_v37 = vld [vmem:[#allocation55_spill] sm:$0xff] }
 0x1e4   : > { %5009 = vmatmul.msk.f32.gmra.mxu3 %vm538_vm1, %v6230_v2 }
 0x1e5   : > { %5041 = vmatmul.msk.f32.gmra.mxu0 %vm538_vm1, %v8532_v28 }
 0x1e6   : > { %v1142_v39 = vpop.f32.mrf.mxu2  ;;  %v1614_v3 = vpop.f32.mrf.mxu1 }
 0x1e7   : > { %v1188_v25 = vadd.f32 %v1142_v39, %v8533_v9  ;;  %v1298_v13 = vpop.f32.mrf.mxu3  ;;  %v8536_v39 = vld [vmem:[#allocation54_spill] sm:$0xff] }
 0x1e8   : > { %v8537_v9 = vld [vmem:[#allocation34_spill] sm:$0xff] }
 0x1e9   : > { %v7006_v34 = vadd.f32 %v1298_v13, %v1188_v25 }
 0x1ea   : > { %v1455_v45 = vpop.f32.mrf.mxu0 }
 0x1eb   : > { %8534 = vst [vmem:[#allocation43_spill] sm:$0xff] %v7006_v34  ;;  %4976 = vmatmul.msk.f32.gmra.mxu2 %vm538_vm1, %v5621_v8  ;;  %v1503_v62 = vadd.f32 %v1455_v45, %v1343_v41  ;;  %v5622_v8 = vld [vmem:[%s5867_s23 + $0xb0] sm:$0xff]  ;;  %v5493_v41 = vld [vmem:[%s8328_s3 + $0x40] sm:$0xff] }
 0x1ec   : > { %5010 = vmatmul.msk.f32.gmra.mxu3 %vm538_vm1, %v8537_v9  ;;  %2484 = vmatpush.bf16.msra.mxu1 %v5493_v41 }
 0x1ed   : > { %v7010_v12 = vadd.f32 %v1614_v3, %v1503_v62  ;;  %5042 = vmatmul.msk.f32.gmra.mxu0 %vm538_vm1, %v8535_v37  ;;  %v8540_v3 = vld [vmem:[#allocation57_spill] sm:$0xff]  ;;  %v8542_v62 = vld [vmem:[#allocation36_spill] sm:$0xff] }
 0x1ee   : > { %v1145_v43 = vpop.f32.mrf.mxu2  ;;  %v7017_v2 = vpop.f32.mrf.mxu1 }
 0x1ef   : > { %v1189_v28 = vadd.f32 %v1145_v43, %v8536_v39  ;;  %8538 = vst [vmem:[#allocation42_spill] sm:$0xff] %v7017_v2  ;;  %v1301_v25 = vpop.f32.mrf.mxu3  ;;  %v8541_v43 = vld [vmem:[#allocation56_spill] sm:$0xff]  ;;  %v5737_v2 = vmov 0.0  }
 0x1f0   : > { %2216 = vst [vmem:[#allocation2 + $0x18] sm:$0xff] %v5737_v2 }
 0x1f1   : > { %v1345_v13 = vadd.f32 %v1301_v25, %v1189_v28  ;;  %2217 = vst [vmem:[#allocation2 + $0x20] sm:$0xff] %v5737_v2 }
 0x1f2   : > { %v7019_v34 = vpop.f32.mrf.mxu0  ;;  %2213 = vst [vmem:[#allocation2] sm:$0xff] %v5737_v2 }
 0x1f3   : > { %8539 = vst [vmem:[#allocation16_spill] sm:$0xff] %v7019_v34  ;;  %4977 = vmatmul.msk.f32.gmra.mxu2 %vm538_vm1, %v5622_v8  ;;  %v5623_v8 = vld [vmem:[%s5867_s23 + $0xc0] sm:$0xff] }
 0x1f4   : > { %5011 = vmatmul.msk.f32.gmra.mxu3 %vm538_vm1, %v8542_v62  ;;  %2214 = vst [vmem:[#allocation2 + $0x8] sm:$0xff] %v5737_v2 }
 0x1f5   : > { %5043 = vmatmul.msk.f32.gmra.mxu0 %vm538_vm1, %v8540_v3  ;;  %v8543_v3 = vld [vmem:[#allocation59_spill] sm:$0xff]  ;;  %2215 = vst [vmem:[#allocation2 + $0x10] sm:$0x3] %v5737_v2 }
 0x1f6   : > { %v1148_v37 = vpop.f32.mrf.mxu2  ;;  %v1620_v39 = vpop.f32.mrf.mxu1  ;;  %2218 = vst [vmem:[#allocation2 + $0x28] sm:$0x3] %v5737_v2 }
 0x1f7   : > { %v1190_v45 = vadd.f32 %v1148_v37, %v8541_v43  ;;  %v1304_v28 = vpop.f32.mrf.mxu3  ;;  %v8544_v43 = vld [vmem:[#allocation58_spill] sm:$0xff]  ;;  %2219 = vst [vmem:[#allocation2 + $0x30] sm:$0xff] %v5737_v2 }
 0x1f8   : > { %2220 = vst [vmem:[#allocation2 + $0x38] sm:$0xff] %v5737_v2 }
 0x1f9   : > { %v7031_v9 = vadd.f32 %v1304_v28, %v1190_v45  ;;  %v5624_v28 = vld [vmem:[%s5867_s23 + $0xc8] sm:$0xff]  ;;  %2221 = vst [vmem:[#allocation2 + $0x40] sm:$0x3] %v5737_v2 }
 0x1fa   : > { %v1461_v25 = vpop.f32.mrf.mxu0  ;;  %2222 = vst [vmem:[#allocation2 + $0x48] sm:$0xff] %v5737_v2 }
 0x1fb   : > { %4978 = vmatmul.msk.f32.gmra.mxu2 %vm538_vm1, %v5623_v8  ;;  %v1505_v34 = vadd.f32 %v1461_v25, %v1345_v13  ;;  %2223 = vst [vmem:[#allocation2 + $0x50] sm:$0xff] %v5737_v2  ;;  %v8545_v8 = vld [vmem:[#allocation61_spill] sm:$0xff] }
 0x1fc   : > { %5012 = vmatmul.msk.f32.gmra.mxu3 %vm538_vm1, %v6306_v42  ;;  %v2364_v42 = vld [vmem:[#allocation2 + $0x1] sm:$0xff]  ;;  %2224 = vst [vmem:[#allocation2 + $0x58] sm:$0x3] %v5737_v2 }
 0x1fd   : > { %v7038_v41 = vadd.f32 %v1620_v39, %v1505_v34  ;;  %5044 = vmatmul.msk.f32.gmra.mxu0 %vm538_vm1, %v8543_v3  ;;  %v8546_v3 = vld [vmem:[#allocation60_spill] sm:$0xff]  ;;  %2225 = vst [vmem:[#allocation2 + $0x60] sm:$0xff] %v5737_v2 }
 0x1fe   : > { %v1151_v37 = vpop.f32.mrf.mxu2  ;;  %v7047_v13 = vpop.f32.mrf.mxu1  ;;  %2226 = vst [vmem:[#allocation2 + $0x68] sm:$0xff] %v5737_v2 }
 0x1ff   : > { %v1191_v45 = vadd.f32 %v1151_v37, %v8544_v43  ;;  %v1307_v34 = vpop.f32.mrf.mxu3  ;;  %v2365_v37 = vld [vmem:[#allocation2 + $0x9] sm:$0xff]  ;;  %2227 = vst [vmem:[#allocation2 + $0x70] sm:$0x3] %v5737_v2 }
 0x200   : > { %2228 = vst [vmem:[#allocation2 + $0x78] sm:$0xff] %v5737_v2 }
 0x201   : > { %v1347_v62 = vadd.f32 %v1307_v34, %v1191_v45  ;;  %v5492_v45 = vld [vmem:[%s8328_s3 + $0x38] sm:$0xff]  ;;  %v2396_v34 = vpack.c.bf16 %v2365_v37, %v2364_v42  ;;  %2229 = vst [vmem:[#allocation2 + $0x80] sm:$0xff] %v5737_v2 }
 0x202   : > { %v7052_v39 = vpop.f32.mrf.mxu0  ;;  %2614 = vmatpush.bf16.msrb.mxu2 %v5492_v45  ;;  %v5508_v42 = vld [vmem:[%s8328_s3 + $0xb8] sm:$0xff]  ;;  %2230 = vst [vmem:[#allocation2 + $0x88] sm:$0x3] %v5737_v2 }
 0x203   : > { %4979 = vmatmul.msk.f32.gmra.mxu2 %vm538_vm1, %v5624_v28  ;;  %2485 = vmatmul.bf16.vlgmr.msra.gmra.mxu1 %v2396_v34  ;;  %2231 = vst [vmem:[#allocation2 + $0x90] sm:$0xff] %v5737_v2  ;;  %v8547_v34 = vld [vmem:[#allocation63_spill] sm:$0xff] }
 0x204   : > { %5013 = vmatmul.msk.f32.gmra.mxu3 %vm538_vm1, %v5903_v17  ;;  %2232 = vst [vmem:[#allocation2 + $0x98] sm:$0xff] %v5737_v2 }
 0x205   : > { %5045 = vmatmul.msk.f32.gmra.mxu0 %vm538_vm1, %v8545_v8  ;;  %2816 = vmatpush.bf16.msrb.mxu3 %v5508_v42  ;;  %2233 = vst [vmem:[#allocation2 + $0xa0] sm:$0x3] %v5737_v2 }
 0x206   : > { %v1154_v25 = vpop.f32.mrf.mxu2  ;;  %v1626_v28 = vpop.f32.mrf.mxu1  ;;  %2234 = vst [vmem:[#allocation2 + $0xa8] sm:$0xff] %v5737_v2 }
 0x207   : > { %v1192_v43 = vadd.f32 %v1154_v25, %v8546_v3  ;;  %v1310_v8 = vpop.f32.mrf.mxu3  ;;  %v5625_v3 = vld [vmem:[%s5867_s23 + $0xd8] sm:$0xff]  ;;  %2235 = vst [vmem:[#allocation2 + $0xb0] sm:$0xff] %v5737_v2 }
 0x208   : > { %2236 = vst [vmem:[#allocation2 + $0xb8] sm:$0x3] %v5737_v2 }
 0x209   : > { %v7072_v25 = vadd.f32 %v1310_v8, %v1192_v43  ;;  %v8548_v8 = vld [vmem:[#allocation62_spill] sm:$0xff]  ;;  %2237 = vst [vmem:[#allocation2 + $0xc0] sm:$0xff] %v5737_v2 }
 0x20a   : > { %v1467_v17 = vpop.f32.mrf.mxu0  ;;  %2238 = vst [vmem:[#allocation2 + $0xc8] sm:$0xff] %v5737_v2 }
 0x20b   : > { %4980 = vmatmul.msk.f32.gmra.mxu2 %vm538_vm1, %v5625_v3  ;;  %v1507_v37 = vadd.f32 %v1467_v17, %v1347_v62  ;;  %2239 = vst [vmem:[#allocation2 + $0xd0] sm:$0x3] %v5737_v2 }
 0x20c   : > { %5014 = vmatmul.msk.f32.gmra.mxu3 %vm538_vm1, %v5916_v22  ;;  %v5516_v22 = vld [vmem:[%s8328_s3 + $0xf8] sm:$0xff]  ;;  %2240 = vst [vmem:[#allocation2 + $0xd8] sm:$0xff] %v5737_v2 }
 0x20d   : > { %v7082_v45 = vadd.f32 %v1626_v28, %v1507_v37  ;;  %5046 = vmatmul.msk.f32.gmra.mxu0 %vm538_vm1, %v8547_v34  ;;  %v5626_v37 = vld [vmem:[%s5867_s23 + $0xe0] sm:$0xff]  ;;  %v8550_v34 = vld [vmem:[#allocation64_spill] sm:$0xff]  ;;  %2241 = vst [vmem:[#allocation2 + $0xe0] sm:$0xff] %v5737_v2 }
 0x20e   : > { %v1157_v43 = vpop.f32.mrf.mxu2  ;;  %v7092_v62 = vpop.f32.mrf.mxu1  ;;  %3050 = vmatpush.bf16.msrb.mxu0 %v5516_v22  ;;  %2242 = vst [vmem:[#allocation2 + $0xe8] sm:$0x3] %v5737_v2  ;;  %v5627_v22 = vld [vmem:[%s5867_s23 + $0xf0] sm:$0xff] }
 0x20f   : > { %v1193_v3 = vadd.f32 %v1157_v43, %v8548_v8  ;;  %8549 = vst [vmem:[#allocation45_spill] sm:$0xff] %v7092_v62  ;;  %v1313_v28 = vpop.f32.mrf.mxu3 }
 0x210   : > { %2243 = vst [vmem:[#allocation2 + $0xf0] sm:$0xff] %v5737_v2 }
 0x211   : > { %v1349_v17 = vadd.f32 %v1313_v28, %v1193_v3  ;;  %2244 = vst [vmem:[#allocation2 + $0xf8] sm:$0xff] %v5737_v2 }
 0x212   : > { %v7096_v42 = vpop.f32.mrf.mxu0  ;;  %2245 = vst [vmem:[#allocation2 + $0x100] sm:$0x3] %v5737_v2 }
 0x213   : > { %4981 = vmatmul.msk.f32.gmra.mxu2 %vm538_vm1, %v5626_v37  ;;  %2246 = vst [vmem:[#allocation2 + $0x108] sm:$0xff] %v5737_v2 }
 0x214   : > { %5015 = vmatmul.msk.f32.gmra.mxu3 %vm538_vm1, %v5941_v30  ;;  %2247 = vst [vmem:[#allocation2 + $0x110] sm:$0xff] %v5737_v2 }
 0x215   : > { %5047 = vmatmul.msk.f32.gmra.mxu0 %vm538_vm1, %v6593_v7  ;;  %v5524_v7 = vld [vmem:[%s8328_s3 + $0x138] sm:$0xff]  ;;  %2248 = vst [vmem:[#allocation2 + $0x118] sm:$0x3] %v5737_v2 }
 0x216   : > { %v1160_v43 = vpop.f32.mrf.mxu2  ;;  %v1632_v30 = vpop.f32.mrf.mxu1  ;;  %3284 = vmatpush.bf16.msrb.mxu1 %v5524_v7  ;;  %2249 = vst [vmem:[#allocation2 + $0x120] sm:$0xff] %v5737_v2 }
 0x217   : > { %v1194_v8 = vadd.f32 %v1160_v43, %v8550_v34  ;;  %v1316_v3 = vpop.f32.mrf.mxu3  ;;  %2250 = vst [vmem:[#allocation2 + $0x128] sm:$0xff] %v5737_v2 }
 0x218   : > { %2251 = vst [vmem:[#allocation2 + $0x130] sm:$0x3] %v5737_v2 }
 0x219   : > { %v7119_v28 = vadd.f32 %v1316_v3, %v1194_v8  ;;  %2252 = vst [vmem:[#allocation2 + $0x138] sm:$0xff] %v5737_v2  ;;  %v5628_v3 = vld [vmem:[%s5867_s23 + $0xf8] sm:$0xff] }
 0x21a   : > { %v1473_v37 = vpop.f32.mrf.mxu0  ;;  %2253 = vst [vmem:[#allocation2 + $0x140] sm:$0xff] %v5737_v2 }
 0x21b   : > { %4982 = vmatmul.msk.f32.gmra.mxu2 %vm538_vm1, %v5627_v22  ;;  %v1509_v43 = vadd.f32 %v1473_v37, %v1349_v17  ;;  %2254 = vst [vmem:[#allocation2 + $0x148] sm:$0x3] %v5737_v2  ;;  %v5507_v22 = vld [vmem:[%s8328_s3 + $0xb0] sm:$0xff] }
 0x21c   : > { %5016 = vmatmul.msk.f32.gmra.mxu3 %vm538_vm1, %v5967_v38  ;;  %2255 = vst [vmem:[#allocation2 + $0x150] sm:$0xff] %v5737_v2 }
 0x21d   : > { %v7126_v34 = vadd.f32 %v1632_v30, %v1509_v43  ;;  %5048 = vmatmul.msk.f32.gmra.mxu0 %vm538_vm1, %v6610_v11  ;;  %2256 = vst [vmem:[#allocation2 + $0x158] sm:$0xff] %v5737_v2  ;;  %2817 = vmatpush.bf16.msrb.mxu3 %v5507_v22 }
 0x21e   : > { %v1698_v62 = vpop.f32.mrf.mxu2  ;;  %2257 = vst [vmem:[#allocation2 + $0x160] sm:$0x3] %v5737_v2 }
 0x21f   : > { %v1858_v17 = vpop.f32.mrf.mxu3  ;;  %v1794_v38 = vadd.f32 %v1698_v62, %v6619_v16  ;;  %2258 = vst [vmem:[#allocation2 + $0x168] sm:$0xff] %v5737_v2  ;;  %v7156_v16 = vld [vmem:[%s8327_s2] ss:$0 sm:$0xff] }
 0x220   : > { %2259 = vst [vmem:[#allocation2 + $0x170] sm:$0xff] %v5737_v2 }
 0x221   : > { %v1954_v7 = vadd.f32 %v1858_v17, %v1794_v38  ;;  %2260 = vst [vmem:[#allocation2 + $0x178] sm:$0x3] %v5737_v2 }
 0x222   : > { %v7137_v8 = vpop.f32.mrf.mxu0  ;;  %2261 = vst [vmem:[#allocation2 + $0x180] sm:$0xff] %v5737_v2 }
 0x223   : > { %4983 = vmatmul.msk.f32.gmra.mxu2 %vm538_vm1, %v5628_v3  ;;  %2262 = vst [vmem:[#allocation2 + $0x188] sm:$0xff] %v5737_v2 }
 0x224   : > { %5017 = vmatmul.msk.f32.gmra.mxu3 %vm538_vm1, %v5993_v46  ;;  %v5629_v46 = vld [vmem:[%s5867_s23 + $0x108] sm:$0xff]  ;;  %2263 = vst [vmem:[#allocation2 + $0x190] sm:$0x3] %v5737_v2 }
 0x225   : > { %5049 = vmatmul.msk.f32.gmra.mxu0 %vm538_vm1, %v6626_v26  ;;  %v5491_v26 = vld [vmem:[%s8328_s3 + $0x30] sm:$0xff]  ;;  %2264 = vst [vmem:[#allocation2 + $0x198] sm:$0xff] %v5737_v2 }
 0x226   : > { %v1701_v11 = vpop.f32.mrf.mxu2  ;;  %2615 = vmatpush.bf16.msrb.mxu2 %v5491_v26  ;;  %2265 = vst [vmem:[#allocation2 + $0x1a0] sm:$0xff] %v5737_v2 }
 0x227   : > { %v1861_v37 = vpop.f32.mrf.mxu3  ;;  %v1795_v43 = vadd.f32 %v1701_v11, %v6639_v6  ;;  %2266 = vst [vmem:[#allocation2 + $0x1a8] sm:$0x3] %v5737_v2  ;;  %v5630_v6 = vld [vmem:[%s5867_s23 + $0x110] sm:$0xff] }
 0x22a   : > { %v2017_v62 = vpop.f32.mrf.mxu0 }
 0x22b   : > { %4984 = vmatmul.msk.f32.gmra.mxu2 %vm538_vm1, %v5629_v46  ;;  %v2113_v30 = vadd.f32 %v2017_v62, %v1954_v7  ;;  %v1955_v7 = vadd.f32 %v1861_v37, %v1795_v43 }
 0x22c   : > { %5018 = vmatmul.msk.f32.gmra.mxu3 %vm538_vm1, %v8463_v0 }
 0x22d   : > { %v2149_v17 = vadd.f32 %v7156_v16, %v2113_v30  ;;  %5050 = vmatmul.msk.f32.gmra.mxu0 %vm538_vm1, %v6646_v32  ;;  %v5515_v32 = vld [vmem:[%s8328_s3 + $0xf0] sm:$0xff] }
 0x22e   : > { %v1704_v3 = vpop.f32.mrf.mxu2  ;;  %3051 = vmatpush.bf16.msrb.mxu0 %v5515_v32  ;;  %v5632_v32 = vld [vmem:[%s5867_s23 + $0x128] sm:$0xff] }
 0x22f   : > { %v2181_v38 = vmax.f32 %v2149_v17, 0.0  ;;  %v1864_v26 = vpop.f32.mrf.mxu3  ;;  %v1796_v62 = vadd.f32 %v1704_v3, %v6655_v33  ;;  %v5523_v17 = vld [vmem:[%s8328_s3 + $0x130] sm:$0xff]  ;;  %v5631_v33 = vld [vmem:[%s5867_s23 + $0x120] sm:$0xff] }
 0x230   : > { %3285 = vmatpush.bf16.msrb.mxu1 %v5523_v17 }
 0x231   : > { %2268 = vst [vmem:[#allocation2 + $0x19] sm:$0xff] %v2181_v38  ;;  %v1956_v37 = vadd.f32 %v1864_v26, %v1796_v62 }
 0x232   : > { %v2020_v11 = vpop.f32.mrf.mxu0 }
 0x233   : > { %4985 = vmatmul.msk.f32.gmra.mxu2 %vm538_vm1, %v5630_v6  ;;  %v2114_v46 = vadd.f32 %v2020_v11, %v1955_v7 }
 0x234   : > { %5019 = vmatmul.msk.f32.gmra.mxu3 %vm538_vm1, %v8466_v29 }
 0x235   : > { %v2150_v0 = vadd.f32 %v7156_v16, %v2114_v46  ;;  %5051 = vmatmul.msk.f32.gmra.mxu0 %vm538_vm1, %v6662_v35 }
 0x236   : > { %v1707_v22 = vpop.f32.mrf.mxu2 }
 0x237   : > { %v2182_v2 = vmax.f32 %v2150_v0, 0.0  ;;  %v1867_v30 = vpop.f32.mrf.mxu3  ;;  %v1797_v35 = vadd.f32 %v1707_v22, %v6672_v61 }
 0x239   : > { %2269 = vst [vmem:[#allocation2 + $0x21] sm:$0xff] %v2182_v2  ;;  %v2397_v43 = vpack.c.bf16 %v2182_v2, %v2181_v38  ;;  %v1957_v6 = vadd.f32 %v1867_v30, %v1797_v35  ;;  %v5490_v30 = vld [vmem:[%s8328_s3 + $0x28] sm:$0xff] }
 0x23a   : > { %v2023_v3 = vpop.f32.mrf.mxu0  ;;  %2616 = vmatpush.bf16.msrb.mxu2 %v5490_v30 }
 0x23b   : > { %4986 = vmatmul.msk.f32.gmra.mxu2 %vm538_vm1, %v5631_v33  ;;  %v2115_v7 = vadd.f32 %v2023_v3, %v1956_v37  ;;  %2490 = vmatmul.bf16.gmra.mxu1 %v2397_v43  ;;  %v5633_v43 = vld [vmem:[%s5867_s23 + $0x138] sm:$0xff] }
 0x23c   : > { %5020 = vmatmul.msk.f32.gmra.mxu3 %vm538_vm1, %v8468_v56 }
 0x23d   : > { %v2151_v29 = vadd.f32 %v7156_v16, %v2115_v7  ;;  %5052 = vmatmul.msk.f32.gmra.mxu0 %vm538_vm1, %v6679_v58 }
 0x23e   : > { %v1710_v26 = vpop.f32.mrf.mxu2 }
 0x23f   : > { %v2183_v38 = vmax.f32 %v2151_v29, 0.0  ;;  %v1870_v11 = vpop.f32.mrf.mxu3  ;;  %v1798_v61 = vadd.f32 %v1710_v26, %v6688_v49  ;;  %v5634_v26 = vld [vmem:[%s5867_s23 + $0x140] sm:$0xff] }
 0x241   : > { %2270 = vst [vmem:[#allocation2 + $0x31] sm:$0xff] %v2183_v38  ;;  %v1958_v56 = vadd.f32 %v1870_v11, %v1798_v61 }
 0x242   : > { %v2026_v46 = vpop.f32.mrf.mxu0 }
 0x243   : > { %4987 = vmatmul.msk.f32.gmra.mxu2 %vm538_vm1, %v5632_v32  ;;  %v2116_v62 = vadd.f32 %v2026_v46, %v1957_v6 }
 0x244   : > { %5021 = vmatmul.msk.f32.gmra.mxu3 %vm538_vm1, %v8471_v40 }
 0x245   : > { %v2152_v0 = vadd.f32 %v7156_v16, %v2116_v62  ;;  %5053 = vmatmul.msk.f32.gmra.mxu0 %vm538_vm1, %v6695_v1  ;;  %v5506_v1 = vld [vmem:[%s8328_s3 + $0xa8] sm:$0xff] }
 0x246   : > { %v1713_v22 = vpop.f32.mrf.mxu2  ;;  %2818 = vmatpush.bf16.msrb.mxu3 %v5506_v1 }
 0x247   : > { %v2184_v58 = vmax.f32 %v2152_v0, 0.0  ;;  %v1873_v2 = vpop.f32.mrf.mxu3  ;;  %v1799_v40 = vadd.f32 %v1713_v22, %v6708_v48  ;;  %v5514_v48 = vld [vmem:[%s8328_s3 + $0xe8] sm:$0xff] }
 0x248   : > { %3052 = vmatpush.bf16.msrb.mxu0 %v5514_v48  ;;  %v5522_v0 = vld [vmem:[%s8328_s3 + $0x128] sm:$0xff] }
 0x249   : > { %2271 = vst [vmem:[#allocation2 + $0x39] sm:$0xff] %v2184_v58  ;;  %v2398_v37 = vpack.c.bf16 %v2184_v58, %v2183_v38  ;;  %v1959_v35 = vadd.f32 %v1873_v2, %v1799_v40  ;;  %3286 = vmatpush.bf16.msrb.mxu1 %v5522_v0 }
 0x24a   : > { %v2029_v49 = vpop.f32.mrf.mxu0 }
 0x24b   : > { %4988 = vmatmul.msk.f32.gmra.mxu2 %vm538_vm1, %v5633_v43  ;;  %v2117_v17 = vadd.f32 %v2029_v49, %v1958_v56  ;;  %2495 = vmatmul.bf16.gmra.mxu1 %v2398_v37  ;;  %v5636_v43 = vld [vmem:[%s5867_s23 + $0x158] sm:$0xff] }
 0x24c   : > { %5022 = vmatmul.msk.f32.gmra.mxu3 %vm538_vm1, %v8473_v24 }
 0x24d   : > { %v2153_v33 = vadd.f32 %v7156_v16, %v2117_v17  ;;  %5054 = vmatmul.msk.f32.gmra.mxu0 %vm538_vm1, %v6715_v5 }
 0x24e   : > { %v1716_v3 = vpop.f32.mrf.mxu2 }
 0x24f   : > { %v2185_v7 = vmax.f32 %v2153_v33, 0.0  ;;  %v1876_v29 = vpop.f32.mrf.mxu3  ;;  %v1800_v5 = vadd.f32 %v1716_v3, %v6724_v57  ;;  %v5635_v57 = vld [vmem:[%s5867_s23 + $0x150] sm:$0xff] }
 0x251   : > { %2272 = vst [vmem:[#allocation2 + $0x49] sm:$0xff] %v2185_v7  ;;  %v1960_v46 = vadd.f32 %v1876_v29, %v1800_v5  ;;  %v5637_v29 = vld [vmem:[%s5867_s23 + $0x168] sm:$0xff] }
 0x252   : > { %v2032_v38 = vpop.f32.mrf.mxu0 }
 0x253   : > { %4989 = vmatmul.msk.f32.gmra.mxu2 %vm538_vm1, %v5634_v26  ;;  %v2118_v6 = vadd.f32 %v2032_v38, %v1959_v35  ;;  %v5488_v26 = vld [vmem:[%s8328_s3 + $0x18] sm:$0xff] }
 0x254   : > { %5023 = vmatmul.msk.f32.gmra.mxu3 %vm538_vm1, %v8478_v47  ;;  %v8552_v38 = vld [vmem:[#allocation9_spill] sm:$0xff] }
 0x255   : > { %v2154_v11 = vadd.f32 %v7156_v16, %v2118_v6  ;;  %5055 = vmatmul.msk.f32.gmra.mxu0 %vm538_vm1, %v6731_v27 }
 0x256   : > { %v1719_v24 = vpop.f32.mrf.mxu2 }
 0x257   : > { %v2186_v32 = vmax.f32 %v2154_v11, 0.0  ;;  %v1879_v62 = vpop.f32.mrf.mxu3  ;;  %v1801_v27 = vadd.f32 %v1719_v24, %v6741_v21  ;;  %v8553_v24 = vld [vmem:[#allocation13_spill] sm:$0xff] }
 0x259   : > { %2273 = vst [vmem:[#allocation2 + $0x51] sm:$0xff] %v2186_v32  ;;  %v2399_v61 = vpack.c.bf16 %v2186_v32, %v2185_v7  ;;  %v1961_v37 = vadd.f32 %v1879_v62, %v1801_v27  ;;  %v5504_v32 = vld [vmem:[%s8328_s3 + $0x98] sm:$0xff]  ;;  %v5486_v27 = vld [vmem:[%s8328_s3 + $0x8] sm:$0xff] }
 0x25a   : > { %v2035_v22 = vpop.f32.mrf.mxu0 }
 0x25b   : > { %4990 = vmatmul.msk.f32.gmra.mxu2 %vm538_vm1, %v5635_v57  ;;  %v2119_v58 = vadd.f32 %v2035_v22, %v1960_v46  ;;  %2500 = vmatmul.bf16.gmra.mxu1 %v2399_v61  ;;  %v5487_v46 = vld [vmem:[%s8328_s3 + $0x10] sm:$0xff] }
 0x25c   : > { %5024 = vmatmul.msk.f32.gmra.mxu3 %vm538_vm1, %v8482_v63  ;;  %v8551_v63 = vld [vmem:[#allocation12_spill] sm:$0xff] }
 0x25d   : > { %v2155_v47 = vadd.f32 %v7156_v16, %v2119_v58  ;;  %5056 = vmatmul.msk.f32.gmra.mxu0 %vm538_vm1, %v6748_v59  ;;  %v5489_v59 = vld [vmem:[%s8328_s3 + $0x20] sm:$0xff]  ;;  %v1488_v33 = vadd.f32 %v8551_v63, %v6750_v10  ;;  %v5503_v57 = vld [vmem:[%s8328_s3 + $0x90] sm:$0xff] }
 0x25e   : > { %v1722_v56 = vpop.f32.mrf.mxu2  ;;  %2617 = vmatpush.bf16.msrb.mxu2 %v5489_v59  ;;  %v5638_v22 = vld [vmem:[%s5867_s23 + $0x170] sm:$0xff]  ;;  %v5521_v59 = vld [vmem:[%s8328_s3 + $0x120] sm:$0xff] }
 0x25f   : > { %v2187_v2 = vmax.f32 %v2155_v47, 0.0  ;;  %v1882_v30 = vpop.f32.mrf.mxu3  ;;  %v1802_v21 = vadd.f32 %v1722_v56, %v6759_v14  ;;  %v1647_v10 = vadd.f32 %v8552_v38, %v1488_v33  ;;  %v8556_v63 = vld [vmem:[#allocation17_spill] sm:$0xff]  ;;  %3287 = vmatpush.bf16.msrb.mxu1 %v5521_v59 }
 0x261   : > { %2274 = vst [vmem:[#allocation2 + $0x61] sm:$0xff] %v2187_v2  ;;  %v1962_v7 = vadd.f32 %v1882_v30, %v1802_v21  ;;  %v5502_v30 = vld [vmem:[%s8328_s3 + $0x88] sm:$0xff] }
 0x262   : > { %v2038_v49 = vpop.f32.mrf.mxu0  ;;  %2618 = vmatpush.bf16.msrb.mxu2 %v5488_v26  ;;  %v5512_v26 = vld [vmem:[%s8328_s3 + $0xd8] sm:$0xff] }
 0x263   : > { %4991 = vmatmul.msk.f32.gmra.mxu2 %vm538_vm1, %v5636_v43  ;;  %v2120_v1 = vadd.f32 %v2038_v49, %v1961_v37  ;;  %v5485_v43 = vld [vmem:[%s8328_s3] sm:$0xff] }
 0x264   : > { %5025 = vmatmul.msk.f32.gmra.mxu3 %vm538_vm1, %v8487_v23  ;;  %v8554_v49 = vld [vmem:[#allocation11_spill] sm:$0xff] }
 0x265   : > { %v2156_v17 = vadd.f32 %v7156_v16, %v2120_v1  ;;  %5057 = vmatmul.msk.f32.gmra.mxu0 %vm538_vm1, %v6766_v50  ;;  %v5505_v50 = vld [vmem:[%s8328_s3 + $0xa0] sm:$0xff] }
 0x266   : > { %v1725_v40 = vpop.f32.mrf.mxu2  ;;  %2819 = vmatpush.bf16.msrb.mxu3 %v5505_v50  ;;  %2619 = vmatpush.bf16.msrb.mxu2 %v5487_v46  ;;  %v8555_v1 = vld [vmem:[#allocation14_spill] sm:$0xff] }
 0x267   : > { %v2188_v3 = vmax.f32 %v2156_v17, 0.0  ;;  %v1885_v14 = vpop.f32.mrf.mxu3  ;;  %v1803_v6 = vadd.f32 %v1725_v40, %v1647_v10  ;;  %v7327_v46 = vld [vmem:[%s5867_s23 + $0x1a0] sm:$0xff] }
 0x269   : > { %2275 = vst [vmem:[#allocation2 + $0x69] sm:$0xff] %v2188_v3  ;;  %v2400_v35 = vpack.c.bf16 %v2188_v3, %v2187_v2  ;;  %v1963_v61 = vadd.f32 %v1885_v14, %v1803_v6  ;;  %v8557_v3 = vld [vmem:[#allocation15_spill] sm:$0xff]  ;;  %v5511_v6 = vld [vmem:[%s8328_s3 + $0xd0] sm:$0xff] }
 0x26a   : > { %v2041_v23 = vpop.f32.mrf.mxu0  ;;  %2820 = vmatpush.bf16.msrb.mxu3 %v5504_v32  ;;  %2620 = vmatpush.bf16.msrb.mxu2 %v5486_v27  ;;  %v403_v32 = vld [vmem:[%s5867_s23 + $0x198] sm:$0xff] }
 0x26b   : > { %4992 = vmatmul.msk.f32.gmra.mxu2 %vm538_vm1, %v5637_v29  ;;  %v2121_v48 = vadd.f32 %v2041_v23, %v1962_v7  ;;  %2505 = vmatmul.bf16.gmra.mxu1 %v2400_v35  ;;  %v8558_v23 = vld [vmem:[#allocation18_spill] sm:$0xff] }
 0x26c   : > { %5026 = vmatmul.msk.f32.gmra.mxu3 %vm538_vm1, %v8493_v55  ;;  %v5513_v55 = vld [vmem:[%s8328_s3 + $0xe0] sm:$0xff] }
 0x26d   : > { %v2157_v5 = vadd.f32 %v7156_v16, %v2121_v48  ;;  %5058 = vmatmul.msk.f32.gmra.mxu0 %vm538_vm1, %v8553_v24 }
 0x26e   : > { %v1728_v11 = vpop.f32.mrf.mxu2  ;;  %2821 = vmatpush.bf16.msrb.mxu3 %v5503_v57  ;;  %3053 = vmatpush.bf16.msrb.mxu0 %v5513_v55  ;;  %v8561_v57 = vld [vmem:[#allocation20_spill] sm:$0xff]  ;;  %v8563_v55 = vld [vmem:[#allocation25_spill] sm:$0xff] }
 0x26f   : > { %v2189_v62 = vmax.f32 %v2157_v5, 0.0  ;;  %v1888_v0 = vpop.f32.mrf.mxu3  ;;  %v1804_v56 = vadd.f32 %v1728_v11, %v6799_v18  ;;  %v1490_v18 = vadd.f32 %v8555_v1, %v8554_v49  ;;  %2621 = vmatpush.bf16.msrb.mxu2 %v5485_v43  ;;  %v8559_v5 = vld [vmem:[#allocation23_spill] sm:$0xff]  ;;  %v8564_v1 = vld [vmem:[#allocation24_spill] sm:$0xff] }
 0x270   : > { %v5509_v49 = vld [vmem:[%s8328_s3 + $0xc0] sm:$0xff] }
 0x271   : > { %2276 = vst [vmem:[#allocation2 + $0x79] sm:$0xff] %v2189_v62  ;;  %v1964_v17 = vadd.f32 %v1888_v0, %v1804_v56  ;;  %v1649_v7 = vadd.f32 %v8557_v3, %v1490_v18  ;;  %v1827_v56 = vrot.slane %v403_v32, 1 }
 0x272   : > { %v2044_v58 = vpop.f32.mrf.mxu0  ;;  %2822 = vmatpush.bf16.msrb.mxu3 %v5502_v30  ;;  %3054 = vmatpush.bf16.msrb.mxu0 %v5512_v26 }
 0x273   : > { %4993 = vmatmul.msk.f32.gmra.mxu2 %vm538_vm1, %v5638_v22  ;;  %v2122_v47 = vadd.f32 %v2044_v58, %v1963_v61  ;;  %v5510_v22 = vld [vmem:[%s8328_s3 + $0xc8] sm:$0xff] }
 0x274   : > { %5027 = vmatmul.msk.f32.gmra.mxu3 %vm538_vm1, %v8498_v4  ;;  %v5501_v4 = vld [vmem:[%s8328_s3 + $0x80] sm:$0xff] }
 0x275   : > { %v2158_v2 = vadd.f32 %v7156_v16, %v2122_v47  ;;  %5059 = vmatmul.msk.f32.gmra.mxu0 %vm538_vm1, %v6806_v36  ;;  %v8562_v58 = vld [vmem:[#allocation19_spill] sm:$0xff] }
 0x276   : > { %v1731_v37 = vpop.f32.mrf.mxu2  ;;  %2823 = vmatpush.bf16.msrb.mxu3 %v5501_v4  ;;  %3055 = vmatpush.bf16.msrb.mxu0 %v5511_v6  ;;  %v1492_v27 = vadd.f32 %v8563_v55, %v8562_v58 }
 0x277   : > { %v2190_v21 = vmax.f32 %v2158_v2, 0.0  ;;  %v1891_v36 = vpop.f32.mrf.mxu3  ;;  %v1805_v35 = vadd.f32 %v1731_v37, %v1649_v7  ;;  %v1828_v2 = vrot.slane %v7327_v46, 1 }
 0x278   : > { %v1651_v18 = vadd.f32 %v8564_v1, %v1492_v27  ;;  %v7370_v27 = vpop.f32.mrf.mxu1 }
 0x279   : > { %2277 = vst [vmem:[#allocation2 + $0x81] sm:$0xff] %v2190_v21  ;;  %v2401_v40 = vpack.c.bf16 %v2190_v21, %v2189_v62  ;;  %v1965_v10 = vadd.f32 %v1891_v36, %v1805_v35  ;;  %v8560_v62 = vld [vmem:[#allocation21_spill] sm:$0xff]  ;;  %v405_v36 = vld [vmem:[%s5867_s23 + $0x1a8] sm:$0x3]  ;;  %s4614_s23 = scalar_lea.sflag [#allocation4], %s8203_s24 }
 0x27a   : > { %v2047_v33 = vpop.f32.mrf.mxu0  ;;  %3056 = vmatpush.bf16.msrb.mxu0 %v5510_v22 }
 0x27b   : > { %4994 = vmatmul.msk.f32.gmra.mxu2 %vm538_vm1, %v8556_v63  ;;  %v2123_v14 = vadd.f32 %v2047_v33, %v1964_v17  ;;  %2510 = vmatmul.bf16.gmra.mxu1 %v2401_v40  ;;  %v1829_v17 = vsel %vm455_vm2, %v1827_v56, %v1828_v2  ;;  %v1830_v33 = vrot.slane %v405_v36, 1 }
 0x27c   : > { %5028 = vmatmul.msk.f32.gmra.mxu3 %vm538_vm1, %v6880_v51 }
 0x27d   : > { %v2159_v50 = vadd.f32 %v7156_v16, %v2123_v14  ;;  %5060 = vmatmul.msk.f32.gmra.mxu0 %vm538_vm1, %v8558_v23 }
 0x27e   : > { %v1734_v29 = vpop.f32.mrf.mxu2  ;;  %3057 = vmatpush.bf16.msrb.mxu0 %v5509_v49 }
 0x27f   : > { %v2191_v38 = vmax.f32 %v2159_v50, 0.0  ;;  %v1894_v48 = vpop.f32.mrf.mxu3  ;;  %v1806_v51 = vadd.f32 %v1734_v29, %v8560_v62  ;;  %v1831_v50 = vsel %vm455_vm2, %v1828_v2, %v1830_v33 }
 0x281   : > { %2278 = vst [vmem:[#allocation2 + $0x91] sm:$0xff] %v2191_v38  ;;  %v1966_v37 = vadd.f32 %v1894_v48, %v1806_v51  ;;  %v5520_v51 = vld [vmem:[%s8328_s3 + $0x118] sm:$0xff] }
 0x282   : > { %v2050_v11 = vpop.f32.mrf.mxu0  ;;  %3288 = vmatpush.bf16.msrb.mxu1 %v5520_v51 }
 0x283   : > { %4995 = vmatmul.msk.f32.gmra.mxu2 %vm538_vm1, %v8559_v5  ;;  %v2124_v24 = vadd.f32 %v2050_v11, %v1965_v10  ;;  %v8565_v10 = vld [vmem:[#allocation27_spill] sm:$0xff] }
 0x284   : > { %5029 = vmatmul.msk.f32.gmra.mxu3 %vm538_vm1, %v6903_v19  ;;  %v1494_v48 = vadd.f32 %v6898_v60, %v8565_v10  ;;  %v2703_v5 = vld [vmem:[#allocation2 + $0x2] sm:$0xff]  ;;  %v2704_v11 = vld [vmem:[#allocation2 + $0xa] sm:$0xff] }
 0x285   : > { %v2160_v61 = vadd.f32 %v7156_v16, %v2124_v24  ;;  %5061 = vmatmul.msk.f32.gmra.mxu0 %vm538_vm1, %v8561_v57 }
 0x286   : > { %v1737_v0 = vpop.f32.mrf.mxu2 }
 0x287   : > { %v2192_v47 = vmax.f32 %v2160_v61, 0.0  ;;  %v1897_v30 = vpop.f32.mrf.mxu3  ;;  %v1807_v40 = vadd.f32 %v1737_v0, %v1651_v18  ;;  %v8566_v0 = vld [vmem:[#allocation26_spill] sm:$0xff] }
 0x288   : > { %v1653_v57 = vadd.f32 %v8566_v0, %v1494_v48  ;;  %v8571_v0 = vld [vmem:[#allocation35_spill] sm:$0xff] }
 0x289   : > { %2279 = vst [vmem:[#allocation2 + $0x99] sm:$0xff] %v2192_v47  ;;  %v2402_v43 = vpack.c.bf16 %v2192_v47, %v2191_v38  ;;  %v1967_v3 = vadd.f32 %v1897_v30, %v1807_v40  ;;  %v1987_v38 = vrot.slane %v7327_v46, 2  ;;  %v1989_v47 = vrot.slane %v405_v36, 2  ;;  %v8567_v40 = vld [vmem:[#allocation30_spill] sm:$0xff]  ;;  %v8568_v36 = vld [vmem:[#allocation29_spill] sm:$0xff] }
 0x28a   : > { %v2053_v19 = vpop.f32.mrf.mxu0 }
 0x28b   : > { %4996 = vmatmul.msk.f32.gmra.mxu2 %vm538_vm1, %v403_v32  ;;  %v2125_v21 = vadd.f32 %v2053_v19, %v1966_v37  ;;  %2515 = vmatmul.bf16.gmra.mxu1 %v2402_v43  ;;  %v1990_v43 = vsel %vm900_vm3, %v1987_v38, %v1989_v47 }
 0x28c   : > { %5030 = vmatmul.msk.f32.gmra.mxu3 %vm538_vm1, %v1829_v17  ;;  %v7376_v17 = vpop.f32.mrf.mxu1 }
 0x28d   : > { %v2161_v59 = vadd.f32 %v7156_v16, %v2125_v21  ;;  %5062 = vmatmul.msk.f32.gmra.mxu0 %vm538_vm1, %v6873_v52  ;;  %v1986_v52 = vrot.slane %v403_v32, 2  ;;  %v5738_v32 = vmov 0.0|0.0   ;;  %v2303_v21 = vld [vmem:[#allocation2 + $0x20] sm:$0xff] }
 0x28e   : > { %v1740_v4 = vpop.f32.mrf.mxu2 }
 0x28f   : > { %v2193_v63 = vmax.f32 %v2161_v59, 0.0  ;;  %v1900_v7 = vpop.f32.mrf.mxu3  ;;  %v1808_v29 = vadd.f32 %v1740_v4, %v6887_v54  ;;  %v1988_v61 = vsel %vm900_vm3, %v1986_v52, %v1987_v38  ;;  %v1496_v59 = vadd.f32 %v8568_v36, %v8567_v40 }
 0x291   : > { %2280 = vst [vmem:[#allocation2 + $0xa9] sm:$0xff] %v2193_v63  ;;  %v1968_v24 = vadd.f32 %v1900_v7, %v1808_v29  ;;  %v8569_v29 = vld [vmem:[#allocation31_spill] sm:$0xff] }
 0x292   : > { %v2056_v14 = vpop.f32.mrf.mxu0 }
 0x293   : > { %4997 = vmatmul.msk.f32.gmra.mxu2 %vm538_vm1, %v7327_v46  ;;  %v2126_v35 = vadd.f32 %v2056_v14, %v1967_v3  ;;  %v2735_v46 = vpack.c.bf16 %v2704_v11, %v2703_v5  ;;  %v2705_v14 = vld [vmem:[#allocation2 + $0x1a] sm:$0xff] }
 0x294   : > { %5031 = vmatmul.msk.f32.gmra.mxu3 %vm538_vm1, %v1831_v50  ;;  %v7382_v5 = vpop.f32.mrf.mxu1 }
 0x295   : > { %v2162_v23 = vadd.f32 %v7156_v16, %v2126_v35  ;;  %5063 = vmatmul.msk.f32.gmra.mxu0 %vm538_vm1, %v6896_v20  ;;  %v2706_v35 = vld [vmem:[#allocation2 + $0x22] sm:$0xff] }
 0x296   : > { %v1743_v26 = vpop.f32.mrf.mxu2  ;;  %v2736_v52 = vpack.c.bf16 %v2706_v35, %v2705_v14 }
 0x297   : > { %v2194_v6 = vmax.f32 %v2162_v23, 0.0  ;;  %v1903_v54 = vpop.f32.mrf.mxu3  ;;  %v1809_v22 = vadd.f32 %v1743_v26, %v1653_v57  ;;  %v1655_v23 = vadd.f32 %v8569_v29, %v1496_v59  ;;  %v8573_v29 = vld [vmem:[#allocation37_spill] sm:$0xff] }
 0x299   : > { %2281 = vst [vmem:[#allocation2 + $0xb1] sm:$0xff] %v2194_v6  ;;  %v2403_v62 = vpack.c.bf16 %v2194_v6, %v2193_v63  ;;  %v1969_v2 = vadd.f32 %v1903_v54, %v1809_v22  ;;  %v2302_v63 = vld [vmem:[#allocation2 + $0x18] sm:$0xff]  ;;  %v2304_v22 = vld [vmem:[#allocation2 + $0x30] sm:$0xff] }
 0x29a   : > { %v2059_v20 = vpop.f32.mrf.mxu0  ;;  %v2333_v33 = vpack.c.bf16 %v2303_v21, %v2302_v63 }
 0x29b   : > { %2622 = vmatmul.bf16.vlgmr.msrb.gmra.mxu2 %v5738_v32  ;;  %v2127_v60 = vadd.f32 %v2059_v20, %v1968_v24  ;;  %2520 = vmatmul.bf16.gmra.mxu1 %v2403_v62 }
 0x29c   : > { %2824 = vmatmul.bf16.vlgmr.msrb.gmra.mxu3 %v2735_v46  ;;  %v8570_v46 = vld [vmem:[#allocation33_spill] sm:$0xff] }
 0x29d   : > { %v2163_v58 = vadd.f32 %v7156_v16, %v2127_v60  ;;  %5064 = vmatmul.msk.f32.gmra.mxu0 %vm538_vm1, %v1988_v61  ;;  %v2305_v61 = vld [vmem:[#allocation2 + $0x38] sm:$0xff]  ;;  %v1498_v57 = vadd.f32 %v8571_v0, %v8570_v46 }
 0x29e   : > { %v1746_v55 = vpop.f32.mrf.mxu2 }
 0x29f   : > { %v2195_v56 = vmax.f32 %v2163_v58, 0.0  ;;  %v1906_v37 = vpop.f32.mrf.mxu3  ;;  %v1810_v19 = vadd.f32 %v1746_v55, %v6916_v15  ;;  %v2334_v58 = vpack.c.bf16 %v2305_v61, %v2304_v22 }
 0x2a1   : > { %2282 = vst [vmem:[#allocation2 + $0xc1] sm:$0xff] %v2195_v56  ;;  %v1970_v3 = vadd.f32 %v1906_v37, %v1810_v19  ;;  %v2708_v37 = vld [vmem:[#allocation2 + $0x3a] sm:$0xff] }
 0x2a2   : > { %v2062_v30 = vpop.f32.mrf.mxu0 }
 0x2a3   : > { %v2128_v49 = vadd.f32 %v2062_v30, %v1969_v2  ;;  %v2707_v2 = vld [vmem:[#allocation2 + $0x32] sm:$0xff] }
 0x2a5   : > { %v2164_v1 = vadd.f32 %v7156_v16, %v2128_v49  ;;  %5065 = vmatmul.msk.f32.gmra.mxu0 %vm538_vm1, %v1990_v43  ;;  %v8572_v49 = vld [vmem:[#allocation32_spill] sm:$0xff] }
 0x2a6   : > { %v1749_v18 = vpop.f32.mrf.mxu2  ;;  %v1657_v19 = vadd.f32 %v8572_v49, %v1498_v57  ;;  %v8576_v49 = vld [vmem:[#allocation10_spill] sm:$0xff] }
 0x2a7   : > { %v2196_v4 = vmax.f32 %v2164_v1, 0.0  ;;  %v1909_v7 = vpop.f32.mrf.mxu3  ;;  %v1811_v38 = vadd.f32 %v1749_v18, %v1655_v23  ;;  %v2737_v18 = vpack.c.bf16 %v2708_v37, %v2707_v2  ;;  %v8574_v23 = vld [vmem:[#allocation38_spill] sm:$0xff] }
 0x2a9   : > { %2283 = vst [vmem:[#allocation2 + $0xc9] sm:$0xff] %v2196_v4  ;;  %v2404_v15 = vpack.c.bf16 %v2196_v4, %v2195_v56  ;;  %v1971_v11 = vadd.f32 %v1909_v7, %v1811_v38  ;;  %v2306_v38 = vld [vmem:[#allocation2 + $0x48] sm:$0xff] }
 0x2aa   : > { %v2065_v50 = vpop.f32.mrf.mxu0 }
 0x2ab   : > { %2627 = vmatmul.bf16.gmra.mxu2 %v2333_v33  ;;  %v2129_v26 = vadd.f32 %v2065_v50, %v1970_v3  ;;  %2525 = vmatmul.bf16.gmra.mxu1 %v2404_v15  ;;  %v2307_v50 = vld [vmem:[#allocation2 + $0x50] sm:$0xff] }
 0x2ac   : > { %2829 = vmatmul.bf16.gmra.mxu3 %v2736_v52 }
 0x2ad   : > { %v2165_v10 = vadd.f32 %v7156_v16, %v2129_v26  ;;  %3058 = vmatmul.bf16.vlgmr.msrb.gmra.mxu0 %v2333_v33  ;;  %v1500_v26 = vadd.f32 %v8574_v23, %v8573_v29 }
 0x2ae   : > { %v1752_v48 = vpop.f32.mrf.mxu2 }
 0x2af   : > { %v2197_v6 = vmax.f32 %v2165_v10, 0.0  ;;  %v1912_v24 = vpop.f32.mrf.mxu3  ;;  %v1812_v51 = vadd.f32 %v1752_v48, %v6941_v53  ;;  %v5519_v53 = vld [vmem:[%s8328_s3 + $0x110] sm:$0xff]  ;;  %v2335_v10 = vpack.c.bf16 %v2307_v50, %v2306_v38 }
 0x2b0   : > { %3289 = vmatpush.bf16.msrb.mxu1 %v5519_v53 }
 0x2b1   : > { %2284 = vst [vmem:[#allocation2 + $0xd9] sm:$0xff] %v2197_v6  ;;  %v1972_v47 = vadd.f32 %v1912_v24, %v1812_v51  ;;  %v2709_v24 = vld [vmem:[#allocation2 + $0x4a] sm:$0xff] }
 0x2b2   : > { %v2068_v54 = vpop.f32.mrf.mxu0 }
 0x2b3   : > { %v2130_v62 = vadd.f32 %v2068_v54, %v1971_v11  ;;  %v2710_v54 = vld [vmem:[#allocation2 + $0x52] sm:$0xff] }
 0x2b4   : > { %v2738_v61 = vpack.c.bf16 %v2710_v54, %v2709_v24 }
 0x2b5   : > { %v2166_v20 = vadd.f32 %v7156_v16, %v2130_v62 }
 0x2b6   : > { %v1755_v32 = vpop.f32.mrf.mxu2 }
 0x2b7   : > { %v2198_v60 = vmax.f32 %v2166_v20, 0.0  ;;  %v1915_v56 = vpop.f32.mrf.mxu3  ;;  %v1813_v21 = vadd.f32 %v1755_v32, %v1657_v19  ;;  %v8577_v19 = vld [vmem:[#allocation40_spill] sm:$0xff] }
 0x2b8   : > { %v7388_v55 = vpop.f32.mrf.mxu1 }
 0x2b9   : > { %2285 = vst [vmem:[#allocation2 + $0xe1] sm:$0xff] %v2198_v60  ;;  %v2405_v30 = vpack.c.bf16 %v2198_v60, %v2197_v6  ;;  %v1973_v63 = vadd.f32 %v1915_v56, %v1813_v21  ;;  %v2308_v21 = vld [vmem:[#allocation2 + $0x60] sm:$0xff] }
 0x2ba   : > { %v2071_v43 = vpop.f32.mrf.mxu0 }
 0x2bb   : > { %2632 = vmatmul.bf16.gmra.mxu2 %v2334_v58  ;;  %v2131_v1 = vadd.f32 %v2071_v43, %v1972_v47  ;;  %2530 = vmatmul.bf16.gmra.mxu1 %v2405_v30  ;;  %v2309_v43 = vld [vmem:[#allocation2 + $0x68] sm:$0xff] }
 0x2bc   : > { %2834 = vmatmul.bf16.gmra.mxu3 %v2737_v18 }
 0x2bd   : > { %v2167_v40 = vadd.f32 %v7156_v16, %v2131_v1  ;;  %3063 = vmatmul.bf16.gmra.mxu0 %v2334_v58  ;;  %v1502_v1 = vadd.f32 %v8577_v19, %v8576_v49 }
 0x2be   : > { %v1758_v36 = vpop.f32.mrf.mxu2 }
 0x2bf   : > { %v2199_v59 = vmax.f32 %v2167_v40, 0.0  ;;  %v1918_v33 = vpop.f32.mrf.mxu3  ;;  %v1814_v14 = vadd.f32 %v1758_v36, %v6963_v31  ;;  %v8575_v31 = vld [vmem:[#allocation39_spill] sm:$0xff]  ;;  %v2336_v40 = vpack.c.bf16 %v2309_v43, %v2308_v21 }
 0x2c0   : > { %v7395_v4 = vpop.f32.mrf.mxu1  ;;  %v1659_v20 = vadd.f32 %v8575_v31, %v1500_v26 }
 0x2c1   : > { %2286 = vst [vmem:[#allocation2 + $0xf1] sm:$0xff] %v2199_v59  ;;  %v1974_v6 = vadd.f32 %v1918_v33, %v1814_v14  ;;  %v2711_v33 = vld [vmem:[#allocation2 + $0x62] sm:$0xff] }
 0x2c2   : > { %v2074_v3 = vpop.f32.mrf.mxu0 }
 0x2c3   : > { %v2132_v7 = vadd.f32 %v2074_v3, %v1973_v63  ;;  %v2712_v3 = vld [vmem:[#allocation2 + $0x6a] sm:$0xff] }
 0x2c4   : > { %v2739_v29 = vpack.c.bf16 %v2712_v3, %v2711_v33 }
 0x2c5   : > { %v2168_v35 = vadd.f32 %v7156_v16, %v2132_v7 }
 0x2c6   : > { %v1761_v15 = vpop.f32.mrf.mxu2 }
 0x2c7   : > { %v2200_v52 = vmax.f32 %v2168_v35, 0.0  ;;  %v1921_v11 = vpop.f32.mrf.mxu3  ;;  %v1815_v46 = vadd.f32 %v1761_v15, %v1659_v20  ;;  %v8578_v35 = vld [vmem:[#allocation41_spill] sm:$0xff]  ;;  %v2311_v20 = vld [vmem:[#allocation2 + $0x80] sm:$0xff] }
 0x2c8   : > { %v7401_v48 = vpop.f32.mrf.mxu1  ;;  %v1661_v15 = vadd.f32 %v8578_v35, %v1502_v1 }
 0x2c9   : > { %2287 = vst [vmem:[#allocation2 + $0xf9] sm:$0xff] %v2200_v52  ;;  %v2406_v62 = vpack.c.bf16 %v2200_v52, %v2199_v59  ;;  %v1975_v58 = vadd.f32 %v1921_v11, %v1815_v46 }
 0x2ca   : > { %v2077_v51 = vpop.f32.mrf.mxu0 }
 0x2cb   : > { %2637 = vmatmul.bf16.gmra.mxu2 %v2335_v10  ;;  %v2133_v32 = vadd.f32 %v2077_v51, %v1974_v6  ;;  %2535 = vmatmul.bf16.gmra.mxu1 %v2406_v62 }
 0x2cc   : > { %2839 = vmatmul.bf16.gmra.mxu3 %v2738_v61  ;;  %v8580_v61 = vld [vmem:[#allocation16_spill] sm:$0xff] }
 0x2cd   : > { %v2169_v0 = vadd.f32 %v7156_v16, %v2133_v32  ;;  %3068 = vmatmul.bf16.gmra.mxu0 %v2335_v10  ;;  %v8579_v32 = vld [vmem:[#allocation43_spill] sm:$0xff] }
 0x2ce   : > { %v1764_v57 = vpop.f32.mrf.mxu2  ;;  %v1504_v46 = vadd.f32 %v8580_v61, %v8579_v32 }
 0x2cf   : > { %v2201_v60 = vmax.f32 %v2169_v0, 0.0  ;;  %v1924_v47 = vpop.f32.mrf.mxu3  ;;  %v1816_v37 = vadd.f32 %v1764_v57, %v6988_v44  ;;  %v5518_v44 = vld [vmem:[%s8328_s3 + $0x108] sm:$0xff]  ;;  %v2310_v57 = vld [vmem:[#allocation2 + $0x78] sm:$0xff] }
 0x2d0   : > { %v7405_v22 = vpop.f32.mrf.mxu1  ;;  %3290 = vmatpush.bf16.msrb.mxu1 %v5518_v44 }
 0x2d1   : > { %2288 = vst [vmem:[#allocation2 + $0x109] sm:$0xff] %v2201_v60  ;;  %v1976_v59 = vadd.f32 %v1924_v47, %v1816_v37  ;;  %v2714_v37 = vld [vmem:[#allocation2 + $0x82] sm:$0xff] }
 0x2d2   : > { %v2080_v56 = vpop.f32.mrf.mxu0 }
 0x2d3   : > { %v2134_v2 = vadd.f32 %v2080_v56, %v1975_v58 }
 0x2d5   : > { %v2170_v30 = vadd.f32 %v7156_v16, %v2134_v2  ;;  %v2713_v2 = vld [vmem:[#allocation2 + $0x7a] sm:$0xff] }
 0x2d6   : > { %v1767_v53 = vpop.f32.mrf.mxu2  ;;  %v2740_v19 = vpack.c.bf16 %v2714_v37, %v2713_v2  ;;  %v2315_v37 = vld [vmem:[#allocation2 + $0xb0] sm:$0xff] }
 0x2d7   : > { %v2202_v18 = vmax.f32 %v2170_v30, 0.0  ;;  %v1927_v63 = vpop.f32.mrf.mxu3  ;;  %v1817_v23 = vadd.f32 %v1767_v53, %v1661_v15  ;;  %v2313_v15 = vld [vmem:[#allocation2 + $0x98] sm:$0xff] }
 0x2d8   : > { %v7411_v36 = vpop.f32.mrf.mxu1 }
 0x2d9   : > { %2289 = vst [vmem:[#allocation2 + $0x111] sm:$0xff] %v2202_v18  ;;  %v2407_v7 = vpack.c.bf16 %v2202_v18, %v2201_v60  ;;  %v1977_v6 = vadd.f32 %v1927_v63, %v1817_v23  ;;  %v2337_v60 = vpack.c.bf16 %v2311_v20, %v2310_v57  ;;  %v2312_v23 = vld [vmem:[#allocation2 + $0x90] sm:$0xff] }
 0x2da   : > { %v2083_v14 = vpop.f32.mrf.mxu0 }
 0x2db   : > { %2642 = vmatmul.bf16.gmra.mxu2 %v2336_v40  ;;  %v2135_v50 = vadd.f32 %v2083_v14, %v1976_v59  ;;  %2540 = vmatmul.bf16.gmra.mxu1 %v2407_v7 }
 0x2dc   : > { %2844 = vmatmul.bf16.gmra.mxu3 %v2739_v29 }
 0x2dd   : > { %v2171_v26 = vadd.f32 %v7156_v16, %v2135_v50  ;;  %3073 = vmatmul.bf16.gmra.mxu0 %v2336_v40  ;;  %v1506_v50 = vadd.f32 %v7052_v39, %v7031_v9 }
 0x2de   : > { %v1770_v52 = vpop.f32.mrf.mxu2 }
 0x2df   : > { %v2203_v38 = vmax.f32 %v2171_v26, 0.0  ;;  %v1930_v11 = vpop.f32.mrf.mxu3  ;;  %v1818_v62 = vadd.f32 %v1770_v52, %v7010_v12  ;;  %v8581_v12 = vld [vmem:[#allocation42_spill] sm:$0xff]  ;;  %v2338_v26 = vpack.c.bf16 %v2313_v15, %v2312_v23 }
 0x2e0   : > { %v7418_v10 = vpop.f32.mrf.mxu1  ;;  %v1663_v43 = vadd.f32 %v8581_v12, %v1504_v46  ;;  %v2314_v12 = vld [vmem:[#allocation2 + $0xa8] sm:$0xff] }
 0x2e1   : > { %2290 = vst [vmem:[#allocation2 + $0x121] sm:$0xff] %v2203_v38  ;;  %v1978_v47 = vadd.f32 %v1930_v11, %v1818_v62  ;;  %v2715_v11 = vld [vmem:[#allocation2 + $0x92] sm:$0xff] }
 0x2e2   : > { %v2086_v24 = vpop.f32.mrf.mxu0 }
 0x2e3   : > { %v2136_v54 = vadd.f32 %v2086_v24, %v1977_v6  ;;  %v2716_v24 = vld [vmem:[#allocation2 + $0x9a] sm:$0xff] }
 0x2e4   : > { %v2741_v39 = vpack.c.bf16 %v2716_v24, %v2715_v11  ;;  %v5556_v11 = vld [vmem:[%s8328_s3 + $0x238] sm:$0xff]  ;;  %v5639_v24 = vld [vmem:[%s8327_s2] ss:$0 sm:$0xff] }
 0x2e5   : > { %v2172_v51 = vadd.f32 %v7156_v16, %v2136_v54 }
 0x2e6   : > { %v1773_v31 = vpop.f32.mrf.mxu2 }
 0x2e7   : > { %v2204_v0 = vmax.f32 %v2172_v51, 0.0  ;;  %v1933_v56 = vpop.f32.mrf.mxu3  ;;  %v1819_v1 = vadd.f32 %v1773_v31, %v1663_v43  ;;  %v1665_v51 = vadd.f32 %v7047_v13, %v1506_v50  ;;  %v2339_v43 = vpack.c.bf16 %v2315_v37, %v2314_v12 }
 0x2e8   : > { %v7424_v58 = vpop.f32.mrf.mxu1 }
 0x2e9   : > { %2291 = vst [vmem:[#allocation2 + $0x129] sm:$0xff] %v2204_v0  ;;  %v2408_v30 = vpack.c.bf16 %v2204_v0, %v2203_v38  ;;  %v1979_v63 = vadd.f32 %v1933_v56, %v1819_v1 }
 0x2ea   : > { %v2089_v53 = vpop.f32.mrf.mxu0 }
 0x2eb   : > { %2647 = vmatmul.bf16.gmra.mxu2 %v2337_v60  ;;  %v2137_v49 = vadd.f32 %v2089_v53, %v1978_v47  ;;  %2545 = vmatmul.bf16.gmra.mxu1 %v2408_v30  ;;  %v1508_v30 = vadd.f32 %v7096_v42, %v7072_v25  ;;  %v5540_v25 = vld [vmem:[%s8328_s3 + $0x1b8] sm:$0xff] }
 0x2ec   : > { %2849 = vmatmul.bf16.gmra.mxu3 %v2740_v19  ;;  %v8582_v42 = vld [vmem:[#allocation45_spill] sm:$0xff] }
 0x2ed   : > { %v2173_v18 = vadd.f32 %v7156_v16, %v2137_v49  ;;  %3078 = vmatmul.bf16.gmra.mxu0 %v2337_v60  ;;  %3753 = vmatpush.bf16.msra.mxu3 %v5540_v25 }
 0x2ee   : > { %v1776_v21 = vpop.f32.mrf.mxu2 }
 0x2ef   : > { %v2205_v40 = vmax.f32 %v2173_v18, 0.0  ;;  %v1936_v33 = vpop.f32.mrf.mxu3  ;;  %v1820_v44 = vadd.f32 %v1776_v21, %v7038_v41  ;;  %v5517_v41 = vld [vmem:[%s8328_s3 + $0x100] sm:$0xff]  ;;  %v2717_v18 = vld [vmem:[#allocation2 + $0xaa] sm:$0xff]  ;;  %v2718_v21 = vld [vmem:[#allocation2 + $0xb2] sm:$0xff] }
 0x2f0   : > { %v7428_v59 = vpop.f32.mrf.mxu1  ;;  %3291 = vmatpush.bf16.msrb.mxu1 %v5517_v41 }
 0x2f1   : > { %2292 = vst [vmem:[#allocation2 + $0x139] sm:$0xff] %v2205_v40  ;;  %v1980_v38 = vadd.f32 %v1936_v33, %v1820_v44  ;;  %v1667_v33 = vadd.f32 %v8582_v42, %v1508_v30  ;;  %v2318_v42 = vld [vmem:[#allocation2 + $0xd8] sm:$0xff] }
 0x2f2   : > { %v2092_v3 = vpop.f32.mrf.mxu0 }
 0x2f3   : > { %v2138_v7 = vadd.f32 %v2092_v3, %v1979_v63 }
 0x2f4   : > { %4221 = vmatpush.bf16.msra.mxu1 %v5556_v11 }
 0x2f5   : > { %v2174_v14 = vadd.f32 %v7156_v16, %v2138_v7  ;;  %v2742_v7 = vpack.c.bf16 %v2718_v21, %v2717_v18 }
 0x2f6   : > { %v1779_v35 = vpop.f32.mrf.mxu2 }
 0x2f7   : > { %v2206_v29 = vmax.f32 %v2174_v14, 0.0  ;;  %v1939_v6 = vpop.f32.mrf.mxu3  ;;  %v1821_v31 = vadd.f32 %v1779_v35, %v1665_v51  ;;  %v1510_v51 = vadd.f32 %v7137_v8, %v7119_v28 }
 0x2f8   : > { %v7434_v52 = vpop.f32.mrf.mxu1 }
 0x2f9   : > { %2293 = vst [vmem:[#allocation2 + $0x141] sm:$0xff] %v2206_v29  ;;  %v2409_v54 = vpack.c.bf16 %v2206_v29, %v2205_v40  ;;  %v1981_v0 = vadd.f32 %v1939_v6, %v1821_v31 }
 0x2fa   : > { %v2095_v62 = vpop.f32.mrf.mxu0 }
 0x2fb   : > { %2652 = vmatmul.bf16.gmra.mxu2 %v2338_v26  ;;  %v2139_v9 = vadd.f32 %v2095_v62, %v1980_v38  ;;  %2550 = vmatmul.bf16.gmra.mxu1 %v2409_v54  ;;  %v5548_v38 = vld [vmem:[%s8328_s3 + $0x1f8] sm:$0xff]  ;;  %v2317_v62 = vld [vmem:[#allocation2 + $0xc8] sm:$0xff] }
 0x2fc   : > { %2854 = vmatmul.bf16.gmra.mxu3 %v2741_v39  ;;  %3987 = vmatpush.bf16.msra.mxu0 %v5548_v38  ;;  %v2316_v39 = vld [vmem:[#allocation2 + $0xc0] sm:$0xff] }
 0x2fd   : > { %v2175_v20 = vadd.f32 %v7156_v16, %v2139_v9  ;;  %3083 = vmatmul.bf16.gmra.mxu0 %v2338_v26  ;;  %v2340_v31 = vpack.c.bf16 %v2317_v62, %v2316_v39  ;;  %v5547_v62 = vld [vmem:[%s8328_s3 + $0x1f0] sm:$0xff] }
 0x2fe   : > { %v1782_v32 = vpop.f32.mrf.mxu2 }
 0x2ff   : > { %v2207_v61 = vmax.f32 %v2175_v20, 0.0  ;;  %v1942_v57 = vpop.f32.mrf.mxu3  ;;  %v1822_v13 = vadd.f32 %v1782_v32, %v7082_v45  ;;  %v5532_v45 = vld [vmem:[%s8328_s3 + $0x178] sm:$0xff] }
 0x300   : > { %v7441_v46 = vpop.f32.mrf.mxu1  ;;  %3518 = vmatpush.bf16.msra.mxu2 %v5532_v45  ;;  %3988 = vmatpush.bf16.msra.mxu0 %v5547_v62 }
 0x301   : > { %2294 = vst [vmem:[#allocation2 + $0x151] sm:$0xff] %v2207_v61  ;;  %v1982_v19 = vadd.f32 %v1942_v57, %v1822_v13 }
 0x302   : > { %v2098_v60 = vpop.f32.mrf.mxu0 }
 0x303   : > { %v2140_v47 = vadd.f32 %v2098_v60, %v1981_v0  ;;  %v2720_v0 = vld [vmem:[#allocation2 + $0xca] sm:$0xff] }
 0x305   : > { %v2176_v56 = vadd.f32 %v7156_v16, %v2140_v47  ;;  %v1669_v47 = vadd.f32 %v7370_v27, %v1510_v51 }
 0x306   : > { %v1785_v2 = vpop.f32.mrf.mxu2 }
 0x307   : > { %v2208_v53 = vmax.f32 %v2176_v56, 0.0  ;;  %v1945_v1 = vpop.f32.mrf.mxu3  ;;  %v1823_v44 = vadd.f32 %v1785_v2, %v1667_v33 }
 0x308   : > { %v7447_v49 = vpop.f32.mrf.mxu1 }
 0x309   : > { %2295 = vst [vmem:[#allocation2 + $0x159] sm:$0xff] %v2208_v53  ;;  %v2410_v40 = vpack.c.bf16 %v2208_v53, %v2207_v61  ;;  %v1983_v29 = vadd.f32 %v1945_v1, %v1823_v44 }
 0x30a   : > { %v2101_v63 = vpop.f32.mrf.mxu0 }
 0x30b   : > { %2657 = vmatmul.bf16.gmra.mxu2 %v2339_v43  ;;  %v2141_v3 = vadd.f32 %v2101_v63, %v1982_v19  ;;  %2555 = vmatmul.bf16.gmra.mxu1 %v2410_v40  ;;  %v2319_v40 = vld [vmem:[#allocation2 + $0xe0] sm:$0xff] }
 0x30c   : > { %2859 = vmatmul.bf16.gmra.mxu3 %v2742_v7  ;;  %v3172_v63 = vld [vmem:[#allocation2 + $0x21] sm:$0xff]  ;;  %v2341_v33 = vpack.c.bf16 %v2319_v40, %v2318_v42  ;;  %v3171_v7 = vld [vmem:[#allocation2 + $0x19] sm:$0xff]  ;;  %v3175_v42 = vld [vmem:[#allocation2 + $0x49] sm:$0xff] }
 0x30d   : > { %v2177_v14 = vadd.f32 %v7156_v16, %v2141_v3  ;;  %3088 = vmatmul.bf16.gmra.mxu0 %v2339_v43 }
 0x30e   : > { %v1788_v35 = vpop.f32.mrf.mxu2 }
 0x30f   : > { %v2209_v15 = vmax.f32 %v2177_v14, 0.0  ;;  %v1948_v23 = vpop.f32.mrf.mxu3  ;;  %v1824_v16 = vadd.f32 %v1788_v35, %v7126_v34  ;;  %v2719_v34 = vld [vmem:[#allocation2 + $0xc2] sm:$0xff]  ;;  %v2721_v14 = vld [vmem:[#allocation2 + $0xda] sm:$0xff] }
 0x310   : > { %v7457_v50 = vpop.f32.mrf.mxu1  ;;  %v2743_v56 = vpack.c.bf16 %v2720_v0, %v2719_v34  ;;  %v2722_v35 = vld [vmem:[#allocation2 + $0xe2] sm:$0xff] }
 0x311   : > { %2296 = vst [vmem:[#allocation2 + $0x169] sm:$0xff] %v2209_v15  ;;  %v1984_v32 = vadd.f32 %v1948_v23, %v1824_v16  ;;  %v5539_v23 = vld [vmem:[%s8328_s3 + $0x1b0] sm:$0xff]  ;;  %v2744_v38 = vpack.c.bf16 %v2722_v35, %v2721_v14 }
 0x312   : > { %v2104_v26 = vpop.f32.mrf.mxu0  ;;  %3754 = vmatpush.bf16.msra.mxu3 %v5539_v23 }
 0x313   : > { %v2142_v6 = vadd.f32 %v2104_v26, %v1983_v29 }
 0x315   : > { %v2178_v54 = vadd.f32 %v5639_v24, %v2142_v6 }
 0x316   : > { %v1791_v41 = vpop.f32.mrf.mxu2 }
 0x317   : > { %v2210_v9 = vmax.f32 %v2178_v54, 0.0  ;;  %v1951_v61 = vpop.f32.mrf.mxu3  ;;  %v1825_v2 = vadd.f32 %v1791_v41, %v1669_v47  ;;  %v2723_v47 = vld [vmem:[#allocation2 + $0xf2] sm:$0xff] }
 0x318   : > { %v7471_v20 = vpop.f32.mrf.mxu1 }
 0x319   : > { %2297 = vst [vmem:[#allocation2 + $0x171] sm:$0xff] %v2210_v9  ;;  %v2411_v57 = vpack.c.bf16 %v2210_v9, %v2209_v15  ;;  %v1985_v12 = vadd.f32 %v1951_v61, %v1825_v2  ;;  %v3203_v15 = vpack.c.bf16 %v3172_v63, %v3171_v7  ;;  %v5555_v9 = vld [vmem:[%s8328_s3 + $0x230] sm:$0xff]  ;;  %v5530_v63 = vld [vmem:[%s8328_s3 + $0x168] sm:$0xff] }
 0x31a   : > { %v2107_v60 = vpop.f32.mrf.mxu0  ;;  %4222 = vmatpush.bf16.msra.mxu1 %v5555_v9  ;;  %v2320_v61 = vld [vmem:[#allocation2 + $0xf0] sm:$0xff]  ;;  %v5554_v9 = vld [vmem:[%s8328_s3 + $0x228] sm:$0xff] }
 0x31b   : > { %2662 = vmatmul.bf16.gmra.mxu2 %v2340_v31  ;;  %v2143_v13 = vadd.f32 %v2107_v60, %v1984_v32  ;;  %2560 = vmatmul.bf16.gmra.mxu1 %v2411_v57  ;;  %v3174_v32 = vld [vmem:[#allocation2 + $0x39] sm:$0xff]  ;;  %v3173_v57 = vld [vmem:[#allocation2 + $0x31] sm:$0xff] }
 0x31c   : > { %2864 = vmatmul.bf16.gmra.mxu3 %v2743_v56  ;;  %v7502_v56 = vpack.c.bf16 %v3174_v32, %v3173_v57  ;;  %v2725_v7 = vld [vmem:[#allocation2 + $0x10a] sm:$0xff]  ;;  %v2324_v32 = vld [vmem:[#allocation2 + $0x120] sm:$0xff] }
 0x31d   : > { %v2179_v28 = vadd.f32 %v5639_v24, %v2143_v13  ;;  %3093 = vmatmul.bf16.gmra.mxu0 %v2340_v31  ;;  %v2321_v31 = vld [vmem:[#allocation2 + $0xf8] sm:$0xff]  ;;  %v3177_v57 = vld [vmem:[#allocation2 + $0x61] sm:$0xff] }
 0x31e   : > { %v2623_v8 = vpop.f32.mrf.mxu2  ;;  %v2342_v34 = vpack.c.bf16 %v2321_v31, %v2320_v61  ;;  %v2724_v13 = vld [vmem:[#allocation2 + $0xfa] sm:$0xff]  ;;  %v2325_v31 = vld [vmem:[#allocation2 + $0x128] sm:$0xff]  ;;  %4223 = vmatpush.bf16.msra.mxu1 %v5554_v9 }
 0x31f   : > { %v2624_v37 = vadd.f32 %v2623_v8, %v7376_v17  ;;  %v2211_v30 = vmax.f32 %v2179_v28, 0.0  ;;  %v2825_v43 = vpop.f32.mrf.mxu3  ;;  %v5531_v17 = vld [vmem:[%s8328_s3 + $0x170] sm:$0xff]  ;;  %v2344_v61 = vpack.c.bf16 %v2325_v31, %v2324_v32  ;;  %v5536_v9 = vld [vmem:[%s8328_s3 + $0x198] sm:$0xff] }
 0x320   : > { %v7475_v53 = vpop.f32.mrf.mxu1  ;;  %3519 = vmatpush.bf16.msra.mxu2 %v5531_v17  ;;  %v2322_v17 = vld [vmem:[#allocation2 + $0x108] sm:$0xff]  ;;  %v5527_v31 = vld [vmem:[%s8328_s3 + $0x150] sm:$0xff] }
 0x321   : > { %2298 = vst [vmem:[#allocation2 + $0x181] sm:$0xff] %v2211_v30  ;;  %v2905_v19 = vadd.f32 %v2825_v43, %v2624_v37  ;;  %v2745_v37 = vpack.c.bf16 %v2724_v13, %v2723_v47  ;;  %v2727_v47 = vld [vmem:[#allocation2 + $0x122] sm:$0xff]  ;;  %v2728_v13 = vld [vmem:[#allocation2 + $0x12a] sm:$0xff] }
 0x322   : > { %v2110_v1 = vpop.f32.mrf.mxu0  ;;  %v5535_v32 = vld [vmem:[%s8328_s3 + $0x190] sm:$0xff] }
 0x323   : > { %v2144_v18 = vadd.f32 %v2110_v1, %v1985_v12 }
 0x324   : > { %3520 = vmatpush.bf16.msra.mxu2 %v5530_v63  ;;  %v2327_v63 = vld [vmem:[#allocation2 + $0x140] sm:$0xff] }
 0x325   : > { %v2180_v27 = vadd.f32 %v5639_v24, %v2144_v18 }
 0x326   : > { %v2625_v21 = vpop.f32.mrf.mxu2 }
 0x327   : > { %v2626_v45 = vadd.f32 %v2625_v21, %v7382_v5  ;;  %v2212_v25 = vmax.f32 %v2180_v27, 0.0  ;;  %v2827_v44 = vpop.f32.mrf.mxu3  ;;  %v2323_v21 = vld [vmem:[#allocation2 + $0x110] sm:$0xff] }
 0x328   : > { %v7481_v3 = vpop.f32.mrf.mxu1 }
 0x329   : > { %2299 = vst [vmem:[#allocation2 + $0x189] sm:$0xff] %v2212_v25  ;;  %v2906_v29 = vadd.f32 %v2827_v44, %v2626_v45  ;;  %v3176_v45 = vld [vmem:[#allocation2 + $0x51] sm:$0xff]  ;;  %v2343_v25 = vpack.c.bf16 %v2323_v21, %v2322_v17 }
 0x32a   : > { %v3059_v5 = vpop.f32.mrf.mxu0  ;;  %v2726_v44 = vld [vmem:[#allocation2 + $0x112] sm:$0xff]  ;;  %v7518_v14 = vpack.c.bf16 %v3176_v45, %v3175_v42  ;;  %v5529_v42 = vld [vmem:[%s8328_s3 + $0x160] sm:$0xff] }
 0x32b   : > { %2667 = vmatmul.bf16.gmra.mxu2 %v2341_v33  ;;  %v7486_v26 = vadd.f32 %v3059_v5, %v2905_v19  ;;  %3292 = vmatmul.bf16.vlgmr.msrb.gmra.mxu1 %v3203_v15  ;;  %v2746_v5 = vpack.c.bf16 %v2726_v44, %v2725_v7  ;;  %v3179_v44 = vld [vmem:[#allocation2 + $0x79] sm:$0xff] }
 0x32c   : > { %2869 = vmatmul.bf16.gmra.mxu3 %v2744_v38  ;;  %3521 = vmatpush.bf16.msra.mxu2 %v5529_v42  ;;  %v2732_v42 = vld [vmem:[#allocation2 + $0x15a] sm:$0xff] }
 0x32d   : > { %3098 = vmatmul.bf16.gmra.mxu0 %v2341_v33 }
 0x32e   : > { %v2628_v6 = vpop.f32.mrf.mxu2 }
 0x32f   : > { %v2629_v11 = vadd.f32 %v2628_v6, %v7388_v55  ;;  %v2830_v24 = vpop.f32.mrf.mxu3 }
 0x330   : > { %v7489_v16 = vpop.f32.mrf.mxu1 }
 0x331   : > { %v2907_v54 = vadd.f32 %v2830_v24, %v2629_v11 }
 0x332   : > { %v3061_v41 = vpop.f32.mrf.mxu0 }
 0x333   : > { %v7494_v51 = vadd.f32 %v3061_v41, %v2906_v29  ;;  %v5546_v41 = vld [vmem:[%s8328_s3 + $0x1e8] sm:$0xff] }
 0x334   : > { %3989 = vmatpush.bf16.msra.mxu0 %v5546_v41 }
 0x336   : > { %v2630_v39 = vpop.f32.mrf.mxu2 }
 0x337   : > { %v2631_v55 = vadd.f32 %v2630_v39, %v7395_v4  ;;  %v2832_v60 = vpop.f32.mrf.mxu3 }
 0x338   : > { %v7500_v0 = vpop.f32.mrf.mxu1 }
 0x339   : > { %v2908_v2 = vadd.f32 %v2832_v60, %v2631_v55  ;;  %v3178_v55 = vld [vmem:[#allocation2 + $0x69] sm:$0xff] }
 0x33a   : > { %v3064_v28 = vpop.f32.mrf.mxu0 }
 0x33b   : > { %2672 = vmatmul.bf16.gmra.mxu2 %v2342_v34  ;;  %v7504_v8 = vadd.f32 %v3064_v28, %v2907_v54  ;;  %3297 = vmatmul.bf16.gmra.mxu1 %v7502_v56 }
 0x33c   : > { %2874 = vmatmul.bf16.gmra.mxu3 %v2745_v37 }
 0x33d   : > { %3103 = vmatmul.bf16.gmra.mxu0 %v2342_v34 }
 0x33e   : > { %v2633_v4 = vpop.f32.mrf.mxu2 }
 0x33f   : > { %v2634_v30 = vadd.f32 %v2633_v4, %v7401_v48  ;;  %v2835_v43 = vpop.f32.mrf.mxu3 }
 0x340   : > { %v7508_v12 = vpop.f32.mrf.mxu1 }
 0x341   : > { %v2909_v19 = vadd.f32 %v2835_v43, %v2634_v30  ;;  %v2747_v30 = vpack.c.bf16 %v2728_v13, %v2727_v47  ;;  %v5553_v13 = vld [vmem:[%s8328_s3 + $0x220] sm:$0xff] }
 0x342   : > { %v3066_v1 = vpop.f32.mrf.mxu0  ;;  %4224 = vmatpush.bf16.msra.mxu1 %v5553_v13  ;;  %v3183_v13 = vld [vmem:[#allocation2 + $0xa9] sm:$0xff] }
 0x343   : > { %v7510_v18 = vadd.f32 %v3066_v1, %v2908_v2  ;;  %v7540_v2 = vpack.c.bf16 %v3178_v55, %v3177_v57 }
 0x346   : > { %v2635_v27 = vpop.f32.mrf.mxu2 }
 0x347   : > { %v2636_v40 = vadd.f32 %v2635_v27, %v7405_v22  ;;  %v2837_v33 = vpop.f32.mrf.mxu3  ;;  %v5538_v22 = vld [vmem:[%s8328_s3 + $0x1a8] sm:$0xff] }
 0x348   : > { %v7516_v48 = vpop.f32.mrf.mxu1  ;;  %3755 = vmatpush.bf16.msra.mxu3 %v5538_v22  ;;  %v2730_v22 = vld [vmem:[#allocation2 + $0x142] sm:$0xff] }
 0x349   : > { %v2910_v35 = vadd.f32 %v2837_v33, %v2636_v40  ;;  %v2326_v33 = vld [vmem:[#allocation2 + $0x138] sm:$0xff] }
 0x34a   : > { %v3069_v15 = vpop.f32.mrf.mxu0  ;;  %v2345_v7 = vpack.c.bf16 %v2327_v63, %v2326_v33  ;;  %v3181_v63 = vld [vmem:[#allocation2 + $0x91] sm:$0xff] }
 0x34b   : > { %2677 = vmatmul.bf16.gmra.mxu2 %v2343_v25  ;;  %v7523_v29 = vadd.f32 %v3069_v15, %v2909_v19  ;;  %3302 = vmatmul.bf16.gmra.mxu1 %v7518_v14  ;;  %v2729_v15 = vld [vmem:[#allocation2 + $0x13a] sm:$0xff] }
 0x34c   : > { %2879 = vmatmul.bf16.gmra.mxu3 %v2746_v5 }
 0x34d   : > { %3108 = vmatmul.bf16.gmra.mxu0 %v2343_v25  ;;  %v3180_v25 = vld [vmem:[#allocation2 + $0x81] sm:$0xff] }
 0x34e   : > { %v2638_v23 = vpop.f32.mrf.mxu2  ;;  %v7556_v5 = vpack.c.bf16 %v3180_v25, %v3179_v44  ;;  %v2731_v25 = vld [vmem:[#allocation2 + $0x152] sm:$0xff] }
 0x34f   : > { %v2639_v38 = vadd.f32 %v2638_v23, %v7411_v36  ;;  %v2840_v11 = vpop.f32.mrf.mxu3 }
 0x350   : > { %v7527_v6 = vpop.f32.mrf.mxu1 }
 0x351   : > { %v2911_v24 = vadd.f32 %v2840_v11, %v2639_v38  ;;  %v5528_v11 = vld [vmem:[%s8328_s3 + $0x158] sm:$0xff] }
 0x352   : > { %v3071_v54 = vpop.f32.mrf.mxu0  ;;  %3522 = vmatpush.bf16.msra.mxu2 %v5528_v11 }
 0x353   : > { %v7532_v62 = vadd.f32 %v3071_v54, %v2910_v35  ;;  %v2748_v54 = vpack.c.bf16 %v2730_v22, %v2729_v15  ;;  %v2749_v15 = vpack.c.bf16 %v2732_v42, %v2731_v25 }
 0x356   : > { %v2640_v39 = vpop.f32.mrf.mxu2  ;;  %3523 = vmatpush.bf16.msra.mxu2 %v5527_v31 }
 0x357   : > { %v2641_v36 = vadd.f32 %v2640_v39, %v7418_v10  ;;  %v2842_v60 = vpop.f32.mrf.mxu3 }
 0x358   : > { %v7538_v34 = vpop.f32.mrf.mxu1 }
 0x359   : > { %v2912_v28 = vadd.f32 %v2842_v60, %v2641_v36  ;;  %v5526_v60 = vld [vmem:[%s8328_s3 + $0x148] sm:$0xff] }
 0x35a   : > { %v3074_v37 = vpop.f32.mrf.mxu0  ;;  %3524 = vmatpush.bf16.msra.mxu2 %v5526_v60 }
 0x35b   : > { %2682 = vmatmul.bf16.gmra.mxu2 %v2344_v61  ;;  %v7542_v4 = vadd.f32 %v3074_v37, %v2911_v24  ;;  %3307 = vmatmul.bf16.gmra.mxu1 %v7540_v2  ;;  %v2329_v37 = vld [vmem:[#allocation2 + $0x158] sm:$0xff] }
 0x35c   : > { %2884 = vmatmul.bf16.gmra.mxu3 %v2747_v30  ;;  %v5534_v30 = vld [vmem:[%s8328_s3 + $0x188] sm:$0xff] }
 0x35d   : > { %3113 = vmatmul.bf16.gmra.mxu0 %v2344_v61 }
 0x35e   : > { %v2643_v10 = vpop.f32.mrf.mxu2 }
 0x35f   : > { %v2644_v43 = vadd.f32 %v2643_v10, %v7424_v58  ;;  %v2845_v1 = vpop.f32.mrf.mxu3 }
 0x360   : > { %v7546_v19 = vpop.f32.mrf.mxu1 }
 0x361   : > { %v2913_v27 = vadd.f32 %v2845_v1, %v2644_v43  ;;  %v3182_v43 = vld [vmem:[#allocation2 + $0x99] sm:$0xff] }
 0x362   : > { %v3076_v21 = vpop.f32.mrf.mxu0  ;;  %v5525_v1 = vld [vmem:[%s8328_s3 + $0x140] sm:$0xff]  ;;  %v7599_v33 = vpack.c.bf16 %v3182_v43, %v3181_v63 }
 0x363   : > { %v7548_v40 = vadd.f32 %v3076_v21, %v2912_v28  ;;  %3525 = vmatpush.bf16.msra.mxu2 %v5525_v1 }
 0x366   : > { %v2645_v45 = vpop.f32.mrf.mxu2 }
 0x367   : > { %v2646_v17 = vadd.f32 %v2645_v45, %v7428_v59  ;;  %v2847_v35 = vpop.f32.mrf.mxu3  ;;  %v5537_v59 = vld [vmem:[%s8328_s3 + $0x1a0] sm:$0xff] }
 0x368   : > { %v7554_v58 = vpop.f32.mrf.mxu1  ;;  %3756 = vmatpush.bf16.msra.mxu3 %v5537_v59  ;;  %v5544_v59 = vld [vmem:[%s8328_s3 + $0x1d8] sm:$0xff] }
 0x369   : > { %v2914_v23 = vadd.f32 %v2847_v35, %v2646_v17 }
 0x36a   : > { %v3079_v38 = vpop.f32.mrf.mxu0 }
 0x36b   : > { %2687 = vmatmul.bf16.gmra.mxu2 %v2345_v7  ;;  %v7564_v24 = vadd.f32 %v3079_v38, %v2913_v27  ;;  %3312 = vmatmul.bf16.gmra.mxu1 %v7556_v5  ;;  %v2328_v27 = vld [vmem:[#allocation2 + $0x150] sm:$0xff] }
 0x36c   : > { %2889 = vmatmul.bf16.gmra.mxu3 %v2748_v54  ;;  %v2346_v21 = vpack.c.bf16 %v2329_v37, %v2328_v27  ;;  %v5543_v54 = vld [vmem:[%s8328_s3 + $0x1d0] sm:$0xff]  ;;  %v5541_v27 = vld [vmem:[%s8328_s3 + $0x1c0] sm:$0xff] }
 0x36d   : > { %3118 = vmatmul.bf16.gmra.mxu0 %v2345_v7  ;;  %3757 = vmatpush.bf16.msra.mxu3 %v5536_v9  ;;  %v2733_v37 = vld [vmem:[#allocation2 + $0x16a] sm:$0xff] }
 0x36e   : > { %v2648_v41 = vpop.f32.mrf.mxu2 }
 0x36f   : > { %v2649_v39 = vadd.f32 %v2648_v41, %v7434_v52  ;;  %v2850_v55 = vpop.f32.mrf.mxu3  ;;  %v5545_v52 = vld [vmem:[%s8328_s3 + $0x1e0] sm:$0xff] }
 0x370   : > { %v7574_v36 = vpop.f32.mrf.mxu1  ;;  %3990 = vmatpush.bf16.msra.mxu0 %v5545_v52 }
 0x371   : > { %v2915_v61 = vadd.f32 %v2850_v55, %v2649_v39  ;;  %3758 = vmatpush.bf16.msra.mxu3 %v5535_v32  ;;  %v2331_v55 = vld [vmem:[#allocation2 + $0x170] sm:$0xff] }
 0x372   : > { %v3081_v57 = vpop.f32.mrf.mxu0 }
 0x373   : > { %v7585_v47 = vadd.f32 %v3081_v57, %v2914_v23  ;;  %v2330_v57 = vld [vmem:[#allocation2 + $0x168] sm:$0xff] }
 0x374   : > { %3991 = vmatpush.bf16.msra.mxu0 %v5544_v59  ;;  %v2347_v52 = vpack.c.bf16 %v2331_v55, %v2330_v57  ;;  %v3405_v59 = vld [vmem:[#allocation2 + $0x1a] sm:$0xff] }
 0x375   : > { %3759 = vmatpush.bf16.msra.mxu3 %v5534_v30  ;;  %v2734_v30 = vld [vmem:[#allocation2 + $0x172] sm:$0xff] }
 0x376   : > { %v2650_v28 = vpop.f32.mrf.mxu2 }
 0x377   : > { %v2651_v10 = vadd.f32 %v2650_v28, %v7441_v46  ;;  %v2852_v17 = vpop.f32.mrf.mxu3  ;;  %v5533_v46 = vld [vmem:[%s8328_s3 + $0x180] sm:$0xff] }
 0x378   : > { %v7597_v45 = vpop.f32.mrf.mxu1  ;;  %3992 = vmatpush.bf16.msra.mxu0 %v5543_v54  ;;  %v3186_v54 = vld [vmem:[#allocation2 + $0xc9] sm:$0xff] }
 0x379   : > { %v2916_v7 = vadd.f32 %v2852_v17, %v2651_v10  ;;  %3760 = vmatpush.bf16.msra.mxu3 %v5533_v46 }
 0x37a   : > { %v3084_v44 = vpop.f32.mrf.mxu0 }
 0x37b   : > { %2692 = vmatmul.bf16.gmra.mxu2 %v2346_v21  ;;  %v7604_v35 = vadd.f32 %v3084_v44, %v2915_v61  ;;  %3317 = vmatmul.bf16.gmra.mxu1 %v7599_v33  ;;  %v3184_v61 = vld [vmem:[#allocation2 + $0xb1] sm:$0xff] }
 0x37c   : > { %2894 = vmatmul.bf16.gmra.mxu3 %v2749_v15  ;;  %v7624_v10 = vpack.c.bf16 %v3184_v61, %v3183_v13  ;;  %v5552_v15 = vld [vmem:[%s8328_s3 + $0x218] sm:$0xff] }
 0x37d   : > { %3123 = vmatmul.bf16.gmra.mxu0 %v2346_v21  ;;  %v2750_v21 = vpack.c.bf16 %v2734_v30, %v2733_v37  ;;  %4225 = vmatpush.bf16.msra.mxu1 %v5552_v15  ;;  %v3640_v37 = vld [vmem:[#allocation2 + $0x30] sm:$0xff] }
 0x37e   : > { %v2653_v22 = vpop.f32.mrf.mxu2 }
 0x37f   : > { %v2654_v23 = vadd.f32 %v2653_v22, %v7447_v49  ;;  %v2855_v11 = vpop.f32.mrf.mxu3  ;;  %v5542_v49 = vld [vmem:[%s8328_s3 + $0x1c8] sm:$0xff] }
 0x380   : > { %v7611_v38 = vpop.f32.mrf.mxu1  ;;  %3993 = vmatpush.bf16.msra.mxu0 %v5542_v49  ;;  %v3641_v49 = vld [vmem:[#allocation2 + $0x38] sm:$0xff] }
 0x381   : > { %v2917_v41 = vadd.f32 %v2855_v11, %v2654_v23  ;;  %v3406_v23 = vld [vmem:[#allocation2 + $0x22] sm:$0xff] }
 0x382   : > { %v3086_v9 = vpop.f32.mrf.mxu0 }
 0x383   : > { %v7616_v39 = vadd.f32 %v3086_v9, %v2916_v7 }
 0x384   : > { %3994 = vmatpush.bf16.msra.mxu0 %v5541_v27 }
 0x386   : > { %v2655_v31 = vpop.f32.mrf.mxu2 }
 0x387   : > { %v2656_v32 = vadd.f32 %v2655_v31, %v7457_v50  ;;  %v2857_v28 = vpop.f32.mrf.mxu3  ;;  %v3185_v31 = vld [vmem:[#allocation2 + $0xc1] sm:$0xff] }
 0x388   : > { %v7622_v60 = vpop.f32.mrf.mxu1 }
 0x389   : > { %v2918_v43 = vadd.f32 %v2857_v28, %v2656_v32  ;;  %v7643_v32 = vpack.c.bf16 %v3186_v54, %v3185_v31 }
 0x38a   : > { %v3089_v1 = vpop.f32.mrf.mxu0 }
 0x38b   : > { %2697 = vmatmul.bf16.gmra.mxu2 %v2347_v52  ;;  %v7629_v50 = vadd.f32 %v3089_v1, %v2917_v41  ;;  %3322 = vmatmul.bf16.gmra.mxu1 %v7624_v10  ;;  %v2968_v41 = vld [vmem:[#allocation2 + $0x188] sm:$0xff] }
 0x38c   : > { %2899 = vmatmul.bf16.gmra.mxu3 %v2750_v21 }
 0x38d   : > { %3128 = vmatmul.bf16.gmra.mxu0 %v2347_v52  ;;  %v2967_v52 = vld [vmem:[#allocation2 + $0x180] sm:$0xff] }
 0x38e   : > { %v2658_v63 = vpop.f32.mrf.mxu2  ;;  %v7647_v28 = vpack.c.bf16 %v2968_v41, %v2967_v52 }
 0x38f   : > { %v2659_v17 = vadd.f32 %v2658_v63, %v7471_v20  ;;  %v2860_v42 = vpop.f32.mrf.mxu3  ;;  %v3437_v20 = vpack.c.bf16 %v3406_v23, %v3405_v59 }
 0x390   : > { %v7633_v25 = vpop.f32.mrf.mxu1 }
 0x391   : > { %v2919_v46 = vadd.f32 %v2860_v42, %v2659_v17 }
 0x392   : > { %v3091_v7 = vpop.f32.mrf.mxu0 }
 0x393   : > { %v7635_v44 = vadd.f32 %v3091_v7, %v2918_v43  ;;  %v3408_v7 = vld [vmem:[#allocation2 + $0x3a] sm:$0xff] }
 0x396   : > { %v2660_v22 = vpop.f32.mrf.mxu2 }
 0x397   : > { %v2661_v11 = vadd.f32 %v2660_v22, %v7475_v53  ;;  %v2862_v55 = vpop.f32.mrf.mxu3  ;;  %v3672_v53 = vpack.c.bf16 %v3641_v49, %v3640_v37  ;;  %v3188_v22 = vld [vmem:[#allocation2 + $0xe1] sm:$0xff] }
 0x398   : > { %v7641_v9 = vpop.f32.mrf.mxu1 }
 0x399   : > { %v2920_v61 = vadd.f32 %v2862_v55, %v2661_v11  ;;  %v3187_v11 = vld [vmem:[#allocation2 + $0xd9] sm:$0xff] }
 0x39a   : > { %v3094_v57 = vpop.f32.mrf.mxu0  ;;  %v7662_v41 = vpack.c.bf16 %v3188_v22, %v3187_v11 }
 0x39b   : > { %3526 = vmatmul.bf16.vlgmr.msra.gmra.mxu2 %v3437_v20  ;;  %v7645_v13 = vadd.f32 %v3094_v57, %v2919_v46  ;;  %3327 = vmatmul.bf16.gmra.mxu1 %v7643_v32  ;;  %v3407_v46 = vld [vmem:[#allocation2 + $0x32] sm:$0xff] }
 0x39c   : > { %3761 = vmatmul.bf16.vlgmr.msra.gmra.mxu3 %v3672_v53  ;;  %v7657_v59 = vpack.c.bf16 %v3408_v7, %v3407_v46  ;;  %v3410_v46 = vld [vmem:[#allocation2 + $0x52] sm:$0xff] }
 0x39d   : > { %3133 = vmatmul.bf16.gmra.mxu0 %v7647_v28 }
 0x39e   : > { %v2663_v30 = vpop.f32.mrf.mxu2 }
 0x39f   : > { %v2664_v43 = vadd.f32 %v2663_v30, %v7481_v3  ;;  %v2865_v27 = vpop.f32.mrf.mxu3  ;;  %v3643_v3 = vld [vmem:[#allocation2 + $0x50] sm:$0xff] }
 0x3a0   : > { %v7652_v1 = vpop.f32.mrf.mxu1 }
 0x3a1   : > { %v2921_v21 = vadd.f32 %v2865_v27, %v2664_v43 }
 0x3a2   : > { %v3096_v63 = vpop.f32.mrf.mxu0 }
 0x3a3   : > { %v7654_v17 = vadd.f32 %v3096_v63, %v2920_v61  ;;  %v3642_v61 = vld [vmem:[#allocation2 + $0x48] sm:$0xff] }
 0x3a6   : > { %v2665_v42 = vpop.f32.mrf.mxu2 }
 0x3a7   : > { %v2666_v15 = vadd.f32 %v2665_v42, %v7489_v16  ;;  %v2867_v54 = vpop.f32.mrf.mxu3  ;;  %v3673_v16 = vpack.c.bf16 %v3643_v3, %v3642_v61  ;;  %v3409_v42 = vld [vmem:[#allocation2 + $0x4a] sm:$0xff]  ;;  %v3644_v61 = vld [vmem:[#allocation2 + $0x60] sm:$0xff] }
 0x3a8   : > { %v3293_v23 = vpop.f32.mrf.mxu1  ;;  %v7679_v7 = vpack.c.bf16 %v3410_v46, %v3409_v42  ;;  %v3412_v42 = vld [vmem:[#allocation2 + $0x6a] sm:$0xff] }
 0x3a9   : > { %v7660_v20 = vadd.f32 %v3293_v23, %v7486_v26  ;;  %v2922_v31 = vadd.f32 %v2867_v54, %v2666_v15  ;;  %v3645_v23 = vld [vmem:[#allocation2 + $0x68] sm:$0xff] }
 0x3aa   : > { %v3099_v55 = vpop.f32.mrf.mxu0 }
 0x3ab   : > { %3531 = vmatmul.bf16.gmra.mxu2 %v7657_v59  ;;  %v7665_v49 = vadd.f32 %v3099_v55, %v2921_v21  ;;  %3332 = vmatmul.bf16.gmra.mxu1 %v7662_v41  ;;  %v5551_v21 = vld [vmem:[%s8328_s3 + $0x210] sm:$0xff] }
 0x3ac   : > { %3766 = vmatmul.bf16.gmra.mxu3 %v3673_v16  ;;  %4226 = vmatpush.bf16.msra.mxu1 %v5551_v21 }
 0x3ad   : > { %3995 = vmatmul.bf16.vlgmr.msra.gmra.mxu0 %v7502_v56  ;;  %v3190_v56 = vld [vmem:[#allocation2 + $0xf9] sm:$0xff] }
 0x3ae   : > { %v2668_v57 = vpop.f32.mrf.mxu2 }
 0x3af   : > { %v2669_v52 = vadd.f32 %v2668_v57, %v7500_v0  ;;  %v2870_v37 = vpop.f32.mrf.mxu3 }
 0x3b0   : > { %v3295_v26 = vpop.f32.mrf.mxu1 }
 0x3b1   : > { %v7671_v53 = vadd.f32 %v3295_v26, %v7494_v51  ;;  %v2923_v30 = vadd.f32 %v2870_v37, %v2669_v52  ;;  %v3189_v51 = vld [vmem:[#allocation2 + $0xf1] sm:$0xff] }
 0x3b2   : > { %v3101_v43 = vpop.f32.mrf.mxu0  ;;  %v7684_v54 = vpack.c.bf16 %v3190_v56, %v3189_v51  ;;  %v3647_v51 = vld [vmem:[#allocation2 + $0x80] sm:$0xff] }
 0x3b3   : > { %v7673_v27 = vadd.f32 %v3101_v43, %v2922_v31 }
 0x3b6   : > { %v2670_v63 = vpop.f32.mrf.mxu2 }
 0x3b7   : > { %v2671_v0 = vadd.f32 %v2670_v63, %v7508_v12  ;;  %v2872_v22 = vpop.f32.mrf.mxu3  ;;  %v3674_v12 = vpack.c.bf16 %v3645_v23, %v3644_v61  ;;  %v3411_v63 = vld [vmem:[#allocation2 + $0x62] sm:$0xff]  ;;  %v3646_v61 = vld [vmem:[#allocation2 + $0x78] sm:$0xff] }
 0x3b8   : > { %v3298_v15 = vpop.f32.mrf.mxu1  ;;  %v7698_v56 = vpack.c.bf16 %v3412_v42, %v3411_v63  ;;  %v3413_v42 = vld [vmem:[#allocation2 + $0x7a] sm:$0xff] }
 0x3b9   : > { %v7682_v11 = vadd.f32 %v3298_v15, %v7504_v8  ;;  %v2924_v3 = vadd.f32 %v2872_v22, %v2671_v0  ;;  %v3192_v0 = vld [vmem:[#allocation2 + $0x111] sm:$0xff] }
 0x3ba   : > { %v3104_v31 = vpop.f32.mrf.mxu0 }
 0x3bb   : > { %3536 = vmatmul.bf16.gmra.mxu2 %v7679_v7  ;;  %v7687_v55 = vadd.f32 %v3104_v31, %v2923_v30  ;;  %3337 = vmatmul.bf16.gmra.mxu1 %v7684_v54 }
 0x3bc   : > { %3771 = vmatmul.bf16.gmra.mxu3 %v3674_v12 }
 0x3bd   : > { %4000 = vmatmul.bf16.gmra.mxu0 %v7518_v14 }
 0x3be   : > { %v2673_v16 = vpop.f32.mrf.mxu2 }
 0x3bf   : > { %v2674_v57 = vadd.f32 %v2673_v16, %v7516_v48  ;;  %v2875_v52 = vpop.f32.mrf.mxu3  ;;  %v3191_v48 = vld [vmem:[#allocation2 + $0x109] sm:$0xff] }
 0x3c0   : > { %v3300_v8 = vpop.f32.mrf.mxu1 }
 0x3c1   : > { %v7693_v26 = vadd.f32 %v3300_v8, %v7510_v18  ;;  %v2925_v37 = vadd.f32 %v2875_v52, %v2674_v57  ;;  %v7703_v18 = vpack.c.bf16 %v3192_v0, %v3191_v48 }
 0x3c2   : > { %v3106_v43 = vpop.f32.mrf.mxu0 }
 0x3c3   : > { %v7695_v21 = vadd.f32 %v3106_v43, %v2924_v3 }
 0x3c6   : > { %v2675_v30 = vpop.f32.mrf.mxu2 }
 0x3c7   : > { %v2676_v46 = vadd.f32 %v2675_v30, %v7527_v6  ;;  %v2877_v15 = vpop.f32.mrf.mxu3  ;;  %v3675_v6 = vpack.c.bf16 %v3647_v51, %v3646_v61 }
 0x3c8   : > { %v3303_v14 = vpop.f32.mrf.mxu1 }
 0x3c9   : > { %v7701_v22 = vadd.f32 %v3303_v14, %v7523_v29  ;;  %v2926_v23 = vadd.f32 %v2877_v15, %v2676_v46  ;;  %v3414_v46 = vld [vmem:[#allocation2 + $0x82] sm:$0xff]  ;;  %v3649_v15 = vld [vmem:[#allocation2 + $0x98] sm:$0xff] }
 0x3ca   : > { %v3109_v3 = vpop.f32.mrf.mxu0  ;;  %v7720_v0 = vpack.c.bf16 %v3414_v46, %v3413_v42  ;;  %v3415_v46 = vld [vmem:[#allocation2 + $0x92] sm:$0xff] }
 0x3cb   : > { %3541 = vmatmul.bf16.gmra.mxu2 %v7698_v56  ;;  %v7706_v31 = vadd.f32 %v3109_v3, %v2925_v37  ;;  %3342 = vmatmul.bf16.gmra.mxu1 %v7703_v18  ;;  %v5550_v37 = vld [vmem:[%s8328_s3 + $0x208] sm:$0xff] }
 0x3cc   : > { %3776 = vmatmul.bf16.gmra.mxu3 %v3675_v6  ;;  %4227 = vmatpush.bf16.msra.mxu1 %v5550_v37 }
 0x3cd   : > { %4005 = vmatmul.bf16.gmra.mxu0 %v7540_v2  ;;  %v3194_v2 = vld [vmem:[#allocation2 + $0x129] sm:$0xff] }
 0x3ce   : > { %v2678_v12 = vpop.f32.mrf.mxu2 }
 0x3cf   : > { %v2679_v16 = vadd.f32 %v2678_v12, %v7538_v34  ;;  %v2880_v57 = vpop.f32.mrf.mxu3  ;;  %v3648_v12 = vld [vmem:[#allocation2 + $0x90] sm:$0xff] }
 0x3d0   : > { %v3305_v29 = vpop.f32.mrf.mxu1 }
 0x3d1   : > { %v7712_v8 = vadd.f32 %v3305_v29, %v7532_v62  ;;  %v2927_v52 = vadd.f32 %v2880_v57, %v2679_v16  ;;  %v3193_v62 = vld [vmem:[#allocation2 + $0x121] sm:$0xff] }
 0x3d2   : > { %v3111_v43 = vpop.f32.mrf.mxu0 }
 0x3d3   : > { %v7714_v30 = vadd.f32 %v3111_v43, %v2926_v23  ;;  %v7725_v23 = vpack.c.bf16 %v3194_v2, %v3193_v62 }
 0x3d6   : > { %v2680_v63 = vpop.f32.mrf.mxu2 }
 0x3d7   : > { %v2681_v34 = vadd.f32 %v2680_v63, %v7546_v19  ;;  %v2882_v48 = vpop.f32.mrf.mxu3  ;;  %v3676_v19 = vpack.c.bf16 %v3649_v15, %v3648_v12  ;;  %v3651_v15 = vld [vmem:[#allocation2 + $0xb0] sm:$0xff] }
 0x3d8   : > { %v3308_v14 = vpop.f32.mrf.mxu1 }
 0x3d9   : > { %v7723_v51 = vadd.f32 %v3308_v14, %v7542_v4  ;;  %v2928_v3 = vadd.f32 %v2882_v48, %v2681_v34  ;;  %v3416_v34 = vld [vmem:[#allocation2 + $0x9a] sm:$0xff] }
 0x3da   : > { %v3114_v61 = vpop.f32.mrf.mxu0  ;;  %v3196_v14 = vld [vmem:[#allocation2 + $0x141] sm:$0xff]  ;;  %v7739_v62 = vpack.c.bf16 %v3416_v34, %v3415_v46 }
 0x3db   : > { %3546 = vmatmul.bf16.gmra.mxu2 %v7720_v0  ;;  %v7728_v6 = vadd.f32 %v3114_v61, %v2927_v52  ;;  %3347 = vmatmul.bf16.gmra.mxu1 %v7725_v23 }
 0x3dc   : > { %3781 = vmatmul.bf16.gmra.mxu3 %v3676_v19 }
 0x3dd   : > { %4010 = vmatmul.bf16.gmra.mxu0 %v7556_v5 }
 0x3de   : > { %v2683_v16 = vpop.f32.mrf.mxu2 }
 0x3df   : > { %v2684_v29 = vadd.f32 %v2683_v16, %v7554_v58  ;;  %v2885_v57 = vpop.f32.mrf.mxu3  ;;  %v3195_v58 = vld [vmem:[#allocation2 + $0x139] sm:$0xff]  ;;  %v3650_v16 = vld [vmem:[#allocation2 + $0xa8] sm:$0xff] }
 0x3e0   : > { %v3310_v4 = vpop.f32.mrf.mxu1 }
 0x3e1   : > { %v7734_v43 = vadd.f32 %v3310_v4, %v7548_v40  ;;  %v2929_v37 = vadd.f32 %v2885_v57, %v2684_v29  ;;  %v7744_v40 = vpack.c.bf16 %v3196_v14, %v3195_v58  ;;  %v3417_v14 = vld [vmem:[#allocation2 + $0xaa] sm:$0xff] }
 0x3e2   : > { %v3116_v63 = vpop.f32.mrf.mxu0 }
 0x3e3   : > { %v7736_v42 = vadd.f32 %v3116_v63, %v2928_v3 }
 0x3e6   : > { %v2685_v52 = vpop.f32.mrf.mxu2 }
 0x3e7   : > { %v2686_v2 = vadd.f32 %v2685_v52, %v7574_v36  ;;  %v2887_v48 = vpop.f32.mrf.mxu3  ;;  %v3677_v36 = vpack.c.bf16 %v3651_v15, %v3650_v16 }
 0x3e8   : > { %v3313_v5 = vpop.f32.mrf.mxu1 }
 0x3e9   : > { %v7742_v61 = vadd.f32 %v3313_v5, %v7564_v24  ;;  %v2930_v12 = vadd.f32 %v2887_v48, %v2686_v2  ;;  %v3418_v5 = vld [vmem:[#allocation2 + $0xb2] sm:$0xff] }
 0x3ea   : > { %v3119_v3 = vpop.f32.mrf.mxu0  ;;  %v7761_v58 = vpack.c.bf16 %v3418_v5, %v3417_v14 }
 0x3eb   : > { %3551 = vmatmul.bf16.gmra.mxu2 %v7739_v62  ;;  %v7747_v19 = vadd.f32 %v3119_v3, %v2929_v37  ;;  %3352 = vmatmul.bf16.gmra.mxu1 %v7744_v40  ;;  %v5549_v37 = vld [vmem:[%s8328_s3 + $0x200] sm:$0xff]  ;;  %v3653_v3 = vld [vmem:[#allocation2 + $0xc8] sm:$0xff] }
 0x3ec   : > { %3786 = vmatmul.bf16.gmra.mxu3 %v3677_v36  ;;  %4228 = vmatpush.bf16.msra.mxu1 %v5549_v37 }
 0x3ed   : > { %4015 = vmatmul.bf16.gmra.mxu0 %v7599_v33  ;;  %v3198_v33 = vld [vmem:[#allocation2 + $0x159] sm:$0xff] }
 0x3ee   : > { %v2688_v29 = vpop.f32.mrf.mxu2 }
 0x3ef   : > { %v2689_v4 = vadd.f32 %v2688_v29, %v7597_v45  ;;  %v2890_v57 = vpop.f32.mrf.mxu3 }
 0x3f0   : > { %v3315_v24 = vpop.f32.mrf.mxu1 }
 0x3f1   : > { %v7753_v63 = vadd.f32 %v3315_v24, %v7585_v47  ;;  %v2931_v52 = vadd.f32 %v2890_v57, %v2689_v4  ;;  %v3197_v47 = vld [vmem:[#allocation2 + $0x151] sm:$0xff]  ;;  %v3652_v24 = vld [vmem:[#allocation2 + $0xc0] sm:$0xff] }
 0x3f2   : > { %v3121_v46 = vpop.f32.mrf.mxu0  ;;  %v7766_v16 = vpack.c.bf16 %v3198_v33, %v3197_v47  ;;  %v3419_v33 = vld [vmem:[#allocation2 + $0xc2] sm:$0xff] }
 0x3f3   : > { %v7755_v34 = vadd.f32 %v3121_v46, %v2930_v12 }
 0x3f6   : > { %v2690_v2 = vpop.f32.mrf.mxu2 }
 0x3f7   : > { %v2691_v45 = vadd.f32 %v2690_v2, %v7611_v38  ;;  %v2892_v15 = vpop.f32.mrf.mxu3  ;;  %v3678_v38 = vpack.c.bf16 %v3653_v3, %v3652_v24  ;;  %v3655_v24 = vld [vmem:[#allocation2 + $0xe0] sm:$0xff] }
 0x3f8   : > { %v3318_v48 = vpop.f32.mrf.mxu1 }
 0x3f9   : > { %v7764_v12 = vadd.f32 %v3318_v48, %v7604_v35  ;;  %v2932_v36 = vadd.f32 %v2892_v15, %v2691_v45  ;;  %v3420_v48 = vld [vmem:[#allocation2 + $0xca] sm:$0xff] }
 0x3fa   : > { %v3124_v29 = vpop.f32.mrf.mxu0  ;;  %v3200_v15 = vld [vmem:[#allocation2 + $0x171] sm:$0xff]  ;;  %v7780_v3 = vpack.c.bf16 %v3420_v48, %v3419_v33 }
 0x3fb   : > { %3556 = vmatmul.bf16.gmra.mxu2 %v7761_v58  ;;  %v7769_v4 = vadd.f32 %v3124_v29, %v2931_v52  ;;  %3357 = vmatmul.bf16.gmra.mxu1 %v7766_v16 }
 0x3fc   : > { %3791 = vmatmul.bf16.gmra.mxu3 %v3678_v38 }
 0x3fd   : > { %4020 = vmatmul.bf16.gmra.mxu0 %v7624_v10 }
 0x3fe   : > { %v2693_v57 = vpop.f32.mrf.mxu2 }
 0x3ff   : > { %v2694_v46 = vadd.f32 %v2693_v57, %v7622_v60  ;;  %v2895_v37 = vpop.f32.mrf.mxu3  ;;  %v3199_v60 = vld [vmem:[#allocation2 + $0x169] sm:$0xff] }
 0x400   : > { %v3320_v35 = vpop.f32.mrf.mxu1 }
 0x401   : > { %v7775_v2 = vadd.f32 %v3320_v35, %v7616_v39  ;;  %v2933_v14 = vadd.f32 %v2895_v37, %v2694_v46  ;;  %v7785_v39 = vpack.c.bf16 %v3200_v15, %v3199_v60  ;;  %v3654_v35 = vld [vmem:[#allocation2 + $0xd8] sm:$0xff]  ;;  %v3422_v60 = vld [vmem:[#allocation2 + $0xe2] sm:$0xff] }
 0x402   : > { %v3126_v5 = vpop.f32.mrf.mxu0 }
 0x403   : > { %v7777_v45 = vadd.f32 %v3126_v5, %v2932_v36 }
 0x406   : > { %v2695_v52 = vpop.f32.mrf.mxu2 }
 0x407   : > { %v2696_v47 = vadd.f32 %v2695_v52, %v7633_v25  ;;  %v2897_v29 = vpop.f32.mrf.mxu3  ;;  %v3679_v25 = vpack.c.bf16 %v3655_v24, %v3654_v35  ;;  %v3202_v24 = vld [vmem:[#allocation2 + $0x189] sm:$0xff] }
 0x408   : > { %v3323_v10 = vpop.f32.mrf.mxu1 }
 0x409   : > { %v7783_v38 = vadd.f32 %v3323_v10, %v7629_v50  ;;  %v2934_v57 = vadd.f32 %v2897_v29, %v2696_v47  ;;  %v3421_v10 = vld [vmem:[#allocation2 + $0xda] sm:$0xff] }
 0x40a   : > { %v3129_v36 = vpop.f32.mrf.mxu0 }
 0x40b   : > { %3561 = vmatmul.bf16.gmra.mxu2 %v7780_v3  ;;  %v7788_v46 = vadd.f32 %v3129_v36, %v2933_v14  ;;  %3362 = vmatmul.bf16.gmra.mxu1 %v7785_v39  ;;  %v7799_v36 = vpack.c.bf16 %v3422_v60, %v3421_v10 }
 0x40c   : > { %3796 = vmatmul.bf16.gmra.mxu3 %v3679_v25  ;;  %v3657_v25 = vld [vmem:[#allocation2 + $0xf8] sm:$0xff] }
 0x40d   : > { %4025 = vmatmul.bf16.gmra.mxu0 %v7643_v32 }
 0x40e   : > { %v2698_v37 = vpop.f32.mrf.mxu2 }
 0x40f   : > { %v2699_v5 = vadd.f32 %v2698_v37, %v7641_v9  ;;  %v2900_v52 = vpop.f32.mrf.mxu3  ;;  %v3201_v9 = vld [vmem:[#allocation2 + $0x181] sm:$0xff] }
 0x410   : > { %v3325_v50 = vpop.f32.mrf.mxu1 }
 0x411   : > { %v7794_v33 = vadd.f32 %v3325_v50, %v7635_v44  ;;  %v2935_v48 = vadd.f32 %v2900_v52, %v2699_v5  ;;  %v7804_v44 = vpack.c.bf16 %v3202_v24, %v3201_v9  ;;  %v3656_v52 = vld [vmem:[#allocation2 + $0xf0] sm:$0xff] }
 0x412   : > { %v3131_v47 = vpop.f32.mrf.mxu0  ;;  %v3423_v9 = vld [vmem:[#allocation2 + $0xf2] sm:$0xff] }
 0x413   : > { %v7796_v15 = vadd.f32 %v3131_v47, %v2934_v57 }
 0x416   : > { %v2700_v14 = vpop.f32.mrf.mxu2 }
 0x417   : > { %v2701_v29 = vadd.f32 %v2700_v14, %v7652_v1  ;;  %v2902_v35 = vpop.f32.mrf.mxu3  ;;  %v3680_v1 = vpack.c.bf16 %v3657_v25, %v3656_v52 }
 0x418   : > { %v3328_v32 = vpop.f32.mrf.mxu1 }
 0x419   : > { %v7802_v37 = vadd.f32 %v3328_v32, %v7645_v13  ;;  %v2936_v5 = vadd.f32 %v2902_v35, %v2701_v29  ;;  %v3424_v35 = vld [vmem:[#allocation2 + $0xfa] sm:$0xff] }
 0x41a   : > { %v3134_v57 = vpop.f32.mrf.mxu0 }
 0x41b   : > { %3566 = vmatmul.bf16.gmra.mxu2 %v7799_v36  ;;  %v7807_v50 = vadd.f32 %v3134_v57, %v2935_v48  ;;  %3367 = vmatmul.bf16.gmra.mxu1 %v7804_v44  ;;  %v7818_v57 = vpack.c.bf16 %v3424_v35, %v3423_v9 }
 0x41c   : > { %3801 = vmatmul.bf16.gmra.mxu3 %v3680_v1 }
 0x41d   : > { %4030 = vmatmul.bf16.gmra.mxu0 %v7662_v41 }
 0x41e   : > { %v3527_v47 = vpop.f32.mrf.mxu2 }
 0x41f   : > { %v3607_v14 = vadd.f32 %v3527_v47, %v7660_v20  ;;  %v3762_v10 = vpop.f32.mrf.mxu3  ;;  %v3659_v20 = vld [vmem:[#allocation2 + $0x110] sm:$0xff] }
 0x420   : > { %v3330_v13 = vpop.f32.mrf.mxu1 }
 0x421   : > { %v7813_v60 = vadd.f32 %v3330_v13, %v7654_v17  ;;  %v3842_v29 = vadd.f32 %v3762_v10, %v3607_v14 }
 0x422   : > { %v3136_v24 = vpop.f32.mrf.mxu0 }
 0x423   : > { %8583 = vst [vmem:[#allocation44_spill] sm:$0xff] %v7813_v60  ;;  %v7815_v32 = vadd.f32 %v3136_v24, %v2936_v5  ;;  %v3658_v5 = vld [vmem:[#allocation2 + $0x108] sm:$0xff] }
 0x424   : > { %v3681_v13 = vpack.c.bf16 %v3659_v20, %v3658_v5 }
 0x426   : > { %v3529_v48 = vpop.f32.mrf.mxu2 }
 0x427   : > { %v3608_v25 = vadd.f32 %v3529_v48, %v7671_v53  ;;  %v3764_v52 = vpop.f32.mrf.mxu3 }
 0x428   : > { %v3333_v41 = vpop.f32.mrf.mxu1 }
 0x429   : > { %v7821_v1 = vadd.f32 %v3333_v41, %v7665_v49  ;;  %v3843_v47 = vadd.f32 %v3764_v52, %v3608_v25  ;;  %v3425_v41 = vld [vmem:[#allocation2 + $0x10a] sm:$0xff]  ;;  %v3426_v52 = vld [vmem:[#allocation2 + $0x112] sm:$0xff] }
 0x42a   : > { %v3996_v17 = vpop.f32.mrf.mxu0  ;;  %v7835_v20 = vpack.c.bf16 %v3426_v52, %v3425_v41 }
 0x42b   : > { %3571 = vmatmul.bf16.gmra.mxu2 %v7818_v57  ;;  %v7824_v14 = vadd.f32 %v3996_v17, %v3842_v29  ;;  %4229 = vmatmul.bf16.vlgmr.msra.gmra.mxu1 %v7657_v59 }
 0x42c   : > { %3806 = vmatmul.bf16.gmra.mxu3 %v3681_v13 }
 0x42d   : > { %4035 = vmatmul.bf16.gmra.mxu0 %v7684_v54 }
 0x42e   : > { %v3532_v10 = vpop.f32.mrf.mxu2 }
 0x42f   : > { %v3609_v53 = vadd.f32 %v3532_v10, %v7682_v11  ;;  %v3767_v48 = vpop.f32.mrf.mxu3  ;;  %v3661_v11 = vld [vmem:[#allocation2 + $0x128] sm:$0xff] }
 0x430   : > { %v3335_v24 = vpop.f32.mrf.mxu1 }
 0x431   : > { %v7830_v49 = vadd.f32 %v3335_v24, %v7673_v27  ;;  %v3844_v9 = vadd.f32 %v3767_v48, %v3609_v53 }
 0x432   : > { %v3998_v35 = vpop.f32.mrf.mxu0 }
 0x433   : > { %v7832_v25 = vadd.f32 %v3998_v35, %v3843_v47  ;;  %v3660_v47 = vld [vmem:[#allocation2 + $0x120] sm:$0xff] }
 0x434   : > { %v3682_v53 = vpack.c.bf16 %v3661_v11, %v3660_v47 }
 0x436   : > { %v3534_v29 = vpop.f32.mrf.mxu2 }
 0x437   : > { %v3610_v59 = vadd.f32 %v3534_v29, %v7693_v26  ;;  %v3769_v17 = vpop.f32.mrf.mxu3 }
 0x438   : > { %v3338_v54 = vpop.f32.mrf.mxu1 }
 0x439   : > { %v7838_v5 = vadd.f32 %v3338_v54, %v7687_v55  ;;  %v3845_v13 = vadd.f32 %v3769_v17, %v3610_v59  ;;  %v3427_v59 = vld [vmem:[#allocation2 + $0x122] sm:$0xff]  ;;  %v3428_v54 = vld [vmem:[#allocation2 + $0x12a] sm:$0xff] }
 0x43a   : > { %v4001_v27 = vpop.f32.mrf.mxu0  ;;  %v7852_v17 = vpack.c.bf16 %v3428_v54, %v3427_v59  ;;  %v3429_v54 = vld [vmem:[#allocation2 + $0x13a] sm:$0xff] }
 0x43b   : > { %3576 = vmatmul.bf16.gmra.mxu2 %v7835_v20  ;;  %v7841_v10 = vadd.f32 %v4001_v27, %v3844_v9  ;;  %4234 = vmatmul.bf16.gmra.mxu1 %v7679_v7 }
 0x43c   : > { %3811 = vmatmul.bf16.gmra.mxu3 %v3682_v53 }
 0x43d   : > { %4040 = vmatmul.bf16.gmra.mxu0 %v7703_v18 }
 0x43e   : > { %v3537_v24 = vpop.f32.mrf.mxu2 }
 0x43f   : > { %v3611_v26 = vadd.f32 %v3537_v24, %v7701_v22  ;;  %v3772_v35 = vpop.f32.mrf.mxu3  ;;  %v3663_v22 = vld [vmem:[#allocation2 + $0x140] sm:$0xff] }
 0x440   : > { %v3340_v48 = vpop.f32.mrf.mxu1 }
 0x441   : > { %v7847_v55 = vadd.f32 %v3340_v48, %v7695_v21  ;;  %v3846_v29 = vadd.f32 %v3772_v35, %v3611_v26 }
 0x442   : > { %v4003_v41 = vpop.f32.mrf.mxu0 }
 0x443   : > { %v7849_v52 = vadd.f32 %v4003_v41, %v3845_v13  ;;  %v3662_v13 = vld [vmem:[#allocation2 + $0x138] sm:$0xff] }
 0x444   : > { %v3683_v24 = vpack.c.bf16 %v3663_v22, %v3662_v13 }
 0x446   : > { %v3539_v9 = vpop.f32.mrf.mxu2 }
 0x447   : > { %v3612_v7 = vadd.f32 %v3539_v9, %v7712_v8  ;;  %v3774_v11 = vpop.f32.mrf.mxu3 }
 0x448   : > { %v3343_v18 = vpop.f32.mrf.mxu1 }
 0x449   : > { %v7855_v27 = vadd.f32 %v3343_v18, %v7706_v31  ;;  %v3847_v47 = vadd.f32 %v3774_v11, %v3612_v7  ;;  %v3430_v7 = vld [vmem:[#allocation2 + $0x142] sm:$0xff] }
 0x44a   : > { %v4006_v21 = vpop.f32.mrf.mxu0  ;;  %v7869_v18 = vpack.c.bf16 %v3430_v7, %v3429_v54 }
 0x44b   : > { %3581 = vmatmul.bf16.gmra.mxu2 %v7852_v17  ;;  %v7858_v53 = vadd.f32 %v4006_v21, %v3846_v29  ;;  %4239 = vmatmul.bf16.gmra.mxu1 %v7698_v56 }
 0x44c   : > { %3816 = vmatmul.bf16.gmra.mxu3 %v3683_v24 }
 0x44d   : > { %4045 = vmatmul.bf16.gmra.mxu0 %v7725_v23 }
 0x44e   : > { %v3542_v26 = vpop.f32.mrf.mxu2 }
 0x44f   : > { %v3613_v8 = vadd.f32 %v3542_v26, %v7723_v51  ;;  %v3777_v35 = vpop.f32.mrf.mxu3  ;;  %v3665_v51 = vld [vmem:[#allocation2 + $0x158] sm:$0xff] }
 0x450   : > { %v3345_v48 = vpop.f32.mrf.mxu1 }
 0x451   : > { %v7864_v31 = vadd.f32 %v3345_v48, %v7714_v30  ;;  %v3848_v41 = vadd.f32 %v3777_v35, %v3613_v8 }
 0x452   : > { %v4008_v9 = vpop.f32.mrf.mxu0 }
 0x453   : > { %8584 = vst [vmem:[#allocation47_spill] sm:$0xff] %v7864_v31  ;;  %v7866_v59 = vadd.f32 %v4008_v9, %v3847_v47  ;;  %v3664_v47 = vld [vmem:[#allocation2 + $0x150] sm:$0xff] }
 0x454   : > { %v3684_v24 = vpack.c.bf16 %v3665_v51, %v3664_v47  ;;  %v3431_v9 = vld [vmem:[#allocation2 + $0x152] sm:$0xff] }
 0x456   : > { %v3544_v29 = vpop.f32.mrf.mxu2 }
 0x457   : > { %v3614_v56 = vadd.f32 %v3544_v29, %v7734_v43  ;;  %v3779_v11 = vpop.f32.mrf.mxu3  ;;  %v3432_v29 = vld [vmem:[#allocation2 + $0x15a] sm:$0xff] }
 0x458   : > { %v3348_v23 = vpop.f32.mrf.mxu1 }
 0x459   : > { %v7872_v22 = vadd.f32 %v3348_v23, %v7728_v6  ;;  %v3849_v21 = vadd.f32 %v3779_v11, %v3614_v56  ;;  %v3666_v23 = vld [vmem:[#allocation2 + $0x168] sm:$0xff] }
 0x45a   : > { %v4011_v30 = vpop.f32.mrf.mxu0 }
 0x45b   : > { %8585 = vst [vmem:[#allocation46_spill] sm:$0xff] %v7872_v22  ;;  %3586 = vmatmul.bf16.gmra.mxu2 %v7869_v18  ;;  %v7875_v13 = vadd.f32 %v4011_v30, %v3848_v41  ;;  %4244 = vmatmul.bf16.gmra.mxu1 %v7720_v0  ;;  %v7890_v0 = vpack.c.bf16 %v3432_v29, %v3431_v9 }
 0x45c   : > { %3821 = vmatmul.bf16.gmra.mxu3 %v3684_v24 }
 0x45d   : > { %4050 = vmatmul.bf16.gmra.mxu0 %v7744_v40  ;;  %v3667_v40 = vld [vmem:[#allocation2 + $0x170] sm:$0xff] }
 0x45e   : > { %v7878_v26 = vpop.f32.mrf.mxu2  ;;  %v3685_v11 = vpack.c.bf16 %v3667_v40, %v3666_v23 }
 0x45f   : > { %v7881_v8 = vpop.f32.mrf.mxu3 }
 0x460   : > { %v3350_v43 = vpop.f32.mrf.mxu1 }
 0x461   : > { %v7884_v6 = vadd.f32 %v3350_v43, %v7736_v42  ;;  %v3433_v43 = vld [vmem:[#allocation2 + $0x16a] sm:$0xff] }
 0x462   : > { %v4013_v48 = vpop.f32.mrf.mxu0 }
 0x463   : > { %8586 = vst [vmem:[#allocation22_spill] sm:$0xff] %v7884_v6  ;;  %v7886_v35 = vadd.f32 %v4013_v48, %v3849_v21  ;;  %v3434_v48 = vld [vmem:[#allocation2 + $0x172] sm:$0xff] }
 0x464   : > { %v7913_v9 = vpack.c.bf16 %v3434_v48, %v3433_v43  ;;  %v3435_v43 = vld [vmem:[#allocation2 + $0x182] sm:$0xff]  ;;  %v3436_v48 = vld [vmem:[#allocation2 + $0x18a] sm:$0xff] }
 0x466   : > { %v7888_v41 = vpop.f32.mrf.mxu2 }
 0x467   : > { %v7892_v7 = vpop.f32.mrf.mxu3 }
 0x468   : > { %v3353_v54 = vpop.f32.mrf.mxu1 }
 0x469   : > { %v7895_v56 = vadd.f32 %v3353_v54, %v7747_v19 }
 0x46a   : > { %v7898_v42 = vpop.f32.mrf.mxu0 }
 0x46b   : > { %8587 = vst [vmem:[#allocation49_spill] sm:$0xff] %v7895_v56  ;;  %3591 = vmatmul.bf16.gmra.mxu2 %v7890_v0  ;;  %4249 = vmatmul.bf16.gmra.mxu1 %v7739_v62  ;;  %v3905_v56 = vld [vmem:[#allocation2 + $0x1a1] sm:$0xff] }
 0x46c   : > { %3826 = vmatmul.bf16.gmra.mxu3 %v3685_v11 }
 0x46d   : > { %4055 = vmatmul.bf16.gmra.mxu0 %v7766_v16 }
 0x46e   : > { %v7901_v51 = vpop.f32.mrf.mxu2 }
 0x46f   : > { %v7904_v30 = vpop.f32.mrf.mxu3 }
 0x470   : > { %v3355_v21 = vpop.f32.mrf.mxu1 }
 0x471   : > { %v7907_v47 = vadd.f32 %v3355_v21, %v7755_v34 }
 0x472   : > { %v7909_v19 = vpop.f32.mrf.mxu0 }
 0x473   : > { %8588 = vst [vmem:[#allocation48_spill] sm:$0xff] %v7907_v47 }
 0x476   : > { %v7911_v24 = vpop.f32.mrf.mxu2 }
 0x477   : > { %v7915_v29 = vpop.f32.mrf.mxu3 }
 0x478   : > { %v3358_v62 = vpop.f32.mrf.mxu1 }
 0x479   : > { %v7918_v16 = vadd.f32 %v3358_v62, %v7769_v4  ;;  %v7937_v62 = vpack.c.bf16 %v3436_v48, %v3435_v43 }
 0x47a   : > { %v7921_v54 = vpop.f32.mrf.mxu0 }
 0x47b   : > { %8589 = vst [vmem:[#allocation51_spill] sm:$0xff] %v7918_v16  ;;  %3596 = vmatmul.bf16.gmra.mxu2 %v7913_v9  ;;  %4254 = vmatmul.bf16.gmra.mxu1 %v7761_v58 }
 0x47c   : > { %3831 = vmatmul.bf16.gmra.mxu3 %v7647_v28 }
 0x47d   : > { %4060 = vmatmul.bf16.gmra.mxu0 %v7785_v39 }
 0x47e   : > { %v7924_v34 = vpop.f32.mrf.mxu2 }
 0x47f   : > { %v7928_v23 = vpop.f32.mrf.mxu3 }
 0x480   : > { %v3360_v40 = vpop.f32.mrf.mxu1 }
 0x481   : > { %v7931_v11 = vadd.f32 %v3360_v40, %v7777_v45  ;;  %v5640_v45 = vld [vmem:[#allocation2] sm:$0xff] }
 0x482   : > { %v7933_v4 = vpop.f32.mrf.mxu0  ;;  %v3687_v40 = vpack.c.bf16 %v5640_v45, %v5640_v45 }
 0x483   : > { %8590 = vst [vmem:[#allocation50_spill] sm:$0xff] %v7931_v11 }
 0x486   : > { %v7935_v21 = vpop.f32.mrf.mxu2 }
 0x487   : > { %v7939_v16 = vpop.f32.mrf.mxu3 }
 0x488   : > { %v3363_v58 = vpop.f32.mrf.mxu1 }
 0x489   : > { %v7942_v39 = vadd.f32 %v3363_v58, %v7788_v46 }
 0x48a   : > { %v7945_v28 = vpop.f32.mrf.mxu0 }
 0x48b   : > { %8591 = vst [vmem:[#allocation28_spill] sm:$0xff] %v7942_v39  ;;  %3601 = vmatmul.bf16.gmra.mxu2 %v7937_v62  ;;  %4259 = vmatmul.bf16.gmra.mxu1 %v7780_v3  ;;  %v3904_v39 = vld [vmem:[#allocation2 + $0x199] sm:$0xff] }
 0x48c   : > { %3836 = vmatmul.bf16.gmra.mxu3 %v3687_v40  ;;  %v3921_v3 = vpack.c.bf16 %v3905_v56, %v3904_v39 }
 0x48d   : > { %4065 = vmatmul.bf16.gmra.mxu0 %v7804_v44 }
 0x48e   : > { %v7948_v11 = vpop.f32.mrf.mxu2 }
 0x48f   : > { %v7951_v48 = vpop.f32.mrf.mxu3 }
 0x490   : > { %v3365_v43 = vpop.f32.mrf.mxu1 }
 0x491   : > { %v7954_v47 = vadd.f32 %v3365_v43, %v7796_v15  ;;  %v4559_v43 = vld [vmem:[%s8330_s5 + $0x78] sm:$0xff] }
 0x492   : > { %v7956_v46 = vpop.f32.mrf.mxu0  ;;  %4561 = vmatpush.msrb.mxu2 %v4559_v43 }
 0x493   : > { %8592 = vst [vmem:[#allocation53_spill] sm:$0xff] %v7954_v47 }
 0x496   : > { %v7958_v58 = vpop.f32.mrf.mxu2 }
 0x497   : > { %8593 = vst [vmem:[#allocation52_spill] sm:$0xff] %v7958_v58  ;;  %v7960_v6 = vpop.f32.mrf.mxu3 }
 0x498   : > { %v3368_v45 = vpop.f32.mrf.mxu1  ;;  %8594 = vst [vmem:[#allocation55_spill] sm:$0xff] %v7960_v6 }
 0x499   : > { %v7963_v22 = vadd.f32 %v3368_v45, %v7807_v50 }
 0x49a   : > { %v7965_v44 = vpop.f32.mrf.mxu0 }
 0x49b   : > { %8595 = vst [vmem:[#allocation54_spill] sm:$0xff] %v7963_v22  ;;  %4264 = vmatmul.bf16.gmra.mxu1 %v7799_v36 }
 0x49d   : > { %4070 = vmatmul.bf16.gmra.mxu0 %v3921_v3 }
 0x49e   : > { %v3567_v40 = vpop.f32.mrf.mxu2 }
 0x49f   : > { %v3623_v15 = vadd.f32 %v3567_v40, %v7821_v1  ;;  %v3802_v31 = vpop.f32.mrf.mxu3  ;;  %v7981_v1 = vld [vmem:[%s8329_s4] ss:$0 sm:$0xff] }
 0x4a0   : > { %v3370_v47 = vpop.f32.mrf.mxu1 }
 0x4a1   : > { %v7973_v56 = vadd.f32 %v3370_v47, %v7815_v32  ;;  %v3858_v50 = vadd.f32 %v3802_v31, %v3623_v15  ;;  %v4558_v15 = vld [vmem:[%s8330_s5 + $0x70] sm:$0xff] }
 0x4a2   : > { %v7975_v39 = vpop.f32.mrf.mxu0  ;;  %4562 = vmatpush.msrb.mxu2 %v4558_v15 }
 0x4a3   : > { %8596 = vst [vmem:[#allocation34_spill] sm:$0xff] %v7973_v56 }
 0x4a4   : > { %8597 = vst [vmem:[#allocation57_spill] sm:$0xff] %v7975_v39 }
 0x4a6   : > { %v3569_v45 = vpop.f32.mrf.mxu2 }
 0x4a7   : > { %v3624_v36 = vadd.f32 %v3569_v45, %v7830_v49  ;;  %v3804_v40 = vpop.f32.mrf.mxu3 }
 0x4a8   : > { %v4230_v3 = vpop.f32.mrf.mxu1 }
 0x4a9   : > { %v4310_v43 = vadd.f32 %v4230_v3, %v7824_v14  ;;  %v3859_v22 = vadd.f32 %v3804_v40, %v3624_v36 }
 0x4aa   : > { %v4036_v6 = vpop.f32.mrf.mxu0 }
 0x4ab   : > { %v7984_v58 = vadd.f32 %v4036_v6, %v3858_v50  ;;  %4269 = vmatmul.bf16.gmra.mxu1 %v7818_v57  ;;  %v4346_v32 = vadd.f32 %v7981_v1, %v4310_v43 }
 0x4ad   : > { %8598 = vst [vmem:[#allocation56_spill] sm:$0xff] %v7984_v58  ;;  %v4378_v47 = vmax.f32 %v4346_v32, 0.0 }
 0x4ae   : > { %v3572_v31 = vpop.f32.mrf.mxu2 }
 0x4af   : > { %v3625_v49 = vadd.f32 %v3572_v31, %v7838_v5  ;;  %4410 = vxpose.xlu0.b32.start [1/16] %v4378_v47, 128  ;;  %v3807_v14 = vpop.f32.mrf.mxu3 }
 0x4b0   : > { %v4232_v45 = vpop.f32.mrf.mxu1 }
 0x4b1   : > { %v4311_v36 = vadd.f32 %v4232_v45, %v7832_v25  ;;  %v3860_v6 = vadd.f32 %v3807_v14, %v3625_v49 }
 0x4b2   : > { %v4038_v50 = vpop.f32.mrf.mxu0 }
 0x4b3   : > { %v7993_v3 = vadd.f32 %v4038_v50, %v3859_v22  ;;  %v4347_v57 = vadd.f32 %v7981_v1, %v4311_v36 }
 0x4b5   : > { %v4379_v43 = vmax.f32 %v4347_v57, 0.0 }
 0x4b6   : > { %v3574_v40 = vpop.f32.mrf.mxu2 }
 0x4b7   : > { %v3626_v5 = vadd.f32 %v3574_v40, %v7847_v55  ;;  %4411 = vxpose.xlu0.b32.cont [2/16] %v4379_v43, 128  ;;  %v4506_v32 = vadd.f32 %v4379_v43, %v4378_v47  ;;  %v3809_v56 = vpop.f32.mrf.mxu3  ;;  %v4557_v55 = vld [vmem:[%s8330_s5 + $0x68] sm:$0xff] }
 0x4b8   : > { %v4235_v31 = vpop.f32.mrf.mxu1  ;;  %4563 = vmatpush.msrb.mxu2 %v4557_v55 }
 0x4b9   : > { %v4312_v15 = vadd.f32 %v4235_v31, %v7841_v10  ;;  %v3861_v58 = vadd.f32 %v3809_v56, %v3626_v5 }
 0x4ba   : > { %v4041_v39 = vpop.f32.mrf.mxu0 }
 0x4bb   : > { %v7998_v60 = vadd.f32 %v4041_v39, %v3860_v6  ;;  %4274 = vmatmul.bf16.gmra.mxu1 %v7835_v20  ;;  %v4348_v25 = vadd.f32 %v7981_v1, %v4312_v15 }
 0x4bd   : > { %v4380_v49 = vmax.f32 %v4348_v25, 0.0 }
 0x4be   : > { %v3577_v22 = vpop.f32.mrf.mxu2 }
 0x4bf   : > { %v3627_v45 = vadd.f32 %v3577_v22, %v7855_v27  ;;  %4412 = vxpose.xlu0.b32.cont [3/16] %v4380_v49, 128  ;;  %v4507_v47 = vadd.f32 %v4506_v32, %v4380_v49  ;;  %v3812_v56 = vpop.f32.mrf.mxu3 }
 0x4c0   : > { %v4237_v10 = vpop.f32.mrf.mxu1 }
 0x4c1   : > { %v4313_v39 = vadd.f32 %v4237_v10, %v7849_v52  ;;  %v3862_v14 = vadd.f32 %v3812_v56, %v3627_v45  ;;  %v4555_v10 = vld [vmem:[%s8330_s5 + $0x58] sm:$0xff] }
 0x4c2   : > { %v4043_v36 = vpop.f32.mrf.mxu0 }
 0x4c3   : > { %v8007_v20 = vadd.f32 %v4043_v36, %v3861_v58  ;;  %v4349_v6 = vadd.f32 %v7981_v1, %v4313_v39  ;;  %v4556_v58 = vld [vmem:[%s8330_s5 + $0x60] sm:$0xff]  ;;  %v3615_v39 = vadd.f32 %v7878_v26, %v7742_v61 }
 0x4c4   : > { %4564 = vmatpush.msrb.mxu2 %v4556_v58 }
 0x4c5   : > { %v4381_v50 = vmax.f32 %v4349_v6, 0.0 }
 0x4c6   : > { %4565 = vmatpush.msrb.mxu2 %v4555_v10  ;;  %v3620_v10 = vadd.f32 %v7935_v21, %v7794_v33  ;;  %v4138_v33 = vld [vmem:[#allocation2 + $0x19a] sm:$0xff]  ;;  %v4139_v21 = vld [vmem:[#allocation2 + $0x1a2] sm:$0xff] }
 0x4c7   : > { %4413 = vxpose.xlu0.b32.cont [4/16] %v4381_v50, 128  ;;  %v4508_v27 = vadd.f32 %v4507_v47, %v4381_v50 }
 0x4c8   : > { %v4240_v57 = vpop.f32.mrf.mxu1 }
 0x4c9   : > { %v4314_v40 = vadd.f32 %v4240_v57, %v7858_v53  ;;  %v3616_v57 = vadd.f32 %v7888_v41, %v7753_v63  ;;  %v3617_v63 = vadd.f32 %v7901_v51, %v7764_v12  ;;  %v4553_v12 = vld [vmem:[%s8330_s5 + $0x48] sm:$0xff] }
 0x4ca   : > { %v4046_v43 = vpop.f32.mrf.mxu0 }
 0x4cb   : > { %v8011_v5 = vadd.f32 %v4046_v43, %v3862_v14  ;;  %4279 = vmatmul.bf16.gmra.mxu1 %v7852_v17  ;;  %v4350_v32 = vadd.f32 %v7981_v1, %v4314_v40  ;;  %v3851_v26 = vadd.f32 %v7892_v7, %v3616_v57 }
 0x4cd   : > { %v4382_v52 = vmax.f32 %v4350_v32, 0.0 }
 0x4cf   : > { %4414 = vxpose.xlu0.b32.cont [5/16] %v4382_v52, 128  ;;  %v4509_v31 = vadd.f32 %v4508_v27, %v4382_v52  ;;  %v3852_v52 = vadd.f32 %v7904_v30, %v3617_v63 }
 0x4d0   : > { %v4242_v15 = vpop.f32.mrf.mxu1 }
 0x4d1   : > { %v4315_v25 = vadd.f32 %v4242_v15, %v7866_v59  ;;  %v4086_v58 = vadd.f32 %v7921_v54, %v3852_v52  ;;  %v4550_v52 = vld [vmem:[%s8330_s5 + $0x30] sm:$0xff] }
 0x4d3   : > { %v4351_v53 = vadd.f32 %v7981_v1, %v4315_v25 }
 0x4d5   : > { %v4383_v22 = vmax.f32 %v4351_v53, 0.0 }
 0x4d7   : > { %4415 = vxpose.xlu0.b32.cont [6/16] %v4383_v22, 128  ;;  %v4510_v49 = vadd.f32 %v4509_v31, %v4383_v22 }
 0x4d8   : > { %v4245_v45 = vpop.f32.mrf.mxu1 }
 0x4d9   : > { %v4316_v17 = vadd.f32 %v4245_v45, %v7875_v13  ;;  %v4552_v45 = vld [vmem:[%s8330_s5 + $0x40] sm:$0xff] }
 0x4db   : > { %4284 = vmatmul.bf16.gmra.mxu1 %v7869_v18  ;;  %v4352_v55 = vadd.f32 %v7981_v1, %v4316_v17  ;;  %v3850_v18 = vadd.f32 %v7881_v8, %v3615_v39  ;;  %v4554_v8 = vld [vmem:[%s8330_s5 + $0x50] sm:$0xff] }
 0x4dc   : > { %4566 = vmatpush.msrb.mxu2 %v4554_v8 }
 0x4dd   : > { %v4384_v47 = vmax.f32 %v4352_v55, 0.0  ;;  %v4084_v6 = vadd.f32 %v7898_v42, %v3850_v18  ;;  %v4085_v42 = vadd.f32 %v7909_v19, %v3851_v26  ;;  %v3618_v19 = vadd.f32 %v7911_v24, %v7775_v2 }
 0x4de   : > { %4567 = vmatpush.msrb.mxu2 %v4553_v12  ;;  %v3619_v2 = vadd.f32 %v7924_v34, %v7783_v38  ;;  %v4549_v12 = vld [vmem:[%s8330_s5 + $0x28] sm:$0xff] }
 0x4df   : > { %4416 = vxpose.xlu0.b32.cont [7/16] %v4384_v47, 128  ;;  %v4511_v56 = vadd.f32 %v4510_v49, %v4384_v47  ;;  %v3853_v51 = vadd.f32 %v7915_v29, %v3618_v19  ;;  %v3579_v19 = vpop.f32.mrf.mxu2 }
 0x4e0   : > { %v4247_v59 = vpop.f32.mrf.mxu1  ;;  %4568 = vmatpush.msrb.mxu2 %v4552_v45  ;;  %v3854_v17 = vadd.f32 %v7928_v23, %v3619_v2 }
 0x4e1   : > { %v4317_v14 = vadd.f32 %v4247_v59, %v7886_v35  ;;  %v4087_v54 = vadd.f32 %v7933_v4, %v3853_v51  ;;  %v4048_v51 = vpop.f32.mrf.mxu0 }
 0x4e2   : > { %v4088_v55 = vadd.f32 %v7945_v28, %v3854_v17  ;;  %v3621_v28 = vadd.f32 %v7948_v11, %v7802_v37  ;;  %v8599_v37 = vld [vmem:[#allocation44_spill] sm:$0xff] }
 0x4e3   : > { %v4353_v13 = vadd.f32 %v7981_v1, %v4317_v14  ;;  %v8600_v11 = vld [vmem:[#allocation52_spill] sm:$0xff] }
 0x4e4   : > { %v3622_v57 = vadd.f32 %v8600_v11, %v8599_v37  ;;  %v8604_v37 = vld [vmem:[#allocation47_spill] sm:$0xff] }
 0x4e5   : > { %v4385_v36 = vmax.f32 %v4353_v13, 0.0  ;;  %v3628_v11 = vadd.f32 %v3579_v19, %v8604_v37  ;;  %v8611_v37 = vld [vmem:[#allocation28_spill] sm:$0xff] }
 0x4e7   : > { %4417 = vxpose.xlu0.b32.cont [8/16] %v4385_v36, 128  ;;  %v4512_v50 = vadd.f32 %v4511_v56, %v4385_v36  ;;  %v3855_v56 = vadd.f32 %v7939_v16, %v3620_v10 }
 0x4e8   : > { %v4250_v27 = vpop.f32.mrf.mxu1 }
 0x4e9   : > { %v4318_v40 = vadd.f32 %v4250_v27, %v4084_v6  ;;  %v4089_v39 = vadd.f32 %v7956_v46, %v3855_v56  ;;  %v4551_v46 = vld [vmem:[%s8330_s5 + $0x38] sm:$0xff] }
 0x4ea   : > { %4569 = vmatpush.msrb.mxu2 %v4551_v46 }
 0x4eb   : > { %4289 = vmatmul.bf16.gmra.mxu1 %v7890_v0  ;;  %v4354_v61 = vadd.f32 %v7981_v1, %v4318_v40 }
 0x4ec   : > { %4570 = vmatpush.msrb.mxu2 %v4550_v52 }
 0x4ed   : > { %v4386_v35 = vmax.f32 %v4354_v61, 0.0 }
 0x4ee   : > { %4571 = vmatpush.msrb.mxu2 %v4549_v12 }
 0x4ef   : > { %4418 = vxpose.xlu0.b32.cont [9/16] %v4386_v35, 128  ;;  %v4513_v43 = vadd.f32 %v4512_v50, %v4386_v35  ;;  %v4155_v50 = vpack.c.bf16 %v4139_v21, %v4138_v33 }
 0x4f0   : > { %v4252_v32 = vpop.f32.mrf.mxu1 }
 0x4f1   : > { %v4319_v41 = vadd.f32 %v4252_v32, %v4085_v42 }
 0x4f3   : > { %v4355_v0 = vadd.f32 %v7981_v1, %v4319_v41 }
 0x4f5   : > { %v4387_v7 = vmax.f32 %v4355_v0, 0.0 }
 0x4f7   : > { %4419 = vxpose.xlu0.b32.cont [10/16] %v4387_v7, 128  ;;  %v4514_v31 = vadd.f32 %v4513_v43, %v4387_v7 }
 0x4f8   : > { %v4255_v15 = vpop.f32.mrf.mxu1 }
 0x4f9   : > { %v4320_v25 = vadd.f32 %v4255_v15, %v4086_v58  ;;  %v8603_v58 = vld [vmem:[#allocation56_spill] sm:$0xff] }
 0x4fb   : > { %4294 = vmatmul.bf16.gmra.mxu1 %v7913_v9  ;;  %v4356_v53 = vadd.f32 %v7981_v1, %v4320_v25 }
 0x4fd   : > { %v4388_v30 = vmax.f32 %v4356_v53, 0.0  ;;  %v3814_v53 = vpop.f32.mrf.mxu3 }
 0x4ff   : > { %4420 = vxpose.xlu0.b32.cont [11/16] %v4388_v30, 128  ;;  %v4515_v22 = vadd.f32 %v4514_v31, %v4388_v30 }
 0x500   : > { %v4257_v49 = vpop.f32.mrf.mxu1 }
 0x501   : > { %v4321_v24 = vadd.f32 %v4257_v49, %v4087_v54 }
 0x503   : > { %v4357_v9 = vadd.f32 %v7981_v1, %v4321_v24 }
 0x505   : > { %v4389_v29 = vmax.f32 %v4357_v9, 0.0  ;;  %v3817_v49 = vpop.f32.mrf.mxu3  ;;  %v4051_v9 = vpop.f32.mrf.mxu0 }
 0x507   : > { %4421 = vxpose.xlu0.b32.cont [12/16] %v4389_v29, 128  ;;  %v4516_v4 = vadd.f32 %v4515_v22, %v4389_v29  ;;  %v3582_v22 = vpop.f32.mrf.mxu2 }
 0x508   : > { %v4260_v47 = vpop.f32.mrf.mxu1 }
 0x509   : > { %v4322_v38 = vadd.f32 %v4260_v47, %v4088_v55 }
 0x50b   : > { %4299 = vmatmul.bf16.gmra.mxu1 %v7937_v62  ;;  %v4358_v34 = vadd.f32 %v7981_v1, %v4322_v38  ;;  %v3856_v62 = vadd.f32 %v7951_v48, %v3621_v28  ;;  %v8601_v48 = vld [vmem:[#allocation55_spill] sm:$0xff] }
 0x50c   : > { %v3857_v26 = vadd.f32 %v8601_v48, %v3622_v57 }
 0x50d   : > { %v4390_v59 = vmax.f32 %v4358_v34, 0.0  ;;  %v4090_v6 = vadd.f32 %v7965_v44, %v3856_v62  ;;  %v8602_v44 = vld [vmem:[#allocation57_spill] sm:$0xff]  ;;  %v3819_v55 = vpop.f32.mrf.mxu3 }
 0x50e   : > { %v4091_v8 = vadd.f32 %v8602_v44, %v3857_v26 }
 0x50f   : > { %4422 = vxpose.xlu0.b32.cont [13/16] %v4390_v59, 128  ;;  %v4517_v23 = vadd.f32 %v4516_v4, %v4390_v59  ;;  %v3584_v45 = vpop.f32.mrf.mxu2  ;;  %v4053_v4 = vpop.f32.mrf.mxu0 }
 0x510   : > { %v4262_v14 = vpop.f32.mrf.mxu1 }
 0x511   : > { %v4323_v13 = vadd.f32 %v4262_v14, %v4089_v39 }
 0x513   : > { %v4359_v18 = vadd.f32 %v7981_v1, %v4323_v13 }
 0x515   : > { %v4391_v36 = vmax.f32 %v4359_v18, 0.0 }
 0x517   : > { %4423 = vxpose.xlu0.b32.cont [14/16] %v4391_v36, 128  ;;  %v4518_v16 = vadd.f32 %v4517_v23, %v4391_v36  ;;  %v3587_v47 = vpop.f32.mrf.mxu2  ;;  %v4056_v38 = vpop.f32.mrf.mxu0 }
 0x518   : > { %v4265_v27 = vpop.f32.mrf.mxu1 }
 0x519   : > { %v4324_v40 = vadd.f32 %v4265_v27, %v4090_v6 }
 0x51b   : > { %4304 = vmatmul.bf16.gmra.mxu1 %v4155_v50  ;;  %v4360_v61 = vadd.f32 %v7981_v1, %v4324_v40  ;;  %v8605_v40 = vld [vmem:[#allocation46_spill] sm:$0xff] }
 0x51d   : > { %v4392_v35 = vmax.f32 %v4360_v61, 0.0  ;;  %v3629_v61 = vadd.f32 %v3582_v22, %v8605_v40 }
 0x51f   : > { %4424 = vxpose.xlu0.b32.cont [15/16] %v4392_v35, 128  ;;  %v4519_v42 = vadd.f32 %v4518_v16, %v4392_v35  ;;  %v3589_v56 = vpop.f32.mrf.mxu2  ;;  %v4058_v39 = vpop.f32.mrf.mxu0  ;;  %v4545_v16 = vld [vmem:[%s8330_s5 + $0x8] sm:$0xff]  ;;  %v8606_v35 = vld [vmem:[#allocation22_spill] sm:$0xff] }
 0x520   : > { %v4267_v43 = vpop.f32.mrf.mxu1  ;;  %v3630_v44 = vadd.f32 %v3584_v45, %v8606_v35 }
 0x521   : > { %v4325_v32 = vadd.f32 %v4267_v43, %v4091_v8  ;;  %v3863_v8 = vadd.f32 %v3814_v53, %v3628_v11  ;;  %v8607_v43 = vld [vmem:[#allocation49_spill] sm:$0xff] }
 0x523   : > { %v4361_v63 = vadd.f32 %v7981_v1, %v4325_v32  ;;  %v3631_v32 = vadd.f32 %v3587_v47, %v8607_v43  ;;  %v8613_v43 = vld [vmem:[#allocation54_spill] sm:$0xff] }
 0x525   : > { %v4393_v41 = vmax.f32 %v4361_v63, 0.0  ;;  %v3864_v63 = vadd.f32 %v3817_v49, %v3629_v61  ;;  %v8609_v49 = vld [vmem:[#allocation51_spill] sm:$0xff]  ;;  %v8612_v61 = vld [vmem:[#allocation53_spill] sm:$0xff] }
 0x527   : > { %4425 = vxpose.xlu0.b32.end [16/16] %v4393_v41, 128  ;;  %v8083_v0 = vadd.f32 %v4519_v42, %v4393_v41  ;;  %v3592_v14 = vpop.f32.mrf.mxu2  ;;  %v4061_v18 = vpop.f32.mrf.mxu0  ;;  %v4097_v41 = vadd.f32 %v4048_v51, %v3863_v8  ;;  %v4098_v12 = vadd.f32 %v4051_v9, %v3864_v63 }
 0x528   : > { %v4270_v7 = vpop.f32.mrf.mxu1  ;;  %v3633_v51 = vadd.f32 %v3592_v14, %v8609_v49 }
 0x529   : > { %v4326_v31 = vadd.f32 %v4270_v7, %v8603_v58  ;;  %v3865_v58 = vadd.f32 %v3819_v55, %v3630_v44 }
 0x52b   : > { %v8115_v26 = vadd.f32 %v7981_v1, %v4326_v31 }
 0x52d   : > { %v4394_v52 = vmax.f32 %v8115_v26, 0.0 }
 0x52f   : > { %v3594_v33 = vpop.f32.mrf.mxu2  ;;  %v4063_v36 = vpop.f32.mrf.mxu0 }
 0x530   : > { %v4272_v15 = vpop.f32.mrf.mxu1 }
 0x531   : > { %v4327_v25 = vadd.f32 %v4272_v15, %v7993_v3  ;;  %v4548_v3 = vld [vmem:[%s8330_s5 + $0x20] sm:$0xff]  ;;  %v8608_v15 = vld [vmem:[#allocation48_spill] sm:$0xff] }
 0x532   : > { %4572 = vmatpush.msrb.mxu2 %v4548_v3  ;;  %v3632_v19 = vadd.f32 %v3589_v56, %v8608_v15 }
 0x533   : > { %v8119_v42 = vadd.f32 %v7981_v1, %v4327_v25 }
 0x537   : > { %v3597_v6 = vpop.f32.mrf.mxu2  ;;  %v4066_v27 = vpop.f32.mrf.mxu0 }
 0x538   : > { %v4275_v30 = vpop.f32.mrf.mxu1 }
 0x539   : > { %v4328_v54 = vadd.f32 %v4275_v30, %v7998_v60  ;;  %v3822_v60 = vpop.f32.mrf.mxu3  ;;  %v4395_v30 = vmax.f32 %v8119_v42, 0.0 }
 0x53a   : > { %v3866_v22 = vadd.f32 %v3822_v60, %v3631_v32 }
 0x53b   : > { %v8124_v7 = vadd.f32 %v7981_v1, %v4328_v54  ;;  %v4521_v54 = vadd.f32 %v8083_v0, %v4394_v52 }
 0x53f   : > { %v3599_v48 = vpop.f32.mrf.mxu2  ;;  %v4068_v45 = vpop.f32.mrf.mxu0 }
 0x540   : > { %v4277_v2 = vpop.f32.mrf.mxu1  ;;  %v3636_v35 = vadd.f32 %v3599_v48, %v8612_v61 }
 0x541   : > { %v4329_v24 = vadd.f32 %v4277_v2, %v8007_v20  ;;  %v4547_v20 = vld [vmem:[%s8330_s5 + $0x18] sm:$0xff]  ;;  %v3824_v59 = vpop.f32.mrf.mxu3  ;;  %v4099_v2 = vadd.f32 %v4053_v4, %v3865_v58  ;;  %v4522_v4 = vadd.f32 %v4521_v54, %v4395_v30 }
 0x542   : > { %4573 = vmatpush.msrb.mxu2 %v4547_v20  ;;  %v3867_v47 = vadd.f32 %v3824_v59, %v3632_v19  ;;  %v8610_v20 = vld [vmem:[#allocation50_spill] sm:$0xff] }
 0x543   : > { %v8129_v53 = vadd.f32 %v7981_v1, %v4329_v24  ;;  %v4100_v24 = vadd.f32 %v4056_v38, %v3866_v22 }
 0x545   : > { %v4397_v56 = vmax.f32 %v8129_v53, 0.0 }
 0x547   : > { %v3602_v60 = vpop.f32.mrf.mxu2  ;;  %v4071_v19 = vpop.f32.mrf.mxu0 }
 0x548   : > { %v4280_v17 = vpop.f32.mrf.mxu1  ;;  %v3637_v32 = vadd.f32 %v3602_v60, %v8613_v43 }
 0x549   : > { %v4330_v29 = vadd.f32 %v4280_v17, %v8011_v5  ;;  %v4546_v5 = vld [vmem:[%s8330_s5 + $0x10] sm:$0xff]  ;;  %v3827_v28 = vpop.f32.mrf.mxu3  ;;  %v4396_v17 = vmax.f32 %v8124_v7, 0.0 }
 0x54a   : > { %4574 = vmatpush.msrb.mxu2 %v4546_v5  ;;  %v3868_v5 = vadd.f32 %v3827_v28, %v3633_v51  ;;  %v4544_v51 = vld [vmem:[%s8330_s5] sm:$0xff] }
 0x54b   : > { %v8137_v9 = vadd.f32 %v7981_v1, %v4330_v29  ;;  %v3635_v29 = vadd.f32 %v3597_v6, %v8611_v37 }
 0x54c   : > { %4575 = vmatpush.msrb.mxu2 %v4545_v16  ;;  %v4101_v16 = vadd.f32 %v4058_v39, %v3867_v47  ;;  %v4102_v40 = vadd.f32 %v4061_v18, %v3868_v5 }
 0x54d   : > { %v4398_v38 = vmax.f32 %v8137_v9, 0.0 }
 0x54e   : > { %4576 = vmatpush.msrb.mxu2 %v4544_v51 }
 0x550   : > { %v4282_v10 = vpop.f32.mrf.mxu1 }
 0x551   : > { %v3829_v62 = vpop.f32.mrf.mxu3  ;;  %v4331_v25 = vadd.f32 %v4282_v10, %v4097_v41  ;;  %v3634_v10 = vadd.f32 %v3594_v33, %v8610_v20 }
 0x553   : > { %v8144_v14 = vadd.f32 %v7981_v1, %v4331_v25  ;;  %v3869_v11 = vadd.f32 %v3829_v62, %v3634_v10  ;;  %v4426_v53 = vpop.trf.xlu0 }
 0x554   : > { %4474 = vst [vmem:[%s8239_s16] sm:$0xff] %v4426_v53 }
 0x555   : > { %v4399_v39 = vmax.f32 %v8144_v14, 0.0  ;;  %v4103_v8 = vadd.f32 %v4063_v36, %v3869_v11 }
 0x558   : > { %v4285_v34 = vpop.f32.mrf.mxu1 }
 0x559   : > { %v3832_v46 = vpop.f32.mrf.mxu3  ;;  %v4332_v55 = vadd.f32 %v4285_v34, %v4098_v12  ;;  %v4523_v34 = vadd.f32 %v4522_v4, %v4396_v17 }
 0x55a   : > { %v3870_v44 = vadd.f32 %v3832_v46, %v3635_v29 }
 0x55b   : > { %v8151_v59 = vadd.f32 %v7981_v1, %v4332_v55 }
 0x55c   : > { %v4104_v15 = vadd.f32 %v4066_v27, %v3870_v44 }
 0x55d   : > { %v4400_v18 = vmax.f32 %v8151_v59, 0.0 }
 0x560   : > { %v4287_v23 = vpop.f32.mrf.mxu1 }
 0x561   : > { %v3834_v31 = vpop.f32.mrf.mxu3  ;;  %v4333_v0 = vadd.f32 %v4287_v23, %v4099_v2  ;;  %v4524_v23 = vadd.f32 %v4523_v34, %v4397_v56  ;;  %v3604_v2 = vpop.f32.mrf.mxu2 }
 0x562   : > { %v3871_v58 = vadd.f32 %v3834_v31, %v3636_v35  ;;  %v4073_v34 = vpop.f32.mrf.mxu0 }
 0x563   : > { %v8158_v28 = vadd.f32 %v7981_v1, %v4333_v0 }
 0x564   : > { %v4105_v22 = vadd.f32 %v4068_v45, %v3871_v58 }
 0x565   : > { %v4401_v36 = vmax.f32 %v8158_v28, 0.0 }
 0x568   : > { %v4290_v13 = vpop.f32.mrf.mxu1 }
 0x569   : > { %v4334_v33 = vadd.f32 %v4290_v13, %v4100_v24  ;;  %v3837_v63 = vpop.f32.mrf.mxu3  ;;  %v4525_v13 = vadd.f32 %v4524_v23, %v4398_v38  ;;  %v8614_v24 = vld [vmem:[#allocation34_spill] sm:$0xff] }
 0x56a   : > { %v3872_v25 = vadd.f32 %v3837_v63, %v3637_v32  ;;  %v3638_v20 = vadd.f32 %v3604_v2, %v8614_v24  ;;  %v4560_v2 = vld [vmem:[%s8331_s6] sm:$0x1] }
 0x56b   : > { %v8165_v62 = vadd.f32 %v7981_v1, %v4334_v33 }
 0x56c   : > { %v4106_v54 = vadd.f32 %v4071_v19, %v3872_v25 }
 0x570   : > { %v4292_v21 = vpop.f32.mrf.mxu1 }
 0x571   : > { %v4335_v6 = vadd.f32 %v4292_v21, %v4101_v16  ;;  %v4526_v21 = vadd.f32 %v4525_v13, %v4399_v39  ;;  %v3839_v5 = vpop.f32.mrf.mxu3 }
 0x572   : > { %v3873_v33 = vadd.f32 %v3839_v5, %v3638_v20 }
 0x573   : > { %v8172_v46 = vadd.f32 %v7981_v1, %v4335_v6  ;;  %v4527_v49 = vadd.f32 %v4526_v21, %v4400_v18 }
 0x574   : > { %v4107_v35 = vadd.f32 %v4073_v34, %v3873_v33 }
 0x575   : > { %v4403_v45 = vmax.f32 %v8172_v46, 0.0 }
 0x578   : > { %v8108_v50 = vpop.f32.mrf.mxu1 }
 0x579   : > { %v4336_v48 = vadd.f32 %v8108_v50, %v4102_v40  ;;  %v4402_v50 = vmax.f32 %v8165_v62, 0.0 }
 0x57b   : > { %v8179_v27 = vadd.f32 %v7981_v1, %v4336_v48 }
 0x57d   : > { %v4404_v60 = vmax.f32 %v8179_v27, 0.0 }
 0x580   : > { %v8111_v57 = vpop.f32.mrf.mxu1 }
 0x581   : > { %v4337_v12 = vadd.f32 %v8111_v57, %v4103_v8  ;;  %v4528_v57 = vadd.f32 %v4527_v49, %v4401_v36 }
 0x583   : > { %v8188_v55 = vadd.f32 %v7981_v1, %v4337_v12 }
 0x585   : > { %v4405_v37 = vmax.f32 %v8188_v55, 0.0 }
 0x588   : > { %v4300_v3 = vpop.f32.mrf.mxu1 }
 0x589   : > { %v4338_v31 = vadd.f32 %v4300_v3, %v4104_v15  ;;  %v4529_v3 = vadd.f32 %v4528_v57, %v4402_v50 }
 0x58b   : > { %v8195_v4 = vadd.f32 %v7981_v1, %v4338_v31  ;;  %v4530_v16 = vadd.f32 %v4529_v3, %v4403_v45 }
 0x58d   : > { %v4531_v11 = vadd.f32 %v4530_v16, %v4404_v60  ;;  %v4406_v40 = vmax.f32 %v8195_v4, 0.0 }
 0x58f   : > { %v4532_v23 = vadd.f32 %v4531_v11, %v4405_v37 }
 0x590   : > { %v4302_v41 = vpop.f32.mrf.mxu1 }
 0x591   : > { %v4339_v47 = vadd.f32 %v4302_v41, %v4105_v22  ;;  %v4533_v8 = vadd.f32 %v4532_v23, %v4406_v40 }
 0x593   : > { %v4375_v29 = vadd.f32 %v7981_v1, %v4339_v47 }
 0x595   : > { %v4407_v6 = vmax.f32 %v4375_v29, 0.0 }
 0x597   : > { %v4534_v63 = vadd.f32 %v4533_v8, %v4407_v6 }
 0x598   : > { %v4305_v10 = vpop.f32.mrf.mxu1 }
 0x599   : > { %v4340_v0 = vadd.f32 %v4305_v10, %v4106_v54 }
 0x59b   : > { %v4376_v61 = vadd.f32 %v7981_v1, %v4340_v0 }
 0x59d   : > { %v4408_v43 = vmax.f32 %v4376_v61, 0.0 }
 0x59f   : > { %v4535_v13 = vadd.f32 %v4534_v63, %v4408_v43 }
 0x5a0   : > { %v4307_v44 = vpop.f32.mrf.mxu1 }
 0x5a1   : > { %v4341_v32 = vadd.f32 %v4307_v44, %v4107_v35 }
 0x5a3   : > { %v4377_v41 = vadd.f32 %v7981_v1, %v4341_v32 }
 0x5a5   : > { %v4409_v48 = vmax.f32 %v4377_v41, 0.0 }
 0x5a7   : > { %v4536_v58 = vadd.f32 %v4535_v13, %v4409_v48 }
 0x5a9   : > { %v4537_v15 = vrot.slane %v4536_v58, 4 }
 0x5ab   : > { %v4538_v19 = vadd.f32 %v4537_v15, %v4536_v58 }
 0x5ad   : > { %v4539_v21 = vrot.slane %v4538_v19, 2 }
 0x5af   : > { %v4540_v46 = vadd.f32 %v4539_v21, %v4538_v19 }
 0x5b1   : > { %v4541_v12 = vrot.slane %v4540_v46, 1 }
 0x5b3   : > { %v4542_v25 = vadd.f32 %v4541_v12, %v4540_v46 }
 0x5b5   : > { %v4543_v22 = vmul.f32 0.00390625, %v4542_v25 }
 0x5b7   : > { %4577 = vmatmul.f32.vlgmr.msrb.gmra.mxu2 %v4543_v22 }
 0x63a   : > { %v4578_v1 = vpop.f32.mrf.mxu2 }
 0x63b   : > { %v4579_v49 = vadd.f32 %v4578_v1, %v4560_v2 }
 0x63d   : > { %v4582_v27 = vsel %vm4581_vm4, %v4579_v49, -inf  ;;  %4606 = vst.msk [vmem:[%s335_s26] sm:$0x1] %vm4581_vm4, %v4579_v49 }
 0x63e   : > { %4583 = vmax.xlane.f32.xlu1 %v4582_v27 }
 0x678   : > { %4442 = vxpose.xlu1.b32.start [1/16] %v4394_v52, 128 }
 0x680   : > { %4443 = vxpose.xlu1.b32.cont [2/16] %v4395_v30, 128 }
 0x688   : > { %4444 = vxpose.xlu1.b32.cont [3/16] %v4396_v17, 128  ;;  %v4427_v17 = vpop.trf.xlu0 }
 0x689   : > { %4476 = vst [vmem:[%s8239_s16 + $0x10] sm:$0xff] %v4427_v17 }
 0x690   : > { %4445 = vxpose.xlu1.b32.cont [4/16] %v4397_v56, 128  ;;  %v4428_v9 = vpop.trf.xlu0 }
 0x691   : > { %4478 = vst [vmem:[%s8239_s16 + $0x20] sm:$0xff] %v4428_v9 }
 0x698   : > { %4446 = vxpose.xlu1.b32.cont [5/16] %v4398_v38, 128  ;;  %v4429_v56 = vpop.trf.xlu0 }
 0x699   : > { %4480 = vst [vmem:[%s8239_s16 + $0x30] sm:$0xff] %v4429_v56 }
 0x6a0   : > { %4447 = vxpose.xlu1.b32.cont [6/16] %v4399_v39, 128 }
 0x6a8   : > { %4448 = vxpose.xlu1.b32.cont [7/16] %v4400_v18, 128 }
 0x6b0   : > { %4449 = vxpose.xlu1.b32.cont [8/16] %v4401_v36, 128 }
 0x6b1   : > { %v4584_v26 = vpop.xlane.xlu1 %4583 }
 0x6b2   : > { %v4585_v42 = vsub.f32 %v4579_v49, %v4584_v26 }
 0x6b4   : > { %v4586_v52 = vmul.f32 1.442695, %v4585_v42 }
 0x6b6   : > { %5607 = vpow2.f32 %v4586_v52 }
 0x6b8   : > { %4450 = vxpose.xlu1.b32.cont [9/16] %v4402_v50, 128 }
 0x6bc   : > { %v8231_v7 = vpop.eup %5607 }
 0x6bd   : > { %v4588_v30 = vsel %vm4581_vm4, %v8231_v7, 0.0 }
 0x6be   : > { %4589 = vadd.xlane.f32.xlu2 %v4588_v30 }
 0x6c0   : > { %4451 = vxpose.xlu1.b32.cont [10/16] %v4403_v45, 128 }
 0x6c8   : > { %4452 = vxpose.xlu1.b32.cont [11/16] %v4404_v60, 128 }
 0x6d0   : > { %4453 = vxpose.xlu1.b32.cont [12/16] %v4405_v37, 128 }
 0x6d8   : > { %4454 = vxpose.xlu1.b32.cont [13/16] %v4406_v40, 128 }
 0x6e0   : > { %4455 = vxpose.xlu1.b32.cont [14/16] %v4407_v6, 128 }
 0x6e8   : > { %4456 = vxpose.xlu1.b32.cont [15/16] %v4408_v43, 128 }
 0x6f0   : > { %4457 = vxpose.xlu1.b32.end [16/16] %v4409_v48, 128 }
 0x6f1   : > { %5668 = shalt.err (!%p5665_p3)
}
 0x6f2   : > { %5560 = dma.vmem_to_hbm [thread:$0]  (%p5827_p5), %s4632_s22, 16, %s4634_s25, %s4614_s23   ;;  %v4430_v38 = vpop.trf.xlu0 }
 0x6f3   : > { %4482 = vst [vmem:[%s8239_s16 + $0x40] sm:$0xff] %v4430_v38  ;;  %s4642_s26 = scalar_lea.hbm %s8334_s9, %s5810_s13  ;;  %s341_s21 = scalar_lea.vmem [#allocation5], %s8203_s24 }
 0x6f4   : > { %s4644_s22 = sshll.u32 %s341_s21, 4  ;;  %s4646_s25 = sshll.u32 %s4642_s26, 4  ;;  %s4645_s22 = int_to_ptr.vmem [resolvable:$true] %s4644_s22  ;;  %s4647_s25 = int_to_ptr.hbm [resolvable:$true] %s4646_s25 }
 0x6f5   : > { %s4618_s13 = scalar_lea.sflag [#allocation6], %s8203_s24  ;;  %s5683_s23 = sshra.s32 %s4647_s25, 4  ;;  %s5684_s23 = int_to_ptr.hbm [resolvable:$true] %s5683_s23 }
 0x6f6   : > { %s5685_s27 = scalar_lea.hbm %s5684_s23, 1  ;;  %s5689_s29 = scalar_lea.hbm %s8334_s9, 2 }
 0x6f7   : > { %p5686_p4 = scmp.ne.s32.totalorder %s5684_s23, %s5685_s27  ;;  %p5690_p9 = scmp.lt.s32.totalorder %s5684_s23, %s8334_s9 }
 0x6f8   : > { %p5691_p10 = scmp.lt.s32.totalorder %s5689_s29, %s5685_s27 }
 0x6f9   : > { %p5687_p7 = pnand %p5686_p4, %p5827_p5 }
 0x6fa   : > { %v4431_v39 = vpop.trf.xlu0  ;;  %p5692_p11 = por %p5691_p10, %p5690_p9 }
 0x6fb   : > { %4484 = vst [vmem:[%s8239_s16 + $0x50] sm:$0xff] %v4431_v39  ;;  %p5688_p8 = pneg %p5687_p7 }
 0x6fd   : > { %p5693_p12 = pnand %p5692_p11, %p5688_p8 }
 0x702   : > { %v4432_v18 = vpop.trf.xlu0 }
 0x703   : > { %4486 = vst [vmem:[%s8239_s16 + $0x60] sm:$0xff] %v4432_v18 }
 0x70a   : > { %v4433_v50 = vpop.trf.xlu0 }
 0x70b   : > { %4488 = vst [vmem:[%s8239_s16 + $0x70] sm:$0xff] %v4433_v50 }
 0x712   : > { %v4434_v20 = vpop.trf.xlu0 }
 0x713   : > { %4490 = vst [vmem:[%s8239_s16 + $0x80] sm:$0xff] %v4434_v20 }
 0x71a   : > { %v4435_v5 = vpop.trf.xlu0 }
 0x71c   : > { %v4458_v14 = vpop.trf.xlu1 }
 0x71d   : > { %4475 = vst [vmem:[%s8239_s16 + $0x8] sm:$0xff] %v4458_v14 }
 0x724   : > { %v4459_v59 = vpop.trf.xlu1 }
 0x725   : > { %4477 = vst [vmem:[%s8239_s16 + $0x18] sm:$0xff] %v4459_v59 }
 0x72c   : > { %v4460_v28 = vpop.trf.xlu1 }
 0x72d   : > { %4479 = vst [vmem:[%s8239_s16 + $0x28] sm:$0xff] %v4460_v28 }
 0x731   : > { %v4590_v62 = vpop.xlane.xlu2 %4589 }
 0x732   : > { %5609 = vrcp.f32 %v4590_v62  ;;  %v4602_v57 = vand.u32 2147483648, %v4590_v62  ;;  %v4600_v47 = vand.u32 2147483647, %v4590_v62  ;;  %vm4596_vm6 = vweird.f32 %v4590_v62 }
 0x734   : > { %v4461_v36 = vpop.trf.xlu1  ;;  %v4603_v10 = vor.u32 1.1754944e-38, %v4602_v57  ;;  %vm4601_vm8 = vcmp.eq.f32.partialorder %v4600_v47, 8.507059e+37 }
 0x735   : > { %4481 = vst [vmem:[%s8239_s16 + $0x38] sm:$0xff] %v4461_v36 }
 0x738   : > { %v5610_v31 = vpop.eup %5609 }
 0x739   : > { %v4592_v51 = vmul.f32 %v5610_v31, %v4590_v62  ;;  %vm4597_vm5 = vweird.f32 %v5610_v31 }
 0x73a   : > { %vm4598_vm7 = vmor %vm4596_vm6, %vm4597_vm5 }
 0x73b   : > { %v4593_v54 = vsub.f32 1.0, %v4592_v51 }
 0x73c   : > { %v4462_v45 = vpop.trf.xlu1 }
 0x73d   : > { %v4594_v55 = vmul.f32 %v5610_v31, %v4593_v54  ;;  %4483 = vst [vmem:[%s8239_s16 + $0x48] sm:$0xff] %v4462_v45 }
 0x73f   : > { %v4595_v24 = vadd.f32 %v5610_v31, %v4594_v55 }
 0x741   : > { %v4599_v3 = vsel %vm4598_vm7, %v5610_v31, %v4595_v24 }
 0x742   : > { %v4604_v60 = vsel %vm4601_vm8, %v4603_v10, %v4599_v3 }
 0x743   : > { %v4605_v4 = vmul.f32 %v8231_v7, %v4604_v60 }
 0x744   : > { %v4463_v0 = vpop.trf.xlu1 }
 0x745   : > { %4485 = vst [vmem:[%s8239_s16 + $0x58] sm:$0xff] %v4463_v0 }
 0x746   : > { %4607 = vst.msk [vmem:[%s341_s21] sm:$0x1] %vm4581_vm4, %v4605_v4 }
 0x747   : > { %5696 = shalt.err (!%p5693_p12)
}
 0x748   : > { %5561 = dma.vmem_to_hbm [thread:$0]  (%p5827_p5), %s4645_s22, 16, %s4647_s25, %s4618_s13   ;;  %4492 = vst [vmem:[%s8239_s16 + $0x90] sm:$0xff] %v4435_v5  ;;  %v4436_v37 = vpop.trf.xlu0 }
 0x749   : > { %4494 = vst [vmem:[%s8239_s16 + $0xa0] sm:$0xff] %v4436_v37 }
 0x74c   : > { %v4464_v16 = vpop.trf.xlu1 }
 0x74d   : > { %4487 = vst [vmem:[%s8239_s16 + $0x68] sm:$0xff] %v4464_v16 }
 0x750   : > { %v4437_v34 = vpop.trf.xlu0 }
 0x751   : > { %4496 = vst [vmem:[%s8239_s16 + $0xb0] sm:$0xff] %v4437_v34 }
 0x754   : > { %v4465_v29 = vpop.trf.xlu1 }
 0x755   : > { %4489 = vst [vmem:[%s8239_s16 + $0x78] sm:$0xff] %v4465_v29 }
 0x758   : > { %v4438_v11 = vpop.trf.xlu0 }
 0x759   : > { %4498 = vst [vmem:[%s8239_s16 + $0xc0] sm:$0xff] %v4438_v11 }
 0x75c   : > { %v4466_v33 = vpop.trf.xlu1 }
 0x75d   : > { %4491 = vst [vmem:[%s8239_s16 + $0x88] sm:$0xff] %v4466_v33 }
 0x760   : > { %v4439_v61 = vpop.trf.xlu0 }
 0x761   : > { %4500 = vst [vmem:[%s8239_s16 + $0xd0] sm:$0xff] %v4439_v61 }
 0x764   : > { %v4467_v40 = vpop.trf.xlu1 }
 0x765   : > { %4493 = vst [vmem:[%s8239_s16 + $0x98] sm:$0xff] %v4467_v40 }
 0x768   : > { %v4440_v23 = vpop.trf.xlu0 }
 0x769   : > { %4502 = vst [vmem:[%s8239_s16 + $0xe0] sm:$0xff] %v4440_v23 }
 0x76c   : > { %v4468_v35 = vpop.trf.xlu1 }
 0x76d   : > { %4495 = vst [vmem:[%s8239_s16 + $0xa8] sm:$0xff] %v4468_v35 }
 0x770   : > { %v4441_v44 = vpop.trf.xlu0 }
 0x771   : > { %4504 = vst [vmem:[%s8239_s16 + $0xf0] sm:$0xff] %v4441_v44 }
 0x774   : > { %v4469_v6 = vpop.trf.xlu1 }
 0x775   : > { %4497 = vst [vmem:[%s8239_s16 + $0xb8] sm:$0xff] %v4469_v6 }
 0x77c   : > { %v4470_v8 = vpop.trf.xlu1 }
 0x77d   : > { %4499 = vst [vmem:[%s8239_s16 + $0xc8] sm:$0xff] %v4470_v8 }
 0x784   : > { %v4471_v43 = vpop.trf.xlu1 }
 0x785   : > { %4501 = vst [vmem:[%s8239_s16 + $0xd8] sm:$0xff] %v4471_v43 }
 0x78c   : > { %v4472_v32 = vpop.trf.xlu1 }
 0x78d   : > { %4503 = vst [vmem:[%s8239_s16 + $0xe8] sm:$0xff] %v4472_v32 }
 0x794   : > { %v4473_v63 = vpop.trf.xlu1 }
 0x795   : > { %4505 = vst [vmem:[%s8239_s16 + $0xf8] sm:$0xff] %v4473_v63 }
 0x796 PF: > { %p5571_p5 = scmp.ge.s32.totalorder %s5735_s12, 2  ;;  %s4666_s19 = sand.u32 1, %s5723_s30  }
 0x797   : > { %s4667_s24 = scalar_lea.sflag [#allocation4], %s4666_s19 }
 0x798   : > { %p5565_p13 = pnand %p5571_p5, %p5831_p6 }
 0x79a   : > { %p5566_p0 = pneg %p5565_p13 }
 0x79c   : > { %5714 = dma.done.wait (%p5566_p0), %s4667_s24, 16  }
 0x79d   : > { %5716 = vsyncadd (%p5566_p0), %s4667_s24, 4294967280  ;;  %s4676_s1 = scalar_lea.sflag [#allocation6], %s4666_s19 }
 0x79e   : > { %5718 = dma.done.wait (%p5566_p0), %s4676_s1, 16  }
 0x79f   : > { %5720 = vsyncadd (%p5566_p0), %s4676_s1, 4294967280  ;;  %p23_p1 = scmp.ge.s32.totalorder %s5814_s15, 4   ;;  %s8615_s30 = smov %s5727_s10 }
 0x7a0   : > { %s8616_s10 = smov %s5731_s11  ;;  %s8617_s11 = smov %s5825_s18 }
 0x7a1   : > { %s8618_s12 = smov %s5814_s15  ;;  %25 = sbr.rel (!%p23_p1) target bundleno = 8 (0x8), region = 130 }
 0x7a6   :  { %4681 = vsyncpa [#allocation4], 1 }
 0x7a7   :  { %4683 = vsyncpa [#allocation4 + $0x1], 1 }
 0x7a8   :  { %4684 = vsyncpa [#allocation6], 1 }
 0x7a9   :  { %4686 = vsyncpa [#allocation6 + $0x1], 1 }

</bundles_post_ra>
